<compile_context>
chip_gen: v7x
topology: tpu7x:2x2x1
jax: 0.10.0
libtpu: 0.0.40
codegen_flags: <defaults>
</compile_context>

<pallas_src>
import functools

import jax
import jax.numpy as jnp
from jax.experimental import pallas as pl
from jax.experimental.pallas import tpu as pltpu

EPS = 1e-5
LANE = 128
VMEM_LIMIT = 48 * 1024 * 1024  # safe on v5e/v6e (128 MiB) and v7x (64 MiB) physical


# ----------------------------- helpers --------------------------------------

def _rup(n, m=LANE):
    return ((n + m - 1) // m) * m


def _pad_last(a, to):
    pad = to - a.shape[-1]
    if pad == 0:
        return a
    return jnp.pad(a, [(0, 0)] * (a.ndim - 1) + [(0, pad)])


def _pick_tm(m, target):
    """Largest multiple-of-8 divisor of m that is <= target (fallback: m)."""
    if m <= target:
        return m
    for t in range(target, 7, -1):
        if m % t == 0 and t % 8 == 0:
            return t
    return m


def _stats_rows(vals, c):
    """Pack per-tile channel sum / sum-of-squares into an (8, C) f32 slab."""
    s = jnp.sum(vals, axis=0, keepdims=True)
    ss = jnp.sum(vals * vals, axis=0, keepdims=True)
    return jnp.concatenate([s, ss, jnp.zeros((6, c), jnp.float32)], axis=0)


def _finalize_bn(stats, count, g, b):
    """Per-tile partial sums -> (1, C) scale/shift so bn(x) == x*scale + shift."""
    s = jnp.sum(stats[:, 0, :], axis=0)
    ss = jnp.sum(stats[:, 1, :], axis=0)
    mean = s / count
    var = jnp.maximum(ss / count - mean * mean, 0.0)          # biased variance
    scale = g.reshape(-1) * jax.lax.rsqrt(var + EPS)
    shift = b.reshape(-1) - mean * scale
    return scale.reshape(1, -1), shift.reshape(1, -1)


# ----------------------------- kernels --------------------------------------

def _conv1_stats_kernel(x_ref, w1_ref, y_ref, st_ref):
    # 1x1 conv == row-tile matmul; emit raw output + channel stats partials.
    y = jnp.dot(x_ref[...], w1_ref[...], preferred_element_type=jnp.float32)
    y_ref[...] = y.astype(y_ref.dtype)
    st_ref[0] = _stats_rows(y, y.shape[1])


def _bn1_conv2_stats_kernel(y1_ref, s1_ref, t1_ref, w2_ref, y2_ref, st_ref):
    # Fused bn1 + relu on the raw conv1 output, then 3x3 conv (pad=1, stride=1)
    # as 9 shifted accumulated matmuls.  Spatial zero padding is built in VMEM
    # *after* bn+relu (matching PyTorch's zero-padded conv on normalized acts).
    _, H, W, C = y1_ref.shape
    a = y1_ref[0].astype(jnp.float32)
    a = a * s1_ref[...].reshape(1, 1, C) + t1_ref[...].reshape(1, 1, C)
    a = jnp.maximum(a, 0.0).astype(w2_ref.dtype)
    zr = jnp.zeros((1, W, C), a.dtype)
    a = jnp.concatenate([zr, a, zr], axis=0)                  # (H+2, W, C)
    zc = jnp.zeros((H + 2, 1, C), a.dtype)
    a = jnp.concatenate([zc, a, zc], axis=1)                  # (H+2, W+2, C)

    acc = jnp.zeros((H * W, C), jnp.float32)
    for kh in range(3):
        for kw in range(3):
            win = a[kh:kh + H, kw:kw + W, :].reshape(H * W, C)
            acc = acc + jnp.dot(win, w2_ref[3 * kh + kw],
                                preferred_element_type=jnp.float32)
    y2_ref[0] = acc.astype(y2_ref.dtype)
    st_ref[0] = _stats_rows(acc, C)


def _bn2_conv3_stats_kernel(y2_ref, s2_ref, t2_ref, w3_ref, z_ref, st_ref):
    # Fused bn2 + relu, then 1x1 conv; emit raw output + stats partials.
    y = y2_ref[...].astype(jnp.float32) * s2_ref[...] + t2_ref[...]
    y = jnp.maximum(y, 0.0).astype(w3_ref.dtype)
    z = jnp.dot(y, w3_ref[...], preferred_element_type=jnp.float32)
    z_ref[...] = z.astype(z_ref.dtype)
    st_ref[0] = _stats_rows(z, z.shape[1])


def _bn3_add_relu_kernel(z_ref, s3_ref, t3_ref, id_ref, o_ref):
    # Fused bn3 + identity residual (f32) + final relu.
    z = z_ref[...].astype(jnp.float32) * s3_ref[...] + t3_ref[...]
    o_ref[...] = jnp.maximum(z + id_ref[...], 0.0)


# ----------------------------- wrapper --------------------------------------

def bottleneck_forward(x_nchw, params, *, tm=1024, compute_dtype=jnp.bfloat16):
    N, Cin, H, W = x_nchw.shape
    M = N * H * W
    w1, w2, w3 = params["w1"], params["w2"], params["w3"]
    C1, Cout = w1.shape[1], w3.shape[1]
    assert Cout == Cin, "identity residual requires inplanes == planes*expansion"

    CinP, C1P, CoutP = _rup(Cin), _rup(C1), _rup(Cout)
    TM = _pick_tm(M, tm)
    nT = M // TM
    cparams = pltpu.CompilerParams(dimension_semantics=("parallel",),
                                   vmem_limit_bytes=VMEM_LIMIT)

    # NCHW -> channels-last rows; pad channels to multiple of 128 (lane-dense).
    x_nhwc = jnp.transpose(x_nchw, (0, 2, 3, 1)).astype(jnp.float32)
    x2d = _pad_last(x_nhwc.reshape(M, Cin), CinP)             # f32 identity path
    x2d_c = x2d.astype(compute_dtype)                         # matmul operand

    w1p = jnp.pad(w1, ((0, CinP - Cin), (0, C1P - C1))).astype(compute_dtype)
    w2p = jnp.pad(w2, ((0, 0), (0, 0), (0, C1P - C1), (0, C1P - C1))) \
              .reshape(9, C1P, C1P).astype(compute_dtype)
    w3p = jnp.pad(w3, ((0, C1P - C1), (0, CoutP - Cout))).astype(compute_dtype)
    g1, b1 = _pad_last(params["g1"], C1P), _pad_last(params["b1"], C1P)
    g2, b2 = _pad_last(params["g2"], C1P), _pad_last(params["b2"], C1P)
    g3, b3 = _pad_last(params["g3"], CoutP), _pad_last(params["b3"], CoutP)

    cnt = jnp.float32(M)
    row_spec = lambda c: pl.BlockSpec((TM, c), lambda i: (i, 0))
    vec_spec = lambda c: pl.BlockSpec((1, c), lambda i: (0, 0))
    st_spec = lambda c: pl.BlockSpec((1, 8, c), lambda i: (i, 0, 0))

    # --- stage A: conv1 (1x1) + channel stats --------------------------------
    y1_raw, st1 = pl.pallas_call(
        _conv1_stats_kernel,
        grid=(nT,),
        in_specs=[row_spec(CinP),
                  pl.BlockSpec((CinP, C1P), lambda i: (0, 0))],
        out_specs=(row_spec(C1P), st_spec(C1P)),
        out_shape=(jax.ShapeDtypeStruct((M, C1P), compute_dtype),
                   jax.ShapeDtypeStruct((nT, 8, C1P), jnp.float32)),
        compiler_params=cparams,
    )(x2d_c, w1p)
    scale1, shift1 = _finalize_bn(st1, cnt, g1, b1)

    # --- stage B: fused bn1+relu, 3x3 conv (9 shifted matmuls) + stats --------
    y1_img = y1_raw.reshape(N, H, W, C1P)
    y2_raw, st2 = pl.pallas_call(
        _bn1_conv2_stats_kernel,
        grid=(N,),
        in_specs=[pl.BlockSpec((1, H, W, C1P), lambda n: (n, 0, 0, 0)),
                  vec_spec(C1P), vec_spec(C1P),
                  pl.BlockSpec((9, C1P, C1P), lambda n: (0, 0, 0))],
        out_specs=(pl.BlockSpec((1, H * W, C1P), lambda n: (n, 0, 0)),
                   st_spec(C1P)),
        out_shape=(jax.ShapeDtypeStruct((N, H * W, C1P), compute_dtype),
                   jax.ShapeDtypeStruct((N, 8, C1P), jnp.float32)),
        compiler_params=cparams,
    )(y1_img, scale1, shift1, w2p)
    scale2, shift2 = _finalize_bn(st2, cnt, g2, b2)

    # --- stage C: fused bn2+relu, conv3 (1x1) + stats -------------------------
    z_raw, st3 = pl.pallas_call(
        _bn2_conv3_stats_kernel,
        grid=(nT,),
        in_specs=[row_spec(C1P), vec_spec(C1P), vec_spec(C1P),
                  pl.BlockSpec((C1P, CoutP), lambda i: (0, 0))],
        out_specs=(row_spec(CoutP), st_spec(CoutP)),
        out_shape=(jax.ShapeDtypeStruct((M, CoutP), compute_dtype),
                   jax.ShapeDtypeStruct((nT, 8, CoutP), jnp.float32)),
        compiler_params=cparams,
    )(y2_raw.reshape(M, C1P), scale2, shift2, w3p)
    scale3, shift3 = _finalize_bn(st3, cnt, g3, b3)

    # --- stage D: fused bn3 + identity residual + relu ------------------------
    out2d = pl.pallas_call(
        _bn3_add_relu_kernel,
        grid=(nT,),
        in_specs=[row_spec(CoutP), vec_spec(CoutP), vec_spec(CoutP),
                  row_spec(CoutP)],
        out_specs=row_spec(CoutP),
        out_shape=jax.ShapeDtypeStruct((M, CoutP), jnp.float32),
        compiler_params=cparams,
    )(z_raw, scale3, shift3, x2d)

    out = out2d[:, :Cout].reshape(N, H, W, Cout)
    return jnp.transpose(out, (0, 3, 1, 2))


# ----------------------------- params + reference ---------------------------

def init_params(key, inplanes, planes, base_width=64, groups=1, w_scale=0.2):
    width = int(planes * (base_width / 64.0)) * groups
    cout = planes * 4  # expansion = 4
    ks = jax.random.split(key, 9)
    n = jax.random.normal
    return {
        "w1": w_scale * n(ks[0], (inplanes, width), jnp.float32),
        "w2": w_scale * n(ks[1], (3, 3, width, width), jnp.float32),
        "w3": w_scale * n(ks[2], (width, cout), jnp.float32),
        "g1": 1.0 + 0.1 * n(ks[3], (1, width), jnp.float32),
        "b1": 0.1 * n(ks[4], (1, width), jnp.float32),
        "g2": 1.0 + 0.1 * n(ks[5], (1, width), jnp.float32),
        "b2": 0.1 * n(ks[6], (1, width), jnp.float32),
        "g3": 1.0 + 0.1 * n(ks[7], (1, cout), jnp.float32),
        "b3": 0.1 * n(ks[8], (1, cout), jnp.float32),
    }


def reference(x_nchw, p):
    # Pure-JAX f32 reference matching the PyTorch module (training-mode BN).
    xh = jnp.transpose(x_nchw, (0, 2, 3, 1)).astype(jnp.float32)

    def bn(y, g, b):
        mean = jnp.mean(y, axis=(0, 1, 2), keepdims=True)
        var = jnp.mean(jnp.square(y - mean), axis=(0, 1, 2), keepdims=True)
        return (y - mean) * jax.lax.rsqrt(var + EPS) * g.reshape(1, 1, 1, -1) \
            + b.reshape(1, 1, 1, -1)

    y = jnp.einsum("nhwc,cd->nhwd", xh, p["w1"])
    y = jax.nn.relu(bn(y, p["g1"], p["b1"]))
    y = jax.lax.conv_general_dilated(
        y, p["w2"], (1, 1), "SAME", dimension_numbers=("NHWC", "HWIO", "NHWC"))
    y = jax.nn.relu(bn(y, p["g2"], p["b2"]))
    z = jnp.einsum("nhwc,cd->nhwd", y, p["w3"])
    z = bn(z, p["g3"], p["b3"])
    return jnp.transpose(jax.nn.relu(z + xh), (0, 3, 1, 2))


if __name__ == "__main__":
    key = jax.random.PRNGKey(0)
    kx, kp = jax.random.split(key)

    # Bottleneck(inplanes=32, planes=8): width=8, out channels=32 == inplanes,
    # stride=1, downsample=None  ==> identity residual (module semantics).
    N, inplanes, planes, H, W = 2, 32, 8, 16, 16
    x = jax.random.normal(kx, (N, inplanes, H, W), jnp.float32)
    params = init_params(kp, inplanes, planes)

    ref = reference(x, params)

    # Structural check: f32 compute path must match the reference tightly.
    fwd_f32 = jax.jit(functools.partial(bottleneck_forward, tm=128,
                                        compute_dtype=jnp.float32))
    out_f32 = jax.block_until_ready(fwd_f32(x, params))
    assert out_f32.shape == x.shape
    err_f32 = float(jnp.max(jnp.abs(out_f32 - ref)))
    assert bool(jnp.allclose(out_f32, ref, atol=2e-3, rtol=2e-3)), \
        f"f32 path mismatch vs reference (max err {err_f32})"

    # Performance path: bf16 matmul operands (MXU native), f32 BN/residual math.
    fwd_bf16 = jax.jit(functools.partial(bottleneck_forward, tm=128,
                                         compute_dtype=jnp.bfloat16))
    out_bf16 = jax.block_until_ready(fwd_bf16(x, params))
    err_bf16 = float(jnp.max(jnp.abs(out_bf16 - ref)))
    assert err_bf16 < 0.25, f"bf16 path deviates too much: {err_bf16}"

    print("KERNEL_OK")
</pallas_src>

<mosaic_0001>
module attributes {stable_mosaic.version = 11 : i64} {
  func.func @_conv1_stats_kernel(%arg0: i32, %arg1: memref<128x128xf32, #tpu.memory_space<vmem>>, %arg2: memref<128x128xf32, #tpu.memory_space<vmem>>, %arg3: memref<128x128xf32, #tpu.memory_space<vmem>>, %arg4: memref<1x8x128xf32, #tpu.memory_space<vmem>>) attributes {dimension_semantics = [#tpu.dimension_semantics<parallel>], iteration_bounds = array<i64: 4>, scalar_prefetch = 0 : i64, scratch_operands = 0 : i64, tpu.core_type = #tpu.core_type<tc>, window_params = [{transform_indices = @transform_0, window_bounds = array<i64: 128, 128>}, {pipeline_mode = #tpu.pipeline_mode<synchronous>, transform_indices = @transform_1, window_bounds = array<i64: 128, 128>}, {transform_indices = @transform_2, window_bounds = array<i64: 128, 128>}, {transform_indices = @transform_3, window_bounds = array<i64: 1, 8, 128>}]} {
    %c0 = arith.constant 0 : index
    %c0_0 = arith.constant 0 : index
    %0 = vector.load %arg1[%c0, %c0_0] : memref<128x128xf32, #tpu.memory_space<vmem>>, vector<128x128xf32>
    %c0_1 = arith.constant 0 : index
    %c0_2 = arith.constant 0 : index
    %1 = vector.load %arg2[%c0_1, %c0_2] : memref<128x128xf32, #tpu.memory_space<vmem>>, vector<128x128xf32>
    %cst = arith.constant dense<0.000000e+00> : vector<128x128xf32>
    %2 = tpu.matmul %0, %1, %cst {dimension_numbers = #tpu.dot_dimension_numbers<[1], [0], [0], [1], [0, 0, 1, 1], [], []>} : vector<128x128xf32>, vector<128x128xf32>, vector<128x128xf32> -> vector<128x128xf32>
    %c0_3 = arith.constant 0 : index
    %c0_4 = arith.constant 0 : index
    %3 = vector.load %arg3[%c0_3, %c0_4] : memref<128x128xf32, #tpu.memory_space<vmem>>, vector<128x128xf32>
    tpu.vector_store %arg3[%c0_3, %c0_4], %2 {strides = array<i32>} : memref<128x128xf32, #tpu.memory_space<vmem>>, vector<128x128xf32>,
    %cst_5 = arith.constant dense<0.000000e+00> : vector<128xf32>
    %4 = vector.multi_reduction <add>, %2, %cst_5 [0] : vector<128x128xf32> to vector<128xf32>
    %5 = vector.shape_cast %4 : vector<128xf32> to vector<1x128xf32>
    %6 = arith.mulf %2, %2 : vector<128x128xf32>
    %cst_6 = arith.constant dense<0.000000e+00> : vector<128xf32>
    %7 = vector.multi_reduction <add>, %6, %cst_6 [0] : vector<128x128xf32> to vector<128xf32>
    %8 = vector.shape_cast %7 : vector<128xf32> to vector<1x128xf32>
    %cst_7 = arith.constant 0.000000e+00 : f32
    %9 = vector.broadcast %cst_7 : f32 to vector<6x128xf32>
    %10 = tpu.concatenate %5, %8, %9 in 0 : vector<1x128xf32>, vector<1x128xf32>, vector<6x128xf32> -> vector<8x128xf32>
    %c0_8 = arith.constant 0 : index
    %c0_9 = arith.constant 0 : index
    %c0_10 = arith.constant 0 : index
    %11 = vector.load %arg4[%c0_8, %c0_9, %c0_10] : memref<1x8x128xf32, #tpu.memory_space<vmem>>, vector<1x8x128xf32>
    %12 = vector.shape_cast %11 : vector<1x8x128xf32> to vector<8x128xf32>
    %13 = vector.shape_cast %10 : vector<8x128xf32> to vector<1x8x128xf32>
    tpu.vector_store %arg4[%c0_8, %c0_9, %c0_10], %13 {strides = array<i32>} : memref<1x8x128xf32, #tpu.memory_space<vmem>>, vector<1x8x128xf32>,
    return
  }
  func.func @transform_0(%arg0: i32) -> (i32, i32) {
    %c0_i32 = arith.constant 0 : i32
    %c0_i32_0 = arith.constant 0 : i32
    return %arg0, %c0_i32 : i32, i32
  }
  func.func @transform_1(%arg0: i32) -> (i32, i32) {
    %c0_i32 = arith.constant 0 : i32
    %c0_i32_0 = arith.constant 0 : i32
    %c0_i32_1 = arith.constant 0 : i32
    return %c0_i32, %c0_i32_0 : i32, i32
  }
  func.func @transform_2(%arg0: i32) -> (i32, i32) {
    %c0_i32 = arith.constant 0 : i32
    %c0_i32_0 = arith.constant 0 : i32
    return %arg0, %c0_i32 : i32, i32
  }
  func.func @transform_3(%arg0: i32) -> (i32, i32, i32) {
    %c0_i32 = arith.constant 0 : i32
    %c0_i32_0 = arith.constant 0 : i32
    %c0_i32_1 = arith.constant 0 : i32
    return %arg0, %c0_i32, %c0_i32_0 : i32, i32, i32
  }
}

module attributes {stable_mosaic.version = 11 : i64} {
  func.func @_bn1_conv2_stats_kernel(%arg0: i32, %arg1: memref<1x16x16x128xf32, #tpu.memory_space<vmem>>, %arg2: memref<1x128xf32, #tpu.memory_space<vmem>>, %arg3: memref<1x128xf32, #tpu.memory_space<vmem>>, %arg4: memref<9x128x128xf32, #tpu.memory_space<vmem>>, %arg5: memref<1x256x128xf32, #tpu.memory_space<vmem>>, %arg6: memref<1x8x128xf32, #tpu.memory_space<vmem>>) attributes {dimension_semantics = [#tpu.dimension_semantics<parallel>], iteration_bounds = array<i64: 2>, scalar_prefetch = 0 : i64, scratch_operands = 0 : i64, tpu.core_type = #tpu.core_type<tc>, window_params = [{transform_indices = @transform_0, window_bounds = array<i64: 1, 16, 16, 128>}, {pipeline_mode = #tpu.pipeline_mode<synchronous>, transform_indices = @transform_1, window_bounds = array<i64: 1, 128>}, {pipeline_mode = #tpu.pipeline_mode<synchronous>, transform_indices = @transform_2, window_bounds = array<i64: 1, 128>}, {pipeline_mode = #tpu.pipeline_mode<synchronous>, transform_indices = @transform_3, window_bounds = array<i64: 9, 128, 128>}, {transform_indices = @transform_4, window_bounds = array<i64: 1, 256, 128>}, {transform_indices = @transform_5, window_bounds = array<i64: 1, 8, 128>}]} {
    %c0 = arith.constant 0 : index
    %c0_0 = arith.constant 0 : index
    %c0_1 = arith.constant 0 : index
    %c0_2 = arith.constant 0 : index
    %0 = vector.load %arg1[%c0, %c0_0, %c0_1, %c0_2] : memref<1x16x16x128xf32, #tpu.memory_space<vmem>>, vector<1x16x16x128xf32>
    %1 = vector.shape_cast %0 : vector<1x16x16x128xf32> to vector<16x16x128xf32>
    %c0_3 = arith.constant 0 : index
    %c0_4 = arith.constant 0 : index
    %2 = vector.load %arg2[%c0_3, %c0_4] : memref<1x128xf32, #tpu.memory_space<vmem>>, vector<1x128xf32>
    %3 = vector.shape_cast %2 : vector<1x128xf32> to vector<1x1x128xf32>
    %4 = vector.broadcast %3 : vector<1x1x128xf32> to vector<16x16x128xf32>
    %5 = arith.mulf %1, %4 : vector<16x16x128xf32>
    %c0_5 = arith.constant 0 : index
    %c0_6 = arith.constant 0 : index
    %6 = vector.load %arg3[%c0_5, %c0_6] : memref<1x128xf32, #tpu.memory_space<vmem>>, vector<1x128xf32>
    %7 = vector.shape_cast %6 : vector<1x128xf32> to vector<1x1x128xf32>
    %8 = vector.broadcast %7 : vector<1x1x128xf32> to vector<16x16x128xf32>
    %9 = arith.addf %5, %8 : vector<16x16x128xf32>
    %cst = arith.constant 0.000000e+00 : f32
    %10 = vector.broadcast %cst : f32 to vector<16x16x128xf32>
    %11 = arith.maximumf %9, %10 : vector<16x16x128xf32>
    %cst_7 = arith.constant 0.000000e+00 : f32
    %12 = vector.broadcast %cst_7 : f32 to vector<1x16x128xf32>
    %13 = tpu.concatenate %12, %11, %12 in 0 : vector<1x16x128xf32>, vector<16x16x128xf32>, vector<1x16x128xf32> -> vector<18x16x128xf32>
    %cst_8 = arith.constant 0.000000e+00 : f32
    %14 = vector.broadcast %cst_8 : f32 to vector<18x1x128xf32>
    %15 = tpu.concatenate %14, %13, %14 in 1 : vector<18x1x128xf32>, vector<18x16x128xf32>, vector<18x1x128xf32> -> vector<18x18x128xf32>
    %cst_9 = arith.constant 0.000000e+00 : f32
    %16 = vector.broadcast %cst_9 : f32 to vector<256x128xf32>
    %17 = vector.extract_strided_slice %15 {offsets = [0, 0, 0], sizes = [16, 16, 128], strides = [1, 1, 1]} : vector<18x18x128xf32> to vector<16x16x128xf32>
    %18 = vector.shape_cast %17 : vector<16x16x128xf32> to vector<256x128xf32>
    %c0_10 = arith.constant 0 : index
    %c0_11 = arith.constant 0 : index
    %c0_12 = arith.constant 0 : index
    %19 = vector.load %arg4[%c0_10, %c0_11, %c0_12] : memref<9x128x128xf32, #tpu.memory_space<vmem>>, vector<1x128x128xf32>
    %20 = vector.shape_cast %19 : vector<1x128x128xf32> to vector<128x128xf32>
    %cst_13 = arith.constant dense<0.000000e+00> : vector<256x128xf32>
    %21 = tpu.matmul %18, %20, %cst_13 {dimension_numbers = #tpu.dot_dimension_numbers<[1], [0], [0], [1], [0, 0, 1, 1], [], []>} : vector<256x128xf32>, vector<128x128xf32>, vector<256x128xf32> -> vector<256x128xf32>
    %22 = arith.addf %16, %21 : vector<256x128xf32>
    %23 = vector.extract_strided_slice %15 {offsets = [0, 1, 0], sizes = [16, 16, 128], strides = [1, 1, 1]} : vector<18x18x128xf32> to vector<16x16x128xf32>
    %24 = vector.shape_cast %23 : vector<16x16x128xf32> to vector<256x128xf32>
    %c1 = arith.constant 1 : index
    %c0_14 = arith.constant 0 : index
    %c0_15 = arith.constant 0 : index
    %25 = vector.load %arg4[%c1, %c0_14, %c0_15] : memref<9x128x128xf32, #tpu.memory_space<vmem>>, vector<1x128x128xf32>
    %26 = vector.shape_cast %25 : vector<1x128x128xf32> to vector<128x128xf32>
    %cst_16 = arith.constant dense<0.000000e+00> : vector<256x128xf32>
    %27 = tpu.matmul %24, %26, %cst_16 {dimension_numbers = #tpu.dot_dimension_numbers<[1], [0], [0], [1], [0, 0, 1, 1], [], []>} : vector<256x128xf32>, vector<128x128xf32>, vector<256x128xf32> -> vector<256x128xf32>
    %28 = arith.addf %22, %27 : vector<256x128xf32>
    %29 = vector.extract_strided_slice %15 {offsets = [0, 2, 0], sizes = [16, 16, 128], strides = [1, 1, 1]} : vector<18x18x128xf32> to vector<16x16x128xf32>
    %30 = vector.shape_cast %29 : vector<16x16x128xf32> to vector<256x128xf32>
    %c2 = arith.constant 2 : index
    %c0_17 = arith.constant 0 : index
    %c0_18 = arith.constant 0 : index
    %31 = vector.load %arg4[%c2, %c0_17, %c0_18] : memref<9x128x128xf32, #tpu.memory_space<vmem>>, vector<1x128x128xf32>
    %32 = vector.shape_cast %31 : vector<1x128x128xf32> to vector<128x128xf32>
    %cst_19 = arith.constant dense<0.000000e+00> : vector<256x128xf32>
    %33 = tpu.matmul %30, %32, %cst_19 {dimension_numbers = #tpu.dot_dimension_numbers<[1], [0], [0], [1], [0, 0, 1, 1], [], []>} : vector<256x128xf32>, vector<128x128xf32>, vector<256x128xf32> -> vector<256x128xf32>
    %34 = arith.addf %28, %33 : vector<256x128xf32>
    %35 = vector.extract_strided_slice %15 {offsets = [1, 0, 0], sizes = [16, 16, 128], strides = [1, 1, 1]} : vector<18x18x128xf32> to vector<16x16x128xf32>
    %36 = vector.shape_cast %35 : vector<16x16x128xf32> to vector<256x128xf32>
    %c3 = arith.constant 3 : index
    %c0_20 = arith.constant 0 : index
    %c0_21 = arith.constant 0 : index
    %37 = vector.load %arg4[%c3, %c0_20, %c0_21] : memref<9x128x128xf32, #tpu.memory_space<vmem>>, vector<1x128x128xf32>
    %38 = vector.shape_cast %37 : vector<1x128x128xf32> to vector<128x128xf32>
    %cst_22 = arith.constant dense<0.000000e+00> : vector<256x128xf32>
    %39 = tpu.matmul %36, %38, %cst_22 {dimension_numbers = #tpu.dot_dimension_numbers<[1], [0], [0], [1], [0, 0, 1, 1], [], []>} : vector<256x128xf32>, vector<128x128xf32>, vector<256x128xf32> -> vector<256x128xf32>
    %40 = arith.addf %34, %39 : vector<256x128xf32>
    %41 = vector.extract_strided_slice %15 {offsets = [1, 1, 0], sizes = [16, 16, 128], strides = [1, 1, 1]} : vector<18x18x128xf32> to vector<16x16x128xf32>
    %42 = vector.shape_cast %41 : vector<16x16x128xf32> to vector<256x128xf32>
    %c4 = arith.constant 4 : index
    %c0_23 = arith.constant 0 : index
    %c0_24 = arith.constant 0 : index
    %43 = vector.load %arg4[%c4, %c0_23, %c0_24] : memref<9x128x128xf32, #tpu.memory_space<vmem>>, vector<1x128x128xf32>
    %44 = vector.shape_cast %43 : vector<1x128x128xf32> to vector<128x128xf32>
    %cst_25 = arith.constant dense<0.000000e+00> : vector<256x128xf32>
    %45 = tpu.matmul %42, %44, %cst_25 {dimension_numbers = #tpu.dot_dimension_numbers<[1], [0], [0], [1], [0, 0, 1, 1], [], []>} : vector<256x128xf32>, vector<128x128xf32>, vector<256x128xf32> -> vector<256x128xf32>
    %46 = arith.addf %40, %45 : vector<256x128xf32>
    %47 = vector.extract_strided_slice %15 {offsets = [1, 2, 0], sizes = [16, 16, 128], strides = [1, 1, 1]} : vector<18x18x128xf32> to vector<16x16x128xf32>
    %48 = vector.shape_cast %47 : vector<16x16x128xf32> to vector<256x128xf32>
    %c5 = arith.constant 5 : index
    %c0_26 = arith.constant 0 : index
    %c0_27 = arith.constant 0 : index
    %49 = vector.load %arg4[%c5, %c0_26, %c0_27] : memref<9x128x128xf32, #tpu.memory_space<vmem>>, vector<1x128x128xf32>
    %50 = vector.shape_cast %49 : vector<1x128x128xf32> to vector<128x128xf32>
    %cst_28 = arith.constant dense<0.000000e+00> : vector<256x128xf32>
    %51 = tpu.matmul %48, %50, %cst_28 {dimension_numbers = #tpu.dot_dimension_numbers<[1], [0], [0], [1], [0, 0, 1, 1], [], []>} : vector<256x128xf32>, vector<128x128xf32>, vector<256x128xf32> -> vector<256x128xf32>
    %52 = arith.addf %46, %51 : vector<256x128xf32>
    %53 = vector.extract_strided_slice %15 {offsets = [2, 0, 0], sizes = [16, 16, 128], strides = [1, 1, 1]} : vector<18x18x128xf32> to vector<16x16x128xf32>
    %54 = vector.shape_cast %53 : vector<16x16x128xf32> to vector<256x128xf32>
    %c6 = arith.constant 6 : index
    %c0_29 = arith.constant 0 : index
    %c0_30 = arith.constant 0 : index
    %55 = vector.load %arg4[%c6, %c0_29, %c0_30] : memref<9x128x128xf32, #tpu.memory_space<vmem>>, vector<1x128x128xf32>
    %56 = vector.shape_cast %55 : vector<1x128x128xf32> to vector<128x128xf32>
    %cst_31 = arith.constant dense<0.000000e+00> : vector<256x128xf32>
    %57 = tpu.matmul %54, %56, %cst_31 {dimension_numbers = #tpu.dot_dimension_numbers<[1], [0], [0], [1], [0, 0, 1, 1], [], []>} : vector<256x128xf32>, vector<128x128xf32>, vector<256x128xf32> -> vector<256x128xf32>
    %58 = arith.addf %52, %57 : vector<256x128xf32>
    %59 = vector.extract_strided_slice %15 {offsets = [2, 1, 0], sizes = [16, 16, 128], strides = [1, 1, 1]} : vector<18x18x128xf32> to vector<16x16x128xf32>
    %60 = vector.shape_cast %59 : vector<16x16x128xf32> to vector<256x128xf32>
    %c7 = arith.constant 7 : index
    %c0_32 = arith.constant 0 : index
    %c0_33 = arith.constant 0 : index
    %61 = vector.load %arg4[%c7, %c0_32, %c0_33] : memref<9x128x128xf32, #tpu.memory_space<vmem>>, vector<1x128x128xf32>
    %62 = vector.shape_cast %61 : vector<1x128x128xf32> to vector<128x128xf32>
    %cst_34 = arith.constant dense<0.000000e+00> : vector<256x128xf32>
    %63 = tpu.matmul %60, %62, %cst_34 {dimension_numbers = #tpu.dot_dimension_numbers<[1], [0], [0], [1], [0, 0, 1, 1], [], []>} : vector<256x128xf32>, vector<128x128xf32>, vector<256x128xf32> -> vector<256x128xf32>
    %64 = arith.addf %58, %63 : vector<256x128xf32>
    %65 = vector.extract_strided_slice %15 {offsets = [2, 2, 0], sizes = [16, 16, 128], strides = [1, 1, 1]} : vector<18x18x128xf32> to vector<16x16x128xf32>
    %66 = vector.shape_cast %65 : vector<16x16x128xf32> to vector<256x128xf32>
    %c8 = arith.constant 8 : index
    %c0_35 = arith.constant 0 : index
    %c0_36 = arith.constant 0 : index
    %67 = vector.load %arg4[%c8, %c0_35, %c0_36] : memref<9x128x128xf32, #tpu.memory_space<vmem>>, vector<1x128x128xf32>
    %68 = vector.shape_cast %67 : vector<1x128x128xf32> to vector<128x128xf32>
    %cst_37 = arith.constant dense<0.000000e+00> : vector<256x128xf32>
    %69 = tpu.matmul %66, %68, %cst_37 {dimension_numbers = #tpu.dot_dimension_numbers<[1], [0], [0], [1], [0, 0, 1, 1], [], []>} : vector<256x128xf32>, vector<128x128xf32>, vector<256x128xf32> -> vector<256x128xf32>
    %70 = arith.addf %64, %69 : vector<256x128xf32>
    %c0_38 = arith.constant 0 : index
    %c0_39 = arith.constant 0 : index
    %c0_40 = arith.constant 0 : index
    %71 = vector.load %arg5[%c0_38, %c0_39, %c0_40] : memref<1x256x128xf32, #tpu.memory_space<vmem>>, vector<1x256x128xf32>
    %72 = vector.shape_cast %71 : vector<1x256x128xf32> to vector<256x128xf32>
    %73 = vector.shape_cast %70 : vector<256x128xf32> to vector<1x256x128xf32>
    tpu.vector_store %arg5[%c0_38, %c0_39, %c0_40], %73 {strides = array<i32>} : memref<1x256x128xf32, #tpu.memory_space<vmem>>, vector<1x256x128xf32>,
    %cst_41 = arith.constant dense<0.000000e+00> : vector<128xf32>
    %74 = vector.multi_reduction <add>, %70, %cst_41 [0] : vector<256x128xf32> to vector<128xf32>
    %75 = vector.shape_cast %74 : vector<128xf32> to vector<1x128xf32>
    %76 = arith.mulf %70, %70 : vector<256x128xf32>
    %cst_42 = arith.constant dense<0.000000e+00> : vector<128xf32>
    %77 = vector.multi_reduction <add>, %76, %cst_42 [0] : vector<256x128xf32> to vector<128xf32>
    %78 = vector.shape_cast %77 : vector<128xf32> to vector<1x128xf32>
    %cst_43 = arith.constant 0.000000e+00 : f32
    %79 = vector.broadcast %cst_43 : f32 to vector<6x128xf32>
    %80 = tpu.concatenate %75, %78, %79 in 0 : vector<1x128xf32>, vector<1x128xf32>, vector<6x128xf32> -> vector<8x128xf32>
    %c0_44 = arith.constant 0 : index
    %c0_45 = arith.constant 0 : index
    %c0_46 = arith.constant 0 : index
    %81 = vector.load %arg6[%c0_44, %c0_45, %c0_46] : memref<1x8x128xf32, #tpu.memory_space<vmem>>, vector<1x8x128xf32>
    %82 = vector.shape_cast %81 : vector<1x8x128xf32> to vector<8x128xf32>
    %83 = vector.shape_cast %80 : vector<8x128xf32> to vector<1x8x128xf32>
    tpu.vector_store %arg6[%c0_44, %c0_45, %c0_46], %83 {strides = array<i32>} : memref<1x8x128xf32, #tpu.memory_space<vmem>>, vector<1x8x128xf32>,
    return
  }
  func.func @transform_0(%arg0: i32) -> (i32, i32, i32, i32) {
    %c0_i32 = arith.constant 0 : i32
    %c0_i32_0 = arith.constant 0 : i32
    %c0_i32_1 = arith.constant 0 : i32
    %c0_i32_2 = arith.constant 0 : i32
    return %arg0, %c0_i32, %c0_i32_0, %c0_i32_1 : i32, i32, i32, i32
  }
  func.func @transform_1(%arg0: i32) -> (i32, i32) {
    %c0_i32 = arith.constant 0 : i32
    %c0_i32_0 = arith.constant 0 : i32
    %c0_i32_1 = arith.constant 0 : i32
    return %c0_i32, %c0_i32_0 : i32, i32
  }
  func.func @transform_2(%arg0: i32) -> (i32, i32) {
    %c0_i32 = arith.constant 0 : i32
    %c0_i32_0 = arith.constant 0 : i32
    %c0_i32_1 = arith.constant 0 : i32
    return %c0_i32, %c0_i32_0 : i32, i32
  }
  func.func @transform_3(%arg0: i32) -> (i32, i32, i32) {
    %c0_i32 = arith.constant 0 : i32
    %c0_i32_0 = arith.constant 0 : i32
    %c0_i32_1 = arith.constant 0 : i32
    %c0_i32_2 = arith.constant 0 : i32
    return %c0_i32, %c0_i32_0, %c0_i32_1 : i32, i32, i32
  }
  func.func @transform_4(%arg0: i32) -> (i32, i32, i32) {
    %c0_i32 = arith.constant 0 : i32
    %c0_i32_0 = arith.constant 0 : i32
    %c0_i32_1 = arith.constant 0 : i32
    return %arg0, %c0_i32, %c0_i32_0 : i32, i32, i32
  }
  func.func @transform_5(%arg0: i32) -> (i32, i32, i32) {
    %c0_i32 = arith.constant 0 : i32
    %c0_i32_0 = arith.constant 0 : i32
    %c0_i32_1 = arith.constant 0 : i32
    return %arg0, %c0_i32, %c0_i32_0 : i32, i32, i32
  }
}

module attributes {stable_mosaic.version = 11 : i64} {
  func.func @_bn2_conv3_stats_kernel(%arg0: i32, %arg1: memref<128x128xf32, #tpu.memory_space<vmem>>, %arg2: memref<1x128xf32, #tpu.memory_space<vmem>>, %arg3: memref<1x128xf32, #tpu.memory_space<vmem>>, %arg4: memref<128x128xf32, #tpu.memory_space<vmem>>, %arg5: memref<128x128xf32, #tpu.memory_space<vmem>>, %arg6: memref<1x8x128xf32, #tpu.memory_space<vmem>>) attributes {dimension_semantics = [#tpu.dimension_semantics<parallel>], iteration_bounds = array<i64: 4>, scalar_prefetch = 0 : i64, scratch_operands = 0 : i64, tpu.core_type = #tpu.core_type<tc>, window_params = [{transform_indices = @transform_0, window_bounds = array<i64: 128, 128>}, {pipeline_mode = #tpu.pipeline_mode<synchronous>, transform_indices = @transform_1, window_bounds = array<i64: 1, 128>}, {pipeline_mode = #tpu.pipeline_mode<synchronous>, transform_indices = @transform_2, window_bounds = array<i64: 1, 128>}, {pipeline_mode = #tpu.pipeline_mode<synchronous>, transform_indices = @transform_3, window_bounds = array<i64: 128, 128>}, {transform_indices = @transform_4, window_bounds = array<i64: 128, 128>}, {transform_indices = @transform_5, window_bounds = array<i64: 1, 8, 128>}]} {
    %c0 = arith.constant 0 : index
    %c0_0 = arith.constant 0 : index
    %0 = vector.load %arg1[%c0, %c0_0] : memref<128x128xf32, #tpu.memory_space<vmem>>, vector<128x128xf32>
    %c0_1 = arith.constant 0 : index
    %c0_2 = arith.constant 0 : index
    %1 = vector.load %arg2[%c0_1, %c0_2] : memref<1x128xf32, #tpu.memory_space<vmem>>, vector<1x128xf32>
    %2 = vector.broadcast %1 : vector<1x128xf32> to vector<128x128xf32>
    %3 = arith.mulf %0, %2 : vector<128x128xf32>
    %c0_3 = arith.constant 0 : index
    %c0_4 = arith.constant 0 : index
    %4 = vector.load %arg3[%c0_3, %c0_4] : memref<1x128xf32, #tpu.memory_space<vmem>>, vector<1x128xf32>
    %5 = vector.broadcast %4 : vector<1x128xf32> to vector<128x128xf32>
    %6 = arith.addf %3, %5 : vector<128x128xf32>
    %cst = arith.constant 0.000000e+00 : f32
    %7 = vector.broadcast %cst : f32 to vector<128x128xf32>
    %8 = arith.maximumf %6, %7 : vector<128x128xf32>
    %c0_5 = arith.constant 0 : index
    %c0_6 = arith.constant 0 : index
    %9 = vector.load %arg4[%c0_5, %c0_6] : memref<128x128xf32, #tpu.memory_space<vmem>>, vector<128x128xf32>
    %cst_7 = arith.constant dense<0.000000e+00> : vector<128x128xf32>
    %10 = tpu.matmul %8, %9, %cst_7 {dimension_numbers = #tpu.dot_dimension_numbers<[1], [0], [0], [1], [0, 0, 1, 1], [], []>} : vector<128x128xf32>, vector<128x128xf32>, vector<128x128xf32> -> vector<128x128xf32>
    %c0_8 = arith.constant 0 : index
    %c0_9 = arith.constant 0 : index
    %11 = vector.load %arg5[%c0_8, %c0_9] : memref<128x128xf32, #tpu.memory_space<vmem>>, vector<128x128xf32>
    tpu.vector_store %arg5[%c0_8, %c0_9], %10 {strides = array<i32>} : memref<128x128xf32, #tpu.memory_space<vmem>>, vector<128x128xf32>,
    %cst_10 = arith.constant dense<0.000000e+00> : vector<128xf32>
    %12 = vector.multi_reduction <add>, %10, %cst_10 [0] : vector<128x128xf32> to vector<128xf32>
    %13 = vector.shape_cast %12 : vector<128xf32> to vector<1x128xf32>
    %14 = arith.mulf %10, %10 : vector<128x128xf32>
    %cst_11 = arith.constant dense<0.000000e+00> : vector<128xf32>
    %15 = vector.multi_reduction <add>, %14, %cst_11 [0] : vector<128x128xf32> to vector<128xf32>
    %16 = vector.shape_cast %15 : vector<128xf32> to vector<1x128xf32>
    %cst_12 = arith.constant 0.000000e+00 : f32
    %17 = vector.broadcast %cst_12 : f32 to vector<6x128xf32>
    %18 = tpu.concatenate %13, %16, %17 in 0 : vector<1x128xf32>, vector<1x128xf32>, vector<6x128xf32> -> vector<8x128xf32>
    %c0_13 = arith.constant 0 : index
    %c0_14 = arith.constant 0 : index
    %c0_15 = arith.constant 0 : index
    %19 = vector.load %arg6[%c0_13, %c0_14, %c0_15] : memref<1x8x128xf32, #tpu.memory_space<vmem>>, vector<1x8x128xf32>
    %20 = vector.shape_cast %19 : vector<1x8x128xf32> to vector<8x128xf32>
    %21 = vector.shape_cast %18 : vector<8x128xf32> to vector<1x8x128xf32>
    tpu.vector_store %arg6[%c0_13, %c0_14, %c0_15], %21 {strides = array<i32>} : memref<1x8x128xf32, #tpu.memory_space<vmem>>, vector<1x8x128xf32>,
    return
  }
  func.func @transform_0(%arg0: i32) -> (i32, i32) {
    %c0_i32 = arith.constant 0 : i32
    %c0_i32_0 = arith.constant 0 : i32
    return %arg0, %c0_i32 : i32, i32
  }
  func.func @transform_1(%arg0: i32) -> (i32, i32) {
    %c0_i32 = arith.constant 0 : i32
    %c0_i32_0 = arith.constant 0 : i32
    %c0_i32_1 = arith.constant 0 : i32
    return %c0_i32, %c0_i32_0 : i32, i32
  }
  func.func @transform_2(%arg0: i32) -> (i32, i32) {
    %c0_i32 = arith.constant 0 : i32
    %c0_i32_0 = arith.constant 0 : i32
    %c0_i32_1 = arith.constant 0 : i32
    return %c0_i32, %c0_i32_0 : i32, i32
  }
  func.func @transform_3(%arg0: i32) -> (i32, i32) {
    %c0_i32 = arith.constant 0 : i32
    %c0_i32_0 = arith.constant 0 : i32
    %c0_i32_1 = arith.constant 0 : i32
    return %c0_i32, %c0_i32_0 : i32, i32
  }
  func.func @transform_4(%arg0: i32) -> (i32, i32) {
    %c0_i32 = arith.constant 0 : i32
    %c0_i32_0 = arith.constant 0 : i32
    return %arg0, %c0_i32 : i32, i32
  }
  func.func @transform_5(%arg0: i32) -> (i32, i32, i32) {
    %c0_i32 = arith.constant 0 : i32
    %c0_i32_0 = arith.constant 0 : i32
    %c0_i32_1 = arith.constant 0 : i32
    return %arg0, %c0_i32, %c0_i32_0 : i32, i32, i32
  }
}

module attributes {stable_mosaic.version = 11 : i64} {
  func.func @_bn3_add_relu_kernel(%arg0: i32, %arg1: memref<128x128xf32, #tpu.memory_space<vmem>>, %arg2: memref<1x128xf32, #tpu.memory_space<vmem>>, %arg3: memref<1x128xf32, #tpu.memory_space<vmem>>, %arg4: memref<128x128xf32, #tpu.memory_space<vmem>>, %arg5: memref<128x128xf32, #tpu.memory_space<vmem>>) attributes {dimension_semantics = [#tpu.dimension_semantics<parallel>], iteration_bounds = array<i64: 4>, scalar_prefetch = 0 : i64, scratch_operands = 0 : i64, tpu.core_type = #tpu.core_type<tc>, window_params = [{transform_indices = @transform_0, window_bounds = array<i64: 128, 128>}, {pipeline_mode = #tpu.pipeline_mode<synchronous>, transform_indices = @transform_1, window_bounds = array<i64: 1, 128>}, {pipeline_mode = #tpu.pipeline_mode<synchronous>, transform_indices = @transform_2, window_bounds = array<i64: 1, 128>}, {transform_indices = @transform_3, window_bounds = array<i64: 128, 128>}, {transform_indices = @transform_4, window_bounds = array<i64: 128, 128>}]} {
    %c0 = arith.constant 0 : index
    %c0_0 = arith.constant 0 : index
    %0 = vector.load %arg1[%c0, %c0_0] : memref<128x128xf32, #tpu.memory_space<vmem>>, vector<128x128xf32>
    %c0_1 = arith.constant 0 : index
    %c0_2 = arith.constant 0 : index
    %1 = vector.load %arg2[%c0_1, %c0_2] : memref<1x128xf32, #tpu.memory_space<vmem>>, vector<1x128xf32>
    %2 = vector.broadcast %1 : vector<1x128xf32> to vector<128x128xf32>
    %3 = arith.mulf %0, %2 : vector<128x128xf32>
    %c0_3 = arith.constant 0 : index
    %c0_4 = arith.constant 0 : index
    %4 = vector.load %arg3[%c0_3, %c0_4] : memref<1x128xf32, #tpu.memory_space<vmem>>, vector<1x128xf32>
    %5 = vector.broadcast %4 : vector<1x128xf32> to vector<128x128xf32>
    %6 = arith.addf %3, %5 : vector<128x128xf32>
    %c0_5 = arith.constant 0 : index
    %c0_6 = arith.constant 0 : index
    %7 = vector.load %arg4[%c0_5, %c0_6] : memref<128x128xf32, #tpu.memory_space<vmem>>, vector<128x128xf32>
    %8 = arith.addf %6, %7 : vector<128x128xf32>
    %cst = arith.constant 0.000000e+00 : f32
    %9 = vector.broadcast %cst : f32 to vector<128x128xf32>
    %10 = arith.maximumf %8, %9 : vector<128x128xf32>
    %c0_7 = arith.constant 0 : index
    %c0_8 = arith.constant 0 : index
    %11 = vector.load %arg5[%c0_7, %c0_8] : memref<128x128xf32, #tpu.memory_space<vmem>>, vector<128x128xf32>
    tpu.vector_store %arg5[%c0_7, %c0_8], %10 {strides = array<i32>} : memref<128x128xf32, #tpu.memory_space<vmem>>, vector<128x128xf32>,
    return
  }
  func.func @transform_0(%arg0: i32) -> (i32, i32) {
    %c0_i32 = arith.constant 0 : i32
    %c0_i32_0 = arith.constant 0 : i32
    return %arg0, %c0_i32 : i32, i32
  }
  func.func @transform_1(%arg0: i32) -> (i32, i32) {
    %c0_i32 = arith.constant 0 : i32
    %c0_i32_0 = arith.constant 0 : i32
    %c0_i32_1 = arith.constant 0 : i32
    return %c0_i32, %c0_i32_0 : i32, i32
  }
  func.func @transform_2(%arg0: i32) -> (i32, i32) {
    %c0_i32 = arith.constant 0 : i32
    %c0_i32_0 = arith.constant 0 : i32
    %c0_i32_1 = arith.constant 0 : i32
    return %c0_i32, %c0_i32_0 : i32, i32
  }
  func.func @transform_3(%arg0: i32) -> (i32, i32) {
    %c0_i32 = arith.constant 0 : i32
    %c0_i32_0 = arith.constant 0 : i32
    return %arg0, %c0_i32 : i32, i32
  }
  func.func @transform_4(%arg0: i32) -> (i32, i32) {
    %c0_i32 = arith.constant 0 : i32
    %c0_i32_0 = arith.constant 0 : i32
    return %arg0, %c0_i32 : i32, i32
  }
}

</mosaic_0001>

<bundles_post_ra>
// kernel: bottleneck_forward.4
= control target key start
LH: loop header
LB: loop body
LE: loop exit
PB: predicated region body
PF: predicated region fallthrough
CT: control target
= control target key end

     0   :  { %s712_s12 = smov 0   ;;  %s828_s0 = inlined_call_operand.vmem [shape: f32[512,128], index: 0, kind: input, shape index: {}]   ;;  %s829_s1 = inlined_call_operand.vmem [shape: f32[128,128], index: 1, kind: input, shape index: {}]   ;;  %s830_s2 = inlined_call_operand.vmem [shape: f32[512,128], index: 2, kind: output, shape index: {0}]   ;;  %s831_s3 = inlined_call_operand.vmem [shape: f32[4,8,128], index: 3, kind: output, shape index: {1}]  }
   0x1 LB: > { %s718_s13 = sadd.s32 4294967295, %s690_s12   ;;  %p532_p0 = scmp.ge.s32.totalorder %s690_s12, 1  ;;  %s690_s12 = sphi %s712_s12, %s14_s12  }
   0x2   : > { %p141_p1 = scmp.lt.s32.totalorder %s690_s12, 5 }
   0x4   : > { %p142_p2 = pnand %p532_p0, %p141_p1 }
   0x5   : > { %v201_v0 = vld [vmem:[%s829_s1] sm:$0xff] (!%p142_p2)  ;;  %v202_v1 = vld [vmem:[%s829_s1 + $0x8] sm:$0xff] (!%p142_p2)  ;;  %v203_v2 = vld [vmem:[%s829_s1 + $0x10] sm:$0xff] (!%p142_p2)  ;;  %s533_s20 = sshll.u32 (!%p142_p2), %s718_s13, 4  ;;  %p181_p4 = scmp.lt.s32.totalorder (!%p142_p2), %s718_s13, 3  ;;  %vm436_vm0 = vcmask (!%p142_p2), 1040384  }
   0x6   : > { %145 = sbr.rel (%p142_p2) target bundleno = 302 (0x12e), region = 28  ;;  %v628_v3 = vpack.c.bf16 (!%p142_p2), %v202_v1, %v201_v0  ;;  %v204_v4 = vld [vmem:[%s829_s1 + $0x18] sm:$0xff] (!%p142_p2)  ;;  %p170_p3 = scmp.lt.s32.totalorder (!%p142_p2), %s533_s20, 63  ;;  %v205_v6 = vld [vmem:[%s829_s1 + $0x20] sm:$0xff] (!%p142_p2)  ;;  %v206_v7 = vld [vmem:[%s829_s1 + $0x28] sm:$0xff] (!%p142_p2)  ;;  %vm438_vm1 = vcmask (!%p142_p2), 1041408  }
   0x7   : > { %v632_v5 = vpack.c.bf16 (!%p142_p2), %v204_v4, %v203_v2  ;;  %v636_v8 = vpack.c.bf16 (!%p142_p2), %v206_v7, %v205_v6  ;;  %v207_v9 = vld [vmem:[%s829_s1 + $0x30] sm:$0xff] (!%p142_p2)  ;;  %v208_v10 = vld [vmem:[%s829_s1 + $0x38] sm:$0xff] (!%p142_p2)  ;;  %v209_v14 = vld [vmem:[%s829_s1 + $0x40] sm:$0xff] (!%p142_p2) }
   0x8   : > { %629 = vmatprep.subr.bf16.mxu0 (!%p142_p2), %v628_v3  ;;  %660 = vmatprep.subr.bf16.mxu1 (!%p142_p2), %v628_v3  ;;  %v640_v12 = vpack.c.bf16 (!%p142_p2), %v208_v10, %v207_v9  ;;  %v210_v15 = vld [vmem:[%s829_s1 + $0x48] sm:$0xff] (!%p142_p2)  ;;  %v211_v17 = vld [vmem:[%s829_s1 + $0x50] sm:$0xff] (!%p142_p2)  ;;  %v212_v18 = vld [vmem:[%s829_s1 + $0x58] sm:$0xff] (!%p142_p2) }
   0x9   : > { %631 = vmatpush3.bf16.msra.mxu0 (!%p142_p2), %v628_v3  ;;  %668 = vmatpush3.bf16.msra.mxu1 (!%p142_p2), %v628_v3  ;;  %v644_v16 = vpack.c.bf16 (!%p142_p2), %v210_v15, %v209_v14  ;;  %v648_v19 = vpack.c.bf16 (!%p142_p2), %v212_v18, %v211_v17  ;;  %v213_v20 = vld [vmem:[%s829_s1 + $0x60] sm:$0xff] (!%p142_p2)  ;;  %v214_v21 = vld [vmem:[%s829_s1 + $0x68] sm:$0xff] (!%p142_p2)  ;;  %v215_v23 = vld [vmem:[%s829_s1 + $0x70] sm:$0xff] (!%p142_p2) }
   0xa   : > { %633 = vmatprep.subr.bf16.mxu0 (!%p142_p2), %v632_v5  ;;  %661 = vmatprep.subr.bf16.mxu1 (!%p142_p2), %v632_v5  ;;  %v652_v22 = vpack.c.bf16 (!%p142_p2), %v214_v21, %v213_v20  ;;  %v216_v24 = vld [vmem:[%s829_s1 + $0x78] sm:$0xff] (!%p142_p2) }
   0xb   : > { %v656_v25 = vpack.c.bf16 (!%p142_p2), %v216_v24, %v215_v23 }
   0xd   : > { %s833_s20 = smov (!%p170_p3, %s533_s20), 63  ;;  %635 = vmatpush3.bf16.msra.mxu0 %v632_v5  ;;  %669 = vmatpush3.bf16.msra.mxu1 %v632_v5  ;;  %s835_s13 = smov (!%p181_p4, %s718_s13), 3 }
   0xe   : > { %s534_s27 = sshll.u32 %s833_s20, 3  ;;  %637 = vmatprep.subr.bf16.mxu0 %v636_v8  ;;  %662 = vmatprep.subr.bf16.mxu1 %v636_v8  ;;  %s537_s20 = sshll.u32 %s835_s13, 3 }
   0xf   : > { %s755_s7 = scalar_lea.vmem %s828_s0, %s534_s27  ;;  %s802_s30 = scalar_lea.vmem %s830_s2, %s534_s27 }
  0x10   : > { %v185_v11 = vld [vmem:[%s755_s7] sm:$0xff]  ;;  %v186_v26 = vld [vmem:[%s755_s7 + $0x8] sm:$0xff]  ;;  %v187_v28 = vld [vmem:[%s755_s7 + $0x10] sm:$0xff]  ;;  %s184_s5 = scalar_lea.vmem %s831_s3, %s537_s20 }
  0x11   : > { %v193_v13 = vld [vmem:[%s755_s7 + $0x40] sm:$0xff]  ;;  %604 = vmatprep.mubr.f32.mxu0 %v185_v11  ;;  %639 = vmatpush3.bf16.msra.mxu0 %v636_v8  ;;  %v194_v27 = vld [vmem:[%s755_s7 + $0x48] sm:$0xff]  ;;  %v195_v29 = vld [vmem:[%s755_s7 + $0x50] sm:$0xff] }
  0x12   : > { %616 = vmatprep.mubr.f32.mxu1 %v193_v13  ;;  %670 = vmatpush3.bf16.msra.mxu1 %v636_v8  ;;  %v188_v30 = vld [vmem:[%s755_s7 + $0x18] sm:$0xff]  ;;  %v189_v32 = vld [vmem:[%s755_s7 + $0x20] sm:$0xff]  ;;  %v190_v34 = vld [vmem:[%s755_s7 + $0x28] sm:$0xff] }
  0x13   : > { %641 = vmatprep.subr.bf16.mxu0 %v640_v12  ;;  %663 = vmatprep.subr.bf16.mxu1 %v640_v12  ;;  %v196_v31 = vld [vmem:[%s755_s7 + $0x58] sm:$0xff]  ;;  %v197_v33 = vld [vmem:[%s755_s7 + $0x60] sm:$0xff]  ;;  %v198_v35 = vld [vmem:[%s755_s7 + $0x68] sm:$0xff] }
  0x14   : > { %v191_v36 = vld [vmem:[%s755_s7 + $0x30] sm:$0xff]  ;;  %v192_v38 = vld [vmem:[%s755_s7 + $0x38] sm:$0xff] }
  0x15   : > { %643 = vmatpush3.bf16.msra.mxu0 %v640_v12  ;;  %v199_v37 = vld [vmem:[%s755_s7 + $0x70] sm:$0xff]  ;;  %v200_v39 = vld [vmem:[%s755_s7 + $0x78] sm:$0xff] }
  0x16   : > { %671 = vmatpush3.bf16.msra.mxu1 %v640_v12  ;;  %645 = vmatprep.subr.bf16.mxu0 %v644_v16 }
  0x17   : > { %664 = vmatprep.subr.bf16.mxu1 %v644_v16 }
  0x19   : > { %647 = vmatpush3.bf16.msra.mxu0 %v644_v16 }
  0x1a   : > { %672 = vmatpush3.bf16.msra.mxu1 %v644_v16  ;;  %649 = vmatprep.subr.bf16.mxu0 %v648_v19 }
  0x1b   : > { %665 = vmatprep.subr.bf16.mxu1 %v648_v19 }
  0x1d   : > { %651 = vmatpush3.bf16.msra.mxu0 %v648_v19 }
  0x1e   : > { %673 = vmatpush3.bf16.msra.mxu1 %v648_v19  ;;  %653 = vmatprep.subr.bf16.mxu0 %v652_v22 }
  0x1f   : > { %666 = vmatprep.subr.bf16.mxu1 %v652_v22 }
  0x21   : > { %655 = vmatpush3.bf16.msra.mxu0 %v652_v22 }
  0x22   : > { %674 = vmatpush3.bf16.msra.mxu1 %v652_v22  ;;  %657 = vmatprep.subr.bf16.mxu0 %v656_v25 }
  0x23   : > { %667 = vmatprep.subr.bf16.mxu1 %v656_v25 }
  0x25   : > { %659 = vmatpush3.bf16.msra.mxu0 %v656_v25 }
  0x26   : > { %675 = vmatpush3.bf16.msra.mxu1 %v656_v25 }
  0x28   : > { %605 = vmatmul.mubr.f32.vlgmr.msra.gmra.mrb[0].mxu0 %v186_v26 }
  0x29   : > { %617 = vmatmul.mubr.f32.vlgmr.msra.gmra.mrb[0].mxu1 %v194_v27  ;;  %607 = vmatprep.mubr.f32.mxu0 %v187_v28 }
  0x2a   : > { %619 = vmatprep.mubr.f32.mxu1 %v195_v29 }
  0x2c   : > { %608 = vmatmul.mubr.f32.gmra.mrb[2].mxu0 %v188_v30 }
  0x2d   : > { %620 = vmatmul.mubr.f32.gmra.mrb[2].mxu1 %v196_v31  ;;  %610 = vmatprep.mubr.f32.mxu0 %v189_v32 }
  0x2e   : > { %622 = vmatprep.mubr.f32.mxu1 %v197_v33 }
  0x30   : > { %611 = vmatmul.mubr.f32.gmra.mrb[4].mxu0 %v190_v34 }
  0x31   : > { %623 = vmatmul.mubr.f32.gmra.mrb[4].mxu1 %v198_v35  ;;  %613 = vmatprep.mubr.f32.mxu0 %v191_v36 }
  0x32   : > { %625 = vmatprep.mubr.f32.mxu1 %v199_v37 }
  0x34   : > { %614 = vmatmul.mubr.f32.gmra.mrb[6].mxu0 %v192_v38 }
  0x35   : > { %626 = vmatmul.mubr.f32.gmra.mrb[6].mxu1 %v200_v39 }
  0xfb   : > { %v606_v40 = vpop.f32.mrb[0].mxu0 }
  0xfc   : > { %v618_v41 = vpop.f32.mrb[0].mxu1  ;;  %363 = vst [vmem:[%s802_s30 + $0x8] sm:$0xff] %v606_v40  ;;  %v400_v42 = vmul.f32 %v606_v40, %v606_v40  ;;  %v283_v43 = vpop.f32.mrb[1].mxu0 }
  0xfd   : > { %371 = vst [vmem:[%s802_s30 + $0x48] sm:$0xff] %v618_v41  ;;  %v323_v44 = vpop.f32.mrb[1].mxu1  ;;  %362 = vst [vmem:[%s802_s30] sm:$0xff] %v283_v43  ;;  %v378_v45 = vadd.f32 %v606_v40, %v283_v43  ;;  %v399_v46 = vmul.f32 %v283_v43, %v283_v43  ;;  %v408_v16 = vmul.f32 %v618_v41, %v618_v41 }
  0xfe   : > { %370 = vst [vmem:[%s802_s30 + $0x40] sm:$0xff] %v323_v44  ;;  %v407_v13 = vmul.f32 %v323_v44, %v323_v44 }
  0xff   : > { %v415_v47 = vadd.f32 %v400_v42, %v399_v46  ;;  %v609_v48 = vpop.f32.mrb[2].mxu0 }
 0x100   : > { %v621_v49 = vpop.f32.mrb[2].mxu1  ;;  %365 = vst [vmem:[%s802_s30 + $0x18] sm:$0xff] %v609_v48  ;;  %v293_v50 = vpop.f32.mrb[3].mxu0  ;;  %v402_v54 = vmul.f32 %v609_v48, %v609_v48 }
 0x101   : > { %373 = vst [vmem:[%s802_s30 + $0x58] sm:$0xff] %v621_v49  ;;  %v333_v51 = vpop.f32.mrb[3].mxu1  ;;  %364 = vst [vmem:[%s802_s30 + $0x10] sm:$0xff] %v293_v50  ;;  %v379_v52 = vadd.f32 %v378_v45, %v293_v50  ;;  %v401_v53 = vmul.f32 %v293_v50, %v293_v50  ;;  %v410_v22 = vmul.f32 %v621_v49, %v621_v49 }
 0x102   : > { %372 = vst [vmem:[%s802_s30 + $0x50] sm:$0xff] %v333_v51  ;;  %v409_v19 = vmul.f32 %v333_v51, %v333_v51 }
 0x103   : > { %v416_v55 = vadd.f32 %v415_v47, %v401_v53  ;;  %v612_v56 = vpop.f32.mrb[4].mxu0  ;;  %v380_v57 = vadd.f32 %v609_v48, %v379_v52 }
 0x104   : > { %v624_v58 = vpop.f32.mrb[4].mxu1  ;;  %367 = vst [vmem:[%s802_s30 + $0x28] sm:$0xff] %v612_v56  ;;  %v303_v59 = vpop.f32.mrb[5].mxu0  ;;  %v404_v0 = vmul.f32 %v612_v56, %v612_v56 }
 0x105   : > { %375 = vst [vmem:[%s802_s30 + $0x68] sm:$0xff] %v624_v58  ;;  %v343_v60 = vpop.f32.mrb[5].mxu1  ;;  %366 = vst [vmem:[%s802_s30 + $0x20] sm:$0xff] %v303_v59  ;;  %v381_v61 = vadd.f32 %v380_v57, %v303_v59  ;;  %v403_v62 = vmul.f32 %v303_v59, %v303_v59  ;;  %v417_v63 = vadd.f32 %v416_v55, %v402_v54 }
 0x106   : > { %374 = vst [vmem:[%s802_s30 + $0x60] sm:$0xff] %v343_v60  ;;  %v411_v25 = vmul.f32 %v343_v60, %v343_v60  ;;  %v412_v28 = vmul.f32 %v624_v58, %v624_v58 }
 0x107   : > { %v418_v1 = vadd.f32 %v417_v63, %v403_v62  ;;  %v615_v2 = vpop.f32.mrb[6].mxu0  ;;  %v382_v3 = vadd.f32 %v612_v56, %v381_v61 }
 0x108   : > { %v627_v4 = vpop.f32.mrb[6].mxu1  ;;  %369 = vst [vmem:[%s802_s30 + $0x38] sm:$0xff] %v615_v2  ;;  %v313_v5 = vpop.f32.mrb[7].mxu0  ;;  %v406_v10 = vmul.f32 %v615_v2, %v615_v2 }
 0x109   : > { %377 = vst [vmem:[%s802_s30 + $0x78] sm:$0xff] %v627_v4  ;;  %v353_v6 = vpop.f32.mrb[7].mxu1  ;;  %368 = vst [vmem:[%s802_s30 + $0x30] sm:$0xff] %v313_v5  ;;  %v383_v7 = vadd.f32 %v382_v3, %v313_v5  ;;  %v405_v8 = vmul.f32 %v313_v5, %v313_v5  ;;  %v419_v9 = vadd.f32 %v418_v1, %v404_v0 }
 0x10a   : > { %376 = vst [vmem:[%s802_s30 + $0x70] sm:$0xff] %v353_v6  ;;  %v413_v31 = vmul.f32 %v353_v6, %v353_v6  ;;  %v414_v34 = vmul.f32 %v627_v4, %v627_v4 }
 0x10b   : > { %v384_v11 = vadd.f32 %v615_v2, %v383_v7  ;;  %v420_v12 = vadd.f32 %v419_v9, %v405_v8 }
 0x10d   : > { %v421_v14 = vadd.f32 %v420_v12, %v406_v10  ;;  %v385_v15 = vadd.f32 %v384_v11, %v323_v44 }
 0x10f   : > { %v422_v17 = vadd.f32 %v421_v14, %v407_v13  ;;  %v386_v18 = vadd.f32 %v618_v41, %v385_v15 }
 0x111   : > { %v387_v20 = vadd.f32 %v386_v18, %v333_v51  ;;  %v423_v21 = vadd.f32 %v422_v17, %v408_v16 }
 0x113   : > { %v424_v23 = vadd.f32 %v423_v21, %v409_v19  ;;  %v388_v24 = vadd.f32 %v621_v49, %v387_v20 }
 0x115   : > { %v389_v26 = vadd.f32 %v388_v24, %v343_v60  ;;  %v425_v27 = vadd.f32 %v424_v23, %v410_v22 }
 0x117   : > { %v426_v29 = vadd.f32 %v425_v27, %v411_v25  ;;  %v390_v30 = vadd.f32 %v624_v58, %v389_v26 }
 0x119   : > { %v391_v32 = vadd.f32 %v390_v30, %v353_v6  ;;  %v427_v33 = vadd.f32 %v426_v29, %v412_v28 }
 0x11b   : > { %v392_v35 = vadd.f32 %v627_v4, %v391_v32  ;;  %v428_v36 = vadd.f32 %v427_v33, %v413_v31 }
 0x11d   : > { %v393_v37 = vrot.slane %v392_v35, 4  ;;  %v429_v38 = vadd.f32 %v428_v36, %v414_v34 }
 0x11f   : > { %v394_v39 = vadd.f32 %v393_v37, %v392_v35  ;;  %v430_v40 = vrot.slane %v429_v38, 4 }
 0x121   : > { %v395_v41 = vrot.slane %v394_v39, 2  ;;  %v431_v42 = vadd.f32 %v430_v40, %v429_v38 }
 0x123   : > { %v396_v43 = vadd.f32 %v395_v41, %v394_v39  ;;  %v432_v44 = vrot.slane %v431_v42, 2 }
 0x125   : > { %v397_v45 = vrot.slane %v396_v43, 1  ;;  %v433_v46 = vadd.f32 %v432_v44, %v431_v42 }
 0x127   : > { %v434_v47 = vrot.slane %v433_v46, 1  ;;  %v398_v48 = vadd.f32 %v397_v45, %v396_v43 }
 0x129   : > { %v435_v49 = vadd.f32 %v434_v47, %v433_v46 }
 0x12b   : > { %v437_v50 = vsel %vm436_vm0, %v398_v48, %v435_v49 }
 0x12c   : > { %v439_v51 = vsel %vm438_vm1, %v437_v50, 0.0 }
 0x12d   : > { %440 = vst [vmem:[%s184_s5] sm:$0xff] %v439_v51 }
 0x12e PF: > { %s14_s12 = sadd.s32 1, %s690_s12  }
 0x12f   : > { %p11_p5 = scmp.ge.s32.totalorder %s14_s12, 6  }
 0x131   :  { %13 = sbr.rel (!%p11_p5) target bundleno = 1 (0x1), region = 70 }

// kernel: bottleneck_forward.7
= control target key start
LH: loop header
LB: loop body
LE: loop exit
PB: predicated region body
PF: predicated region fallthrough
CT: control target
= control target key end

     0   :  { %9 = vsyncpa [#allocation3], 0  ;;  %s794_s0 = inlined_call_operand.vmem [shape: f32[512,128], index: 0, kind: input, shape index: {}]   ;;  %s795_s1 = inlined_call_operand.vmem [shape: f32[1,128], index: 1, kind: input, shape index: {}]   ;;  %s796_s2 = inlined_call_operand.vmem [shape: f32[1,128], index: 2, kind: input, shape index: {}]   ;;  %s797_s3 = inlined_call_operand.vmem [shape: f32[512,128], index: 3, kind: input, shape index: {}]   ;;  %s798_s4 = inlined_call_operand.hbm [shape: f32[512,128], index: 4, kind: output, shape index: {}]  }
   0x1   :  { %11 = vsyncpa [#allocation3 + $0x1], 0  ;;  %s585_s15 = smov 0   ;;  %s587_s16 = smov 0  }
   0x2   :  { %s589_s17 = smov 0   ;;  %s591_s18 = smov 0  }
   0x3 LB: > { %s606_s19 = sadd.s32 4294967295, %s555_s18   ;;  %s435_s20 = sadd.s32 4294967294, %s555_s18   ;;  %s555_s18 = sphi %s591_s18, %s804_s18   ;;  %s551_s17 = sphi %s589_s17, %s803_s17   ;;  %s547_s16 = sphi %s587_s16, %s802_s16   ;;  %s543_s15 = sphi %s585_s15, %s801_s15  }
   0x4   : > { %s610_s21 = sadd.s32 1, %s555_s18   ;;  %s118_s22 = sadd.s32 1, %s551_s17 }
   0x5   : > { %s115_s23 = ssub.s32 %s555_s18, %s610_s21  ;;  %p128_p0 = scmp.ne.s32.totalorder %s551_s17, %s547_s16 }
   0x6   : > { %p116_p1 = scmp.eq.s32.totalorder %s115_s23, 0  ;;  %p129_p2 = scmp.eq.s32.totalorder %s606_s19, 3 }
   0x7   : > { %p134_p3 = scmp.ne.s32.totalorder %s547_s16, %s543_s15  ;;  %p135_p4 = scmp.eq.s32.totalorder %s435_s20, 3 }
   0x8   : > { %s621_s24 = scalar_select %p116_p1, %s551_s17, %s118_s22  }
   0x9   : > { %p623_p5 = por %p129_p2, %p128_p0  ;;  %p627_p6 = por %p135_p4, %p134_p3 }
   0xa   : > { %p438_p7 = scmp.ge.s32.totalorder %s555_s18, 1  ;;  %p177_p8 = scmp.lt.s32.totalorder %s555_s18, 5 }
   0xc   : > { %p178_p9 = pnand %p438_p7, %p177_p8 }
   0xd   : > { %s440_s27 = sshll.u32 (!%p178_p9), %s606_s19, 4  ;;  %v637_v0 = vld [vmem:[%s795_s1] ss:$0 sm:$0xff] (!%p178_p9)  ;;  %s205_s11 = sand.u32 (!%p178_p9), 1, %s547_s16  }
   0xe   : > { %181 = sbr.rel (%p178_p9) target bundleno = 61 (0x3d), region = 36  ;;  %p209_p10 = scmp.lt.s32.totalorder (!%p178_p9), %s440_s27, 63  ;;  %v654_v2 = vld [vmem:[%s796_s2] ss:$0 sm:$0xff] (!%p178_p9) }
   0xf   : > { %s667_s14 = sshll.u32 (!%p178_p9), %s205_s11, 7  ;;  %s451_s22 = sshll.u32 (!%p178_p9), %s606_s19, 11 }
  0x10   : > { %s697_s20 = scalar_lea.vmem (!%p178_p9), [#allocation2], %s667_s14  ;;  %s744_s29 = scalar_lea.hbm (!%p178_p9), %s798_s4, %s451_s22 }
  0x11   : > { %s361_s23 = sshll.u32 (!%p178_p9), %s697_s20, 4  ;;  %s753_s19 = scalar_lea.sflag (!%p178_p9), [#allocation3], %s205_s11  ;;  %s746_s23 = int_to_ptr.vmem [resolvable:$true] %s361_s23 }
  0x12   : > { %s493_s30 = scalar_lea.vmem (!%p178_p9), %s746_s23, 2048  ;;  %s557_s5 = smov (!%p178_p9), [#allocation2]  }
  0x13   : > { %p494_p11 = scmp.ne.s32.totalorder (!%p178_p9), %s746_s23, %s493_s30  ;;  %s497_s6 = sshll.u32 (!%p178_p9), %s557_s5, 4  ;;  %s498_s6 = int_to_ptr.vmem [resolvable:$false] %s497_s6 }
  0x14   : > { %p500_p0 = scmp.lt.s32.totalorder (!%p178_p9), %s746_s23, %s498_s6 }
  0x15   : > { %s806_s27 = smov (!%p209_p10, %s440_s27), 63  ;;  %p495_p12 = pnand %p494_p11, %p623_p5 }
  0x16   : > { %s441_s28 = sshll.u32 %s806_s27, 3 }
  0x17   : > { %s642_s7 = scalar_lea.vmem %s794_s0, %s441_s28  ;;  %s647_s10 = scalar_lea.vmem %s797_s3, %s441_s28 }
  0x18   : > { %v221_v1 = vld [vmem:[%s642_s7] sm:$0xff]  ;;  %v222_v3 = vld [vmem:[%s642_s7 + $0x8] sm:$0xff]  ;;  %v223_v7 = vld [vmem:[%s642_s7 + $0x10] sm:$0xff]  ;;  %p496_p13 = pneg %p495_p12 }
  0x19   : > { %v244_v4 = vmul.f32 %v637_v0, %v221_v1  ;;  %v283_v5 = vld [vmem:[%s647_s10] sm:$0xff]  ;;  %v245_v6 = vmul.f32 %v637_v0, %v222_v3  ;;  %v284_v8 = vld [vmem:[%s647_s10 + $0x8] sm:$0xff]  ;;  %v246_v9 = vmul.f32 %v637_v0, %v223_v7  ;;  %v224_v10 = vld [vmem:[%s642_s7 + $0x18] sm:$0xff] }
  0x1a   : > { %v225_v11 = vld [vmem:[%s642_s7 + $0x20] sm:$0xff]  ;;  %v285_v14 = vld [vmem:[%s647_s10 + $0x10] sm:$0xff]  ;;  %v247_v15 = vmul.f32 %v637_v0, %v224_v10  ;;  %v286_v16 = vld [vmem:[%s647_s10 + $0x18] sm:$0xff] }
  0x1b   : > { %v267_v12 = vadd.f32 %v654_v2, %v244_v4  ;;  %v268_v13 = vadd.f32 %v654_v2, %v245_v6  ;;  %v248_v17 = vmul.f32 %v637_v0, %v225_v11  ;;  %v226_v18 = vld [vmem:[%s642_s7 + $0x28] sm:$0xff]  ;;  %v269_v19 = vadd.f32 %v654_v2, %v246_v9  ;;  %v287_v20 = vld [vmem:[%s647_s10 + $0x20] sm:$0xff]  ;;  %v227_v22 = vld [vmem:[%s642_s7 + $0x30] sm:$0xff] }
  0x1c   : > { %v249_v21 = vmul.f32 %v637_v0, %v226_v18  ;;  %v228_v23 = vld [vmem:[%s642_s7 + $0x38] sm:$0xff]  ;;  %v270_v26 = vadd.f32 %v654_v2, %v247_v15  ;;  %v288_v28 = vld [vmem:[%s647_s10 + $0x28] sm:$0xff]  ;;  %v250_v31 = vmul.f32 %v637_v0, %v227_v22  ;;  %v229_v33 = vld [vmem:[%s642_s7 + $0x40] sm:$0xff] }
  0x1d   : > { %v299_v24 = vadd.f32 %v283_v5, %v267_v12  ;;  %v300_v25 = vadd.f32 %v284_v8, %v268_v13  ;;  %v271_v27 = vadd.f32 %v654_v2, %v248_v17  ;;  %v301_v29 = vadd.f32 %v285_v14, %v269_v19  ;;  %v230_v34 = vld [vmem:[%s642_s7 + $0x48] sm:$0xff]  ;;  %v289_v39 = vld [vmem:[%s647_s10 + $0x30] sm:$0xff]  ;;  %v290_v40 = vld [vmem:[%s647_s10 + $0x38] sm:$0xff] }
  0x1e   : > { %v272_v30 = vadd.f32 %v654_v2, %v249_v21  ;;  %v251_v32 = vmul.f32 %v637_v0, %v228_v23  ;;  %v302_v37 = vadd.f32 %v286_v16, %v270_v26  ;;  %v231_v41 = vld [vmem:[%s642_s7 + $0x50] sm:$0xff]  ;;  %v273_v44 = vadd.f32 %v654_v2, %v250_v31  ;;  %v232_v46 = vld [vmem:[%s642_s7 + $0x58] sm:$0xff]  ;;  %v233_v47 = vld [vmem:[%s642_s7 + $0x60] sm:$0xff] }
  0x1f   : > { %v315_v35 = vmax.f32 %v299_v24, 0.0  ;;  %v316_v36 = vmax.f32 %v300_v25, 0.0  ;;  %v303_v38 = vadd.f32 %v287_v20, %v271_v27  ;;  %v317_v42 = vmax.f32 %v301_v29, 0.0  ;;  %v234_v52 = vld [vmem:[%s642_s7 + $0x68] sm:$0xff]  ;;  %v291_v56 = vld [vmem:[%s647_s10 + $0x40] sm:$0xff]  ;;  %v293_v61 = vld [vmem:[%s647_s10 + $0x50] sm:$0xff] }
  0x20   : > { %v304_v43 = vadd.f32 %v288_v28, %v272_v30  ;;  %v274_v45 = vadd.f32 %v654_v2, %v251_v32  ;;  %v318_v48 = vmax.f32 %v302_v37, 0.0  ;;  %v252_v50 = vmul.f32 %v637_v0, %v229_v33  ;;  %v292_v57 = vld [vmem:[%s647_s10 + $0x48] sm:$0xff]  ;;  %v235_v1 = vld [vmem:[%s642_s7 + $0x70] sm:$0xff]  ;;  %v236_v3 = vld [vmem:[%s642_s7 + $0x78] sm:$0xff]  ;;  %s499_s7 = scalar_lea.vmem %s498_s6, 4096 }
  0x21   : > { %331 = vst [vmem:[%s697_s20] sm:$0xff] %v315_v35  ;;  %332 = vst [vmem:[%s697_s20 + $0x8] sm:$0xff] %v316_v36  ;;  %v319_v49 = vmax.f32 %v303_v38, 0.0  ;;  %v253_v51 = vmul.f32 %v637_v0, %v230_v34  ;;  %v305_v54 = vadd.f32 %v289_v39, %v273_v44  ;;  %v254_v58 = vmul.f32 %v637_v0, %v231_v41  ;;  %v294_v7 = vld [vmem:[%s647_s10 + $0x58] sm:$0xff]  ;;  %v295_v8 = vld [vmem:[%s647_s10 + $0x60] sm:$0xff]  ;;  %p501_p1 = scmp.lt.s32.totalorder %s499_s7, %s493_s30 }
  0x22   : > { %333 = vst [vmem:[%s697_s20 + $0x10] sm:$0xff] %v317_v42  ;;  %v320_v53 = vmax.f32 %v304_v43, 0.0  ;;  %v306_v55 = vadd.f32 %v290_v40, %v274_v45  ;;  %334 = vst [vmem:[%s697_s20 + $0x18] sm:$0xff] %v318_v48  ;;  %v275_v59 = vadd.f32 %v654_v2, %v252_v50  ;;  %v255_v62 = vmul.f32 %v637_v0, %v232_v46  ;;  %v296_v14 = vld [vmem:[%s647_s10 + $0x68] sm:$0xff]  ;;  %v297_v23 = vld [vmem:[%s647_s10 + $0x70] sm:$0xff] }
  0x23   : > { %335 = vst [vmem:[%s697_s20 + $0x20] sm:$0xff] %v319_v49  ;;  %v276_v60 = vadd.f32 %v654_v2, %v253_v51  ;;  %v256_v63 = vmul.f32 %v637_v0, %v233_v47  ;;  %v321_v4 = vmax.f32 %v305_v54, 0.0  ;;  %v277_v6 = vadd.f32 %v654_v2, %v254_v58  ;;  %v298_v24 = vld [vmem:[%s647_s10 + $0x78] sm:$0xff]  ;;  %p502_p2 = por %p501_p1, %p500_p0 }
  0x24   : > { %336 = vst [vmem:[%s697_s20 + $0x28] sm:$0xff] %v320_v53  ;;  %v322_v5 = vmax.f32 %v306_v55, 0.0  ;;  %v257_v9 = vmul.f32 %v637_v0, %v234_v52  ;;  %v307_v10 = vadd.f32 %v291_v56, %v275_v59  ;;  %v278_v12 = vadd.f32 %v654_v2, %v255_v62 }
  0x25   : > { %v308_v11 = vadd.f32 %v292_v57, %v276_v60  ;;  %v279_v13 = vadd.f32 %v654_v2, %v256_v63  ;;  %337 = vst [vmem:[%s697_s20 + $0x30] sm:$0xff] %v321_v4  ;;  %v309_v15 = vadd.f32 %v293_v61, %v277_v6  ;;  %v258_v17 = vmul.f32 %v637_v0, %v235_v1  ;;  %p503_p3 = pnand %p502_p2, %p496_p13 }
  0x26   : > { %338 = vst [vmem:[%s697_s20 + $0x38] sm:$0xff] %v322_v5  ;;  %v280_v16 = vadd.f32 %v654_v2, %v257_v9  ;;  %v259_v18 = vmul.f32 %v637_v0, %v236_v3  ;;  %v323_v19 = vmax.f32 %v307_v10, 0.0  ;;  %v310_v21 = vadd.f32 %v294_v7, %v278_v12 }
  0x27   : > { %v324_v20 = vmax.f32 %v308_v11, 0.0  ;;  %v311_v22 = vadd.f32 %v295_v8, %v279_v13  ;;  %v325_v25 = vmax.f32 %v309_v15, 0.0  ;;  %v281_v27 = vadd.f32 %v654_v2, %v258_v17 }
  0x28   : > { %v312_v26 = vadd.f32 %v296_v14, %v280_v16  ;;  %v282_v28 = vadd.f32 %v654_v2, %v259_v18  ;;  %339 = vst [vmem:[%s697_s20 + $0x40] sm:$0xff] %v323_v19  ;;  %v326_v0 = vmax.f32 %v310_v21, 0.0 }
  0x29   : > { %340 = vst [vmem:[%s697_s20 + $0x48] sm:$0xff] %v324_v20  ;;  %v327_v29 = vmax.f32 %v311_v22, 0.0  ;;  %341 = vst [vmem:[%s697_s20 + $0x50] sm:$0xff] %v325_v25  ;;  %v313_v31 = vadd.f32 %v297_v23, %v281_v27 }
  0x2a   : > { %v328_v30 = vmax.f32 %v312_v26, 0.0  ;;  %v314_v32 = vadd.f32 %v298_v24, %v282_v28  ;;  %342 = vst [vmem:[%s697_s20 + $0x58] sm:$0xff] %v326_v0 }
  0x2b   : > { %343 = vst [vmem:[%s697_s20 + $0x60] sm:$0xff] %v327_v29  ;;  %v329_v2 = vmax.f32 %v313_v31, 0.0 }
  0x2c   : > { %344 = vst [vmem:[%s697_s20 + $0x68] sm:$0xff] %v328_v30  ;;  %v330_v33 = vmax.f32 %v314_v32, 0.0 }
  0x2d   : > { %345 = vst [vmem:[%s697_s20 + $0x70] sm:$0xff] %v329_v2 }
  0x2e   : > { %346 = vst [vmem:[%s697_s20 + $0x78] sm:$0xff] %v330_v33 }
  0x2f   : > { %506 = shalt.err (!%p503_p3)
}
  0x30   : > { %s507_s8 = scalar_lea.hbm %s744_s29, 2048  ;;  %s511_s11 = scalar_lea.hbm %s798_s4, 8192 }
  0x31   : > { %p508_p4 = scmp.ne.s32.totalorder %s744_s29, %s507_s8  ;;  %p512_p9 = scmp.lt.u32.totalorder %s744_s29, %s798_s4 }
  0x32   : > { %p513_p10 = scmp.lt.u32.totalorder %s511_s11, %s507_s8  ;;  %p515_p12 = scmp.lt.u32.totalorder %s507_s8, %s744_s29 }
  0x33   : > { %p509_p7 = pnand %p508_p4, %p623_p5 }
  0x34   : > { %p514_p11 = por %p513_p10, %p512_p9 }
  0x35   : > { %p510_p8 = pneg %p509_p7 }
  0x36   : > { %p516_p13 = por %p515_p12, %p514_p11 }
  0x38   : > { %p517_p0 = pnand %p516_p13, %p510_p8 }
  0x3a   : > { %520 = shalt.err (!%p517_p0)
}
  0x3b   : > { %s558_s14 = smov 128   ;;  %s559_s20 = smov 8  }
  0x3c   : > { %452 = dma.vmem_to_hbm [thread:$0]  (%p623_p5), %s746_s23, 2048, %s744_s29, %s753_s19, %s558_s14, %s558_s14, %s559_s20  }
  0x3d PF: > { %p458_p1 = scmp.ge.s32.totalorder %s555_s18, 2  ;;  %s376_s22 = sand.u32 1, %s543_s15  }
  0x3e   : > { %s377_s27 = scalar_lea.sflag [#allocation3], %s376_s22 }
  0x3f   : > { %p455_p2 = pnand %p458_p1, %p627_p6 }
  0x41   : > { %538 = dma.done.wait (!%p455_p2), %s377_s27, 2048  }
  0x42   : > { %540 = vsyncadd (!%p455_p2), %s377_s27, 4294965248  ;;  %p14_p3 = scmp.ge.s32.totalorder %s610_s21, 6   ;;  %s801_s15 = smov %s547_s16 }
  0x43   : > { %s802_s16 = smov %s551_s17  ;;  %s803_s17 = smov %s621_s24 }
  0x44   : > { %s804_s18 = smov %s610_s21  ;;  %16 = sbr.rel (!%p14_p3) target bundleno = 3 (0x3), region = 74 }
  0x4b   :  { %382 = vsyncpa [#allocation3], 1 }
  0x4c   :  { %384 = vsyncpa [#allocation3 + $0x1], 1 }

// kernel: bottleneck_forward.6
= control target key start
LH: loop header
LB: loop body
LE: loop exit
PB: predicated region body
PF: predicated region fallthrough
CT: control target
= control target key end

     0   :  { %s840_s18 = smov 0   ;;  %s998_s0 = inlined_call_operand.vmem [shape: f32[512,128], index: 0, kind: input, shape index: {}]   ;;  %s999_s1 = inlined_call_operand.vmem [shape: f32[1,128], index: 1, kind: input, shape index: {}]   ;;  %s1000_s2 = inlined_call_operand.vmem [shape: f32[1,128], index: 2, kind: input, shape index: {}]   ;;  %s1001_s3 = inlined_call_operand.vmem [shape: f32[128,128], index: 3, kind: input, shape index: {}]   ;;  %s1002_s4 = inlined_call_operand.vmem [shape: f32[512,128], index: 4, kind: output, shape index: {0}]   ;;  %s1003_s5 = inlined_call_operand.vmem [shape: f32[4,8,128], index: 5, kind: output, shape index: {1}]  }
   0x1 LB: > { %s846_s19 = sadd.s32 4294967295, %s808_s18   ;;  %p648_p0 = scmp.ge.s32.totalorder %s808_s18, 1  ;;  %s808_s18 = sphi %s840_s18, %s16_s18  }
   0x2   : > { %p191_p1 = scmp.lt.s32.totalorder %s808_s18, 5 }
   0x4   : > { %p192_p2 = pnand %p648_p0, %p191_p1 }
   0x5   : > { %v317_v0 = vld [vmem:[%s1001_s3] sm:$0xff] (!%p192_p2)  ;;  %v318_v1 = vld [vmem:[%s1001_s3 + $0x8] sm:$0xff] (!%p192_p2)  ;;  %v319_v2 = vld [vmem:[%s1001_s3 + $0x10] sm:$0xff] (!%p192_p2)  ;;  %s649_s26 = sshll.u32 (!%p192_p2), %s846_s19, 4  ;;  %p235_p4 = scmp.lt.s32.totalorder (!%p192_p2), %s846_s19, 3  ;;  %vm552_vm0 = vcmask (!%p192_p2), 1040384  }
   0x6   : > { %195 = sbr.rel (%p192_p2) target bundleno = 302 (0x12e), region = 36  ;;  %v746_v3 = vpack.c.bf16 (!%p192_p2), %v318_v1, %v317_v0  ;;  %v320_v4 = vld [vmem:[%s1001_s3 + $0x18] sm:$0xff] (!%p192_p2)  ;;  %p224_p3 = scmp.lt.s32.totalorder (!%p192_p2), %s649_s26, 63  ;;  %v321_v6 = vld [vmem:[%s1001_s3 + $0x20] sm:$0xff] (!%p192_p2)  ;;  %v322_v7 = vld [vmem:[%s1001_s3 + $0x28] sm:$0xff] (!%p192_p2)  ;;  %vm554_vm1 = vcmask (!%p192_p2), 1041408  }
   0x7   : > { %v750_v5 = vpack.c.bf16 (!%p192_p2), %v320_v4, %v319_v2  ;;  %v754_v8 = vpack.c.bf16 (!%p192_p2), %v322_v7, %v321_v6  ;;  %v875_v9 = vld [vmem:[%s999_s1] ss:$0 sm:$0xff] (!%p192_p2)  ;;  %v323_v10 = vld [vmem:[%s1001_s3 + $0x30] sm:$0xff] (!%p192_p2)  ;;  %v324_v11 = vld [vmem:[%s1001_s3 + $0x38] sm:$0xff] (!%p192_p2) }
   0x8   : > { %747 = vmatprep.subr.bf16.mxu0 (!%p192_p2), %v746_v3  ;;  %778 = vmatprep.subr.bf16.mxu1 (!%p192_p2), %v746_v3  ;;  %v894_v13 = vld [vmem:[%s1000_s2] ss:$0 sm:$0xff] (!%p192_p2)  ;;  %v758_v15 = vpack.c.bf16 (!%p192_p2), %v324_v11, %v323_v10  ;;  %v326_v17 = vld [vmem:[%s1001_s3 + $0x48] sm:$0xff] (!%p192_p2)  ;;  %v327_v22 = vld [vmem:[%s1001_s3 + $0x50] sm:$0xff] (!%p192_p2) }
   0x9   : > { %749 = vmatpush3.bf16.msra.mxu0 (!%p192_p2), %v746_v3  ;;  %786 = vmatpush3.bf16.msra.mxu1 (!%p192_p2), %v746_v3  ;;  %v325_v16 = vld [vmem:[%s1001_s3 + $0x40] sm:$0xff] (!%p192_p2)  ;;  %v328_v23 = vld [vmem:[%s1001_s3 + $0x58] sm:$0xff] (!%p192_p2)  ;;  %v330_v28 = vld [vmem:[%s1001_s3 + $0x68] sm:$0xff] (!%p192_p2) }
   0xa   : > { %751 = vmatprep.subr.bf16.mxu0 (!%p192_p2), %v750_v5  ;;  %779 = vmatprep.subr.bf16.mxu1 (!%p192_p2), %v750_v5  ;;  %v762_v21 = vpack.c.bf16 (!%p192_p2), %v326_v17, %v325_v16  ;;  %v766_v26 = vpack.c.bf16 (!%p192_p2), %v328_v23, %v327_v22  ;;  %v329_v27 = vld [vmem:[%s1001_s3 + $0x60] sm:$0xff] (!%p192_p2)  ;;  %v331_v35 = vld [vmem:[%s1001_s3 + $0x70] sm:$0xff] (!%p192_p2)  ;;  %v332_v36 = vld [vmem:[%s1001_s3 + $0x78] sm:$0xff] (!%p192_p2) }
   0xb   : > { %v770_v32 = vpack.c.bf16 (!%p192_p2), %v330_v28, %v329_v27  ;;  %v774_v44 = vpack.c.bf16 (!%p192_p2), %v332_v36, %v331_v35 }
   0xd   : > { %s1005_s26 = smov (!%p224_p3, %s649_s26), 63  ;;  %753 = vmatpush3.bf16.msra.mxu0 %v750_v5  ;;  %787 = vmatpush3.bf16.msra.mxu1 %v750_v5  ;;  %s1007_s19 = smov (!%p235_p4, %s846_s19), 3 }
   0xe   : > { %s650_s8 = sshll.u32 %s1005_s26, 3  ;;  %755 = vmatprep.subr.bf16.mxu0 %v754_v8  ;;  %780 = vmatprep.subr.bf16.mxu1 %v754_v8  ;;  %s653_s26 = sshll.u32 %s1007_s19, 3 }
   0xf   : > { %s888_s17 = scalar_lea.vmem %s998_s0, %s650_s8  ;;  %s238_s21 = scalar_lea.vmem %s1003_s5, %s653_s26 }
  0x10   : > { %v239_v12 = vld [vmem:[%s888_s17] sm:$0xff]  ;;  %v240_v30 = vld [vmem:[%s888_s17 + $0x8] sm:$0xff]  ;;  %v241_v33 = vld [vmem:[%s888_s17 + $0x10] sm:$0xff] }
  0x11   : > { %v262_v14 = vmul.f32 %v875_v9, %v239_v12  ;;  %v247_v19 = vld [vmem:[%s888_s17 + $0x40] sm:$0xff]  ;;  %757 = vmatpush3.bf16.msra.mxu0 %v754_v8  ;;  %788 = vmatpush3.bf16.msra.mxu1 %v754_v8  ;;  %v248_v31 = vld [vmem:[%s888_s17 + $0x48] sm:$0xff]  ;;  %v249_v34 = vld [vmem:[%s888_s17 + $0x50] sm:$0xff]  ;;  %v263_v37 = vmul.f32 %v875_v9, %v240_v30  ;;  %v264_v41 = vmul.f32 %v875_v9, %v241_v33 }
  0x12   : > { %759 = vmatprep.subr.bf16.mxu0 %v758_v15  ;;  %781 = vmatprep.subr.bf16.mxu1 %v758_v15  ;;  %v270_v24 = vmul.f32 %v875_v9, %v247_v19  ;;  %v242_v38 = vld [vmem:[%s888_s17 + $0x18] sm:$0xff]  ;;  %v243_v39 = vld [vmem:[%s888_s17 + $0x20] sm:$0xff]  ;;  %v271_v40 = vmul.f32 %v875_v9, %v248_v31  ;;  %v272_v42 = vmul.f32 %v875_v9, %v249_v34  ;;  %v244_v49 = vld [vmem:[%s888_s17 + $0x28] sm:$0xff] }
  0x13   : > { %v285_v18 = vadd.f32 %v894_v13, %v262_v14  ;;  %v250_v43 = vld [vmem:[%s888_s17 + $0x58] sm:$0xff]  ;;  %v251_v45 = vld [vmem:[%s888_s17 + $0x60] sm:$0xff]  ;;  %v265_v46 = vmul.f32 %v875_v9, %v242_v38  ;;  %v266_v47 = vmul.f32 %v875_v9, %v243_v39  ;;  %v286_v48 = vadd.f32 %v894_v13, %v263_v37  ;;  %v245_v50 = vld [vmem:[%s888_s17 + $0x30] sm:$0xff] }
  0x14   : > { %v293_v25 = vadd.f32 %v894_v13, %v270_v24  ;;  %v294_v51 = vadd.f32 %v894_v13, %v271_v40  ;;  %v273_v52 = vmul.f32 %v875_v9, %v250_v43  ;;  %v287_v53 = vadd.f32 %v894_v13, %v264_v41  ;;  %v252_v56 = vld [vmem:[%s888_s17 + $0x68] sm:$0xff]  ;;  %v253_v57 = vld [vmem:[%s888_s17 + $0x70] sm:$0xff]  ;;  %v246_v63 = vld [vmem:[%s888_s17 + $0x38] sm:$0xff] }
  0x15   : > { %v301_v20 = vmax.f32 %v285_v18, 0.0  ;;  %761 = vmatpush3.bf16.msra.mxu0 %v758_v15  ;;  %789 = vmatpush3.bf16.msra.mxu1 %v758_v15  ;;  %v295_v54 = vadd.f32 %v894_v13, %v272_v42  ;;  %v274_v55 = vmul.f32 %v875_v9, %v251_v45  ;;  %v288_v58 = vadd.f32 %v894_v13, %v265_v46  ;;  %v254_v7 = vld [vmem:[%s888_s17 + $0x78] sm:$0xff]  ;;  %s972_s17 = scalar_lea.vmem %s1002_s4, %s650_s8 }
  0x16   : > { %763 = vmatprep.subr.bf16.mxu0 %v762_v21  ;;  %782 = vmatprep.subr.bf16.mxu1 %v762_v21  ;;  %v309_v29 = vmax.f32 %v293_v25, 0.0  ;;  %v289_v59 = vadd.f32 %v894_v13, %v266_v47  ;;  %v267_v60 = vmul.f32 %v875_v9, %v244_v49  ;;  %v268_v61 = vmul.f32 %v875_v9, %v245_v50 }
  0x17   : > { %722 = vmatprep.mubr.f32.mxu0 %v301_v20  ;;  %v302_v62 = vmax.f32 %v286_v48, 0.0  ;;  %v310_v0 = vmax.f32 %v294_v51, 0.0  ;;  %v296_v1 = vadd.f32 %v894_v13, %v273_v52  ;;  %v275_v2 = vmul.f32 %v875_v9, %v252_v56 }
  0x18   : > { %734 = vmatprep.mubr.f32.mxu1 %v309_v29  ;;  %v303_v3 = vmax.f32 %v287_v53, 0.0  ;;  %v311_v4 = vmax.f32 %v295_v54, 0.0  ;;  %v297_v5 = vadd.f32 %v894_v13, %v274_v55  ;;  %v276_v6 = vmul.f32 %v875_v9, %v253_v57 }
  0x19   : > { %765 = vmatpush3.bf16.msra.mxu0 %v762_v21  ;;  %790 = vmatpush3.bf16.msra.mxu1 %v762_v21  ;;  %v290_v8 = vadd.f32 %v894_v13, %v267_v60  ;;  %v269_v10 = vmul.f32 %v875_v9, %v246_v63  ;;  %v304_v11 = vmax.f32 %v288_v58, 0.0  ;;  %v312_v12 = vmax.f32 %v296_v1, 0.0 }
  0x1a   : > { %767 = vmatprep.subr.bf16.mxu0 %v766_v26  ;;  %783 = vmatprep.subr.bf16.mxu1 %v766_v26  ;;  %v298_v14 = vadd.f32 %v894_v13, %v275_v2  ;;  %v277_v15 = vmul.f32 %v875_v9, %v254_v7  ;;  %v305_v16 = vmax.f32 %v289_v59, 0.0  ;;  %v291_v17 = vadd.f32 %v894_v13, %v268_v61 }
  0x1b   : > { %v313_v18 = vmax.f32 %v297_v5, 0.0  ;;  %v299_v19 = vadd.f32 %v894_v13, %v276_v6  ;;  %v306_v20 = vmax.f32 %v290_v8, 0.0  ;;  %v292_v21 = vadd.f32 %v894_v13, %v269_v10 }
  0x1c   : > { %v314_v22 = vmax.f32 %v298_v14, 0.0  ;;  %v300_v23 = vadd.f32 %v894_v13, %v277_v15  ;;  %v307_v24 = vmax.f32 %v291_v17, 0.0 }
  0x1d   : > { %769 = vmatpush3.bf16.msra.mxu0 %v766_v26  ;;  %791 = vmatpush3.bf16.msra.mxu1 %v766_v26  ;;  %v315_v9 = vmax.f32 %v299_v19, 0.0  ;;  %v308_v25 = vmax.f32 %v292_v21, 0.0 }
  0x1e   : > { %771 = vmatprep.subr.bf16.mxu0 %v770_v32  ;;  %784 = vmatprep.subr.bf16.mxu1 %v770_v32  ;;  %v316_v26 = vmax.f32 %v300_v23, 0.0 }
  0x21   : > { %773 = vmatpush3.bf16.msra.mxu0 %v770_v32  ;;  %792 = vmatpush3.bf16.msra.mxu1 %v770_v32 }
  0x22   : > { %775 = vmatprep.subr.bf16.mxu0 %v774_v44  ;;  %785 = vmatprep.subr.bf16.mxu1 %v774_v44 }
  0x25   : > { %777 = vmatpush3.bf16.msra.mxu0 %v774_v44  ;;  %793 = vmatpush3.bf16.msra.mxu1 %v774_v44 }
  0x28   : > { %723 = vmatmul.mubr.f32.vlgmr.msra.gmra.mrb[0].mxu0 %v302_v62  ;;  %735 = vmatmul.mubr.f32.vlgmr.msra.gmra.mrb[0].mxu1 %v310_v0 }
  0x29   : > { %725 = vmatprep.mubr.f32.mxu0 %v303_v3  ;;  %737 = vmatprep.mubr.f32.mxu1 %v311_v4 }
  0x2c   : > { %726 = vmatmul.mubr.f32.gmra.mrb[2].mxu0 %v304_v11  ;;  %738 = vmatmul.mubr.f32.gmra.mrb[2].mxu1 %v312_v12 }
  0x2d   : > { %728 = vmatprep.mubr.f32.mxu0 %v305_v16  ;;  %740 = vmatprep.mubr.f32.mxu1 %v313_v18 }
  0x30   : > { %729 = vmatmul.mubr.f32.gmra.mrb[4].mxu0 %v306_v20  ;;  %741 = vmatmul.mubr.f32.gmra.mrb[4].mxu1 %v314_v22 }
  0x31   : > { %731 = vmatprep.mubr.f32.mxu0 %v307_v24  ;;  %743 = vmatprep.mubr.f32.mxu1 %v315_v9 }
  0x34   : > { %732 = vmatmul.mubr.f32.gmra.mrb[6].mxu0 %v308_v25  ;;  %744 = vmatmul.mubr.f32.gmra.mrb[6].mxu1 %v316_v26 }
  0xfb   : > { %v724_v13 = vpop.f32.mrb[0].mxu0  ;;  %v736_v27 = vpop.f32.mrb[0].mxu1 }
  0xfc   : > { %479 = vst [vmem:[%s972_s17 + $0x8] sm:$0xff] %v724_v13  ;;  %v516_v28 = vmul.f32 %v724_v13, %v724_v13  ;;  %v399_v29 = vpop.f32.mrb[1].mxu0  ;;  %487 = vst [vmem:[%s972_s17 + $0x48] sm:$0xff] %v736_v27  ;;  %v439_v30 = vpop.f32.mrb[1].mxu1  ;;  %v524_v2 = vmul.f32 %v736_v27, %v736_v27 }
  0xfd   : > { %478 = vst [vmem:[%s972_s17] sm:$0xff] %v399_v29  ;;  %v494_v31 = vadd.f32 %v724_v13, %v399_v29  ;;  %v515_v32 = vmul.f32 %v399_v29, %v399_v29  ;;  %486 = vst [vmem:[%s972_s17 + $0x40] sm:$0xff] %v439_v30  ;;  %v523_v63 = vmul.f32 %v439_v30, %v439_v30 }
  0xff   : > { %v531_v33 = vadd.f32 %v516_v28, %v515_v32  ;;  %v727_v34 = vpop.f32.mrb[2].mxu0  ;;  %v739_v35 = vpop.f32.mrb[2].mxu1 }
 0x100   : > { %481 = vst [vmem:[%s972_s17 + $0x18] sm:$0xff] %v727_v34  ;;  %v409_v36 = vpop.f32.mrb[3].mxu0  ;;  %489 = vst [vmem:[%s972_s17 + $0x58] sm:$0xff] %v739_v35  ;;  %v449_v37 = vpop.f32.mrb[3].mxu1  ;;  %v518_v40 = vmul.f32 %v727_v34, %v727_v34  ;;  %v526_v8 = vmul.f32 %v739_v35, %v739_v35 }
 0x101   : > { %480 = vst [vmem:[%s972_s17 + $0x10] sm:$0xff] %v409_v36  ;;  %v495_v38 = vadd.f32 %v494_v31, %v409_v36  ;;  %v517_v39 = vmul.f32 %v409_v36, %v409_v36  ;;  %488 = vst [vmem:[%s972_s17 + $0x50] sm:$0xff] %v449_v37  ;;  %v525_v5 = vmul.f32 %v449_v37, %v449_v37 }
 0x103   : > { %v532_v41 = vadd.f32 %v531_v33, %v517_v39  ;;  %v730_v42 = vpop.f32.mrb[4].mxu0  ;;  %v496_v43 = vadd.f32 %v727_v34, %v495_v38  ;;  %v742_v44 = vpop.f32.mrb[4].mxu1 }
 0x104   : > { %483 = vst [vmem:[%s972_s17 + $0x28] sm:$0xff] %v730_v42  ;;  %v419_v45 = vpop.f32.mrb[5].mxu0  ;;  %491 = vst [vmem:[%s972_s17 + $0x68] sm:$0xff] %v742_v44  ;;  %v459_v46 = vpop.f32.mrb[5].mxu1  ;;  %v520_v50 = vmul.f32 %v730_v42, %v730_v42  ;;  %v528_v16 = vmul.f32 %v742_v44, %v742_v44 }
 0x105   : > { %482 = vst [vmem:[%s972_s17 + $0x20] sm:$0xff] %v419_v45  ;;  %v497_v47 = vadd.f32 %v496_v43, %v419_v45  ;;  %v519_v48 = vmul.f32 %v419_v45, %v419_v45  ;;  %v533_v49 = vadd.f32 %v532_v41, %v518_v40  ;;  %490 = vst [vmem:[%s972_s17 + $0x60] sm:$0xff] %v459_v46 }
 0x106   : > { %v527_v12 = vmul.f32 %v459_v46, %v459_v46 }
 0x107   : > { %v534_v51 = vadd.f32 %v533_v49, %v519_v48  ;;  %v733_v52 = vpop.f32.mrb[6].mxu0  ;;  %v498_v53 = vadd.f32 %v730_v42, %v497_v47  ;;  %v745_v54 = vpop.f32.mrb[6].mxu1 }
 0x108   : > { %485 = vst [vmem:[%s972_s17 + $0x38] sm:$0xff] %v733_v52  ;;  %v429_v55 = vpop.f32.mrb[7].mxu0  ;;  %493 = vst [vmem:[%s972_s17 + $0x78] sm:$0xff] %v745_v54  ;;  %v469_v56 = vpop.f32.mrb[7].mxu1  ;;  %v522_v60 = vmul.f32 %v733_v52, %v733_v52  ;;  %v530_v22 = vmul.f32 %v745_v54, %v745_v54 }
 0x109   : > { %484 = vst [vmem:[%s972_s17 + $0x30] sm:$0xff] %v429_v55  ;;  %v499_v57 = vadd.f32 %v498_v53, %v429_v55  ;;  %v521_v58 = vmul.f32 %v429_v55, %v429_v55  ;;  %v535_v59 = vadd.f32 %v534_v51, %v520_v50  ;;  %492 = vst [vmem:[%s972_s17 + $0x70] sm:$0xff] %v469_v56 }
 0x10a   : > { %v529_v19 = vmul.f32 %v469_v56, %v469_v56 }
 0x10b   : > { %v500_v61 = vadd.f32 %v733_v52, %v499_v57  ;;  %v536_v62 = vadd.f32 %v535_v59, %v521_v58 }
 0x10d   : > { %v537_v0 = vadd.f32 %v536_v62, %v522_v60  ;;  %v501_v1 = vadd.f32 %v500_v61, %v439_v30 }
 0x10f   : > { %v538_v3 = vadd.f32 %v537_v0, %v523_v63  ;;  %v502_v4 = vadd.f32 %v736_v27, %v501_v1 }
 0x111   : > { %v503_v6 = vadd.f32 %v502_v4, %v449_v37  ;;  %v539_v7 = vadd.f32 %v538_v3, %v524_v2 }
 0x113   : > { %v540_v10 = vadd.f32 %v539_v7, %v525_v5  ;;  %v504_v11 = vadd.f32 %v739_v35, %v503_v6 }
 0x115   : > { %v505_v14 = vadd.f32 %v504_v11, %v459_v46  ;;  %v541_v15 = vadd.f32 %v540_v10, %v526_v8 }
 0x117   : > { %v542_v17 = vadd.f32 %v541_v15, %v527_v12  ;;  %v506_v18 = vadd.f32 %v742_v44, %v505_v14 }
 0x119   : > { %v507_v20 = vadd.f32 %v506_v18, %v469_v56  ;;  %v543_v21 = vadd.f32 %v542_v17, %v528_v16 }
 0x11b   : > { %v508_v23 = vadd.f32 %v745_v54, %v507_v20  ;;  %v544_v24 = vadd.f32 %v543_v21, %v529_v19 }
 0x11d   : > { %v509_v9 = vrot.slane %v508_v23, 4  ;;  %v545_v25 = vadd.f32 %v544_v24, %v530_v22 }
 0x11f   : > { %v510_v26 = vadd.f32 %v509_v9, %v508_v23  ;;  %v546_v13 = vrot.slane %v545_v25, 4 }
 0x121   : > { %v511_v27 = vrot.slane %v510_v26, 2  ;;  %v547_v28 = vadd.f32 %v546_v13, %v545_v25 }
 0x123   : > { %v512_v29 = vadd.f32 %v511_v27, %v510_v26  ;;  %v548_v30 = vrot.slane %v547_v28, 2 }
 0x125   : > { %v513_v31 = vrot.slane %v512_v29, 1  ;;  %v549_v32 = vadd.f32 %v548_v30, %v547_v28 }
 0x127   : > { %v550_v33 = vrot.slane %v549_v32, 1  ;;  %v514_v34 = vadd.f32 %v513_v31, %v512_v29 }
 0x129   : > { %v551_v35 = vadd.f32 %v550_v33, %v549_v32 }
 0x12b   : > { %v553_v36 = vsel %vm552_vm0, %v514_v34, %v551_v35 }
 0x12c   : > { %v555_v37 = vsel %vm554_vm1, %v553_v36, 0.0 }
 0x12d   : > { %556 = vst [vmem:[%s238_s21] sm:$0xff] %v555_v37 }
 0x12e PF: > { %s16_s18 = sadd.s32 1, %s808_s18  }
 0x12f   : > { %p13_p5 = scmp.ge.s32.totalorder %s16_s18, 6  }
 0x131   :  { %15 = sbr.rel (!%p13_p5) target bundleno = 1 (0x1), region = 78 }

// kernel: bottleneck_forward.5
= control target key start
LH: loop header
LB: loop body
LE: loop exit
PB: predicated region body
PF: predicated region fallthrough
CT: control target
= control target key end

     0   :  { %s5451_s18 = smov 0   ;;  %s7134_s0 = inlined_call_operand.vmem [shape: f32[2,16,16,128], index: 0, kind: input, shape index: {}]   ;;  %s7135_s1 = inlined_call_operand.vmem [shape: f32[1,128], index: 1, kind: input, shape index: {}]   ;;  %s7136_s2 = inlined_call_operand.vmem [shape: f32[1,128], index: 2, kind: input, shape index: {}]   ;;  %s7137_s3 = inlined_call_operand.vmem [shape: f32[9,128,128], index: 3, kind: input, shape index: {}]   ;;  %s7138_s4 = inlined_call_operand.vmem [shape: f32[2,256,128], index: 4, kind: output, shape index: {0}]   ;;  %s7139_s5 = inlined_call_operand.vmem [shape: f32[2,8,128], index: 5, kind: output, shape index: {1}]  }
   0x1 LB: > { %s3449_s19 = sadd.s32 4294967295, %s5418_s18   ;;  %p3453_p0 = scmp.ge.s32.totalorder %s5418_s18, 1  ;;  %s5418_s18 = sphi %s5451_s18, %s16_s18  }
   0x2   : > { %p190_p1 = scmp.lt.s32.totalorder %s5418_s18, 3 }
   0x4   : > { %p191_p2 = pnand %p3453_p0, %p190_p1 }
   0x6   : > { %194 = sbr.rel (%p191_p2) target bundleno = 570 (0x23a), region = 36 }
   0xd   : > { %v3461_v0 = vld [vmem:[%s7137_s3 + $0x80] sm:$0xff]  ;;  %v3462_v1 = vld [vmem:[%s7137_s3 + $0x88] sm:$0xff]  ;;  %vm411_vm0 = vcmask 1040384   ;;  %v3463_v5 = vld [vmem:[%s7137_s3 + $0x90] sm:$0xff]  ;;  %v5420_v7 = vmov 0.0   ;;  %p5479_p3 = scmp.lt.s32.totalorder %s3449_s19, 1 }
   0xe   : > { %v3573_v2 = vld [vmem:[%s7137_s3 + $0x200] sm:$0xff]  ;;  %v4841_v3 = vpack.c.bf16 %v3462_v1, %v3461_v0  ;;  %v3574_v4 = vld [vmem:[%s7137_s3 + $0x208] sm:$0xff]  ;;  %v3464_v6 = vld [vmem:[%s7137_s3 + $0x98] sm:$0xff]  ;;  %v5477_v8 = vrot.slane %v5420_v7, 7  ;;  %vm594_vm1 = vcmask 1046528   ;;  %vm1174_vm2 = vcmask 1045504  }
   0xf   : > { %v5483_v9 = vpack.c.bf16 %v3574_v4, %v3573_v2  ;;  %v4845_v10 = vpack.c.bf16 %v3464_v6, %v3463_v5  ;;  %v3575_v11 = vld [vmem:[%s7137_s3 + $0x210] sm:$0xff]  ;;  %v3576_v12 = vld [vmem:[%s7137_s3 + $0x218] sm:$0xff]  ;;  %v3465_v13 = vld [vmem:[%s7137_s3 + $0xa0] sm:$0xff]  ;;  %s7394_s19 = smov (!%p5479_p3, %s3449_s19), 1  ;;  %vm3360_vm4 = vcmask 1041408  }
  0x10   : > { %4842 = vmatprep.subr.bf16.mxu1 %v4841_v3  ;;  %v5494_v14 = vpack.c.bf16 %v3576_v12, %v3575_v11  ;;  %v3466_v15 = vld [vmem:[%s7137_s3 + $0xa8] sm:$0xff]  ;;  %v3577_v16 = vld [vmem:[%s7137_s3 + $0x220] sm:$0xff]  ;;  %v5507_v18 = vsel %vm411_vm0, 0.0, %v5477_v8  ;;  %v596_v19 = vrot.slane %v5477_v8, 1  ;;  %v3467_v20 = vld [vmem:[%s7137_s3 + $0xb0] sm:$0xff]  ;;  %s3687_s30 = sshll.u32 %s7394_s19, 8 }
  0x11   : > { %7248 = vst [vmem:[#allocation2_spill] sm:$0xff] %v5483_v9  ;;  %v3578_v17 = vld [vmem:[%s7137_s3 + $0x228] sm:$0xff]  ;;  %7250 = vst [vmem:[#allocation4_spill] sm:$0xff] %v5507_v18  ;;  %4970 = vmatprep.subr.bf16.mxu0 %v5483_v9  ;;  %4844 = vmatpush3.bf16.msra.mxu1 %v4841_v3  ;;  %v595_v21 = vrot.slane %v5507_v18, 1  ;;  %v4849_v22 = vpack.c.bf16 %v3466_v15, %v3465_v13  ;;  %v3468_v23 = vld [vmem:[%s7137_s3 + $0xb8] sm:$0xff]  ;;  %v5532_v26 = vsel %vm411_vm0, %v5477_v8, 0.0  ;;  %s5564_s22 = scalar_lea.vmem %s7134_s0, %s3687_s30  ;;  %s7087_s16 = scalar_lea.vmem %s7138_s4, %s3687_s30 }
  0x12   : > { %7249 = vst [vmem:[#allocation3_spill] sm:$0xff] %v5494_v14  ;;  %4972 = vmatpush3.bf16.msra.mxu0 %v5483_v9  ;;  %4846 = vmatprep.subr.bf16.mxu1 %v4845_v10  ;;  %v3579_v24 = vld [vmem:[%s7137_s3 + $0x230] sm:$0xff]  ;;  %v3580_v25 = vld [vmem:[%s7137_s3 + $0x238] sm:$0xff]  ;;  %v5535_v27 = vpack.c.bf16 %v3578_v17, %v3577_v16  ;;  %v3469_v28 = vld [vmem:[%s7137_s3 + $0xc0] sm:$0xff]  ;;  %v598_v39 = vrot.slane %v5532_v26, 1  ;;  %v4853_v40 = vpack.c.bf16 %v3468_v23, %v3467_v20  ;;  %s3458_s30 = sshll.u32 %s7394_s19, 3 }
  0x13   : > { %4974 = vmatprep.subr.bf16.mxu0 %v5494_v14  ;;  %v3470_v29 = vld [vmem:[%s7137_s3 + $0xc8] sm:$0xff]  ;;  %v3581_v30 = vld [vmem:[%s7137_s3 + $0x240] sm:$0xff]  ;;  %v5547_v31 = vsel %vm594_vm1, %v595_v21, %v596_v19  ;;  %v3471_v33 = vld [vmem:[%s7137_s3 + $0xd0] sm:$0xff]  ;;  %v5590_v44 = vpack.c.bf16 %v3580_v25, %v3579_v24  ;;  %s235_s21 = scalar_lea.vmem %s7139_s5, %s3458_s30 }
  0x14   : > { %7251 = vst [vmem:[#allocation5_spill] sm:$0xff] %v5535_v27  ;;  %7252 = vst [vmem:[#allocation6_spill] sm:$0xff] %v5547_v31  ;;  %v3582_v32 = vld [vmem:[%s7137_s3 + $0x248] sm:$0xff]  ;;  %v3472_v34 = vld [vmem:[%s7137_s3 + $0xd8] sm:$0xff]  ;;  %4153 = vmatprep.mubr.f32.mxu1 %v5547_v31  ;;  %v4857_v48 = vpack.c.bf16 %v3470_v29, %v3469_v28  ;;  %v5620_v57 = vsel %vm594_vm1, %v596_v19, %v598_v39 }
  0x15   : > { %4848 = vmatpush3.bf16.msra.mxu1 %v4845_v10  ;;  %v3583_v35 = vld [vmem:[%s7137_s3 + $0x250] sm:$0xff]  ;;  %v3584_v36 = vld [vmem:[%s7137_s3 + $0x258] sm:$0xff]  ;;  %v3473_v37 = vld [vmem:[%s7137_s3 + $0xe0] sm:$0xff]  ;;  %7253 = vst [vmem:[#allocation7_spill] sm:$0xff] %v5590_v44  ;;  %v5599_v49 = vpack.c.bf16 %v3582_v32, %v3581_v30  ;;  %v5612_v53 = vpack.c.bf16 %v3472_v34, %v3471_v33 }
  0x16   : > { %v3474_v38 = vld [vmem:[%s7137_s3 + $0xe8] sm:$0xff]  ;;  %4976 = vmatpush3.bf16.msra.mxu0 %v5494_v14  ;;  %4850 = vmatprep.subr.bf16.mxu1 %v4849_v22  ;;  %v3585_v41 = vld [vmem:[%s7137_s3 + $0x260] sm:$0xff]  ;;  %v3475_v43 = vld [vmem:[%s7137_s3 + $0xf0] sm:$0xff]  ;;  %7255 = vst [vmem:[#allocation9_spill] sm:$0xff] %v5620_v57  ;;  %v5629_v60 = vpack.c.bf16 %v3584_v36, %v3583_v35 }
  0x17   : > { %v3586_v42 = vld [vmem:[%s7137_s3 + $0x268] sm:$0xff]  ;;  %4978 = vmatprep.subr.bf16.mxu0 %v5535_v27  ;;  %v3476_v45 = vld [vmem:[%s7137_s3 + $0xf8] sm:$0xff]  ;;  %v3587_v46 = vld [vmem:[%s7137_s3 + $0x270] sm:$0xff]  ;;  %7254 = vst [vmem:[#allocation8_spill] sm:$0xff] %v5599_v49  ;;  %v5631_v61 = vpack.c.bf16 %v3474_v38, %v3473_v37 }
  0x18   : > { %v236_v47 = vld [vmem:[%s5564_s22] sm:$0xff]  ;;  %v237_v50 = vld [vmem:[%s5564_s22 + $0x8] sm:$0xff]  ;;  %v3588_v54 = vld [vmem:[%s7137_s3 + $0x278] sm:$0xff]  ;;  %7256 = vst [vmem:[#allocation10_spill] sm:$0xff] %v5629_v60  ;;  %v5633_v62 = vpack.c.bf16 %v3586_v42, %v3585_v41  ;;  %v5638_v1 = vpack.c.bf16 %v3476_v45, %v3475_v43 }
  0x19   : > { %v5605_v51 = vld [vmem:[%s7135_s1] ss:$0 sm:$0xff]  ;;  %4852 = vmatpush3.bf16.msra.mxu1 %v4849_v22  ;;  %v547_v59 = vld [vmem:[%s7137_s3 + $0x8] sm:$0xff]  ;;  %v238_v63 = vld [vmem:[%s5564_s22 + $0x10] sm:$0xff]  ;;  %v5650_v10 = vpack.c.bf16 %v3588_v54, %v3587_v46 }
  0x1a   : > { %v5610_v52 = vld [vmem:[%s7136_s2] ss:$0 sm:$0xff]  ;;  %v275_v55 = vmul.f32 %v5605_v51, %v236_v47  ;;  %v276_v56 = vmul.f32 %v5605_v51, %v237_v50  ;;  %4980 = vmatpush3.bf16.msra.mxu0 %v5535_v27  ;;  %4854 = vmatprep.subr.bf16.mxu1 %v4853_v40  ;;  %7257 = vst [vmem:[#allocation11_spill] sm:$0xff] %v5633_v62  ;;  %v239_v0 = vld [vmem:[%s5564_s22 + $0x18] sm:$0xff]  ;;  %v3590_v5 = vld [vmem:[%s7137_s3 + $0x288] sm:$0xff] }
  0x1b   : > { %v546_v58 = vld [vmem:[%s7137_s3] sm:$0xff]  ;;  %4982 = vmatprep.subr.bf16.mxu0 %v5590_v44  ;;  %v277_v6 = vmul.f32 %v5605_v51, %v238_v63  ;;  %7258 = vst [vmem:[#allocation12_spill] sm:$0xff] %v5650_v10  ;;  %v278_v12 = vmul.f32 %v5605_v51, %v239_v0  ;;  %v3591_v13 = vld [vmem:[%s7137_s3 + $0x290] sm:$0xff]  ;;  %v241_v15 = vld [vmem:[%s5564_s22 + $0x28] sm:$0xff] }
  0x1c   : > { %v314_v2 = vadd.f32 %v5610_v52, %v275_v55  ;;  %v315_v3 = vadd.f32 %v5610_v52, %v276_v56  ;;  %v3589_v4 = vld [vmem:[%s7137_s3 + $0x280] sm:$0xff]  ;;  %v5652_v11 = vpack.c.bf16 %v547_v59, %v546_v58  ;;  %v3592_v21 = vld [vmem:[%s7137_s3 + $0x298] sm:$0xff]  ;;  %v280_v22 = vmul.f32 %v5605_v51, %v241_v15  ;;  %v548_v23 = vld [vmem:[%s7137_s3 + $0x10] sm:$0xff] }
  0x1d   : > { %v240_v7 = vld [vmem:[%s5564_s22 + $0x20] sm:$0xff]  ;;  %4856 = vmatpush3.bf16.msra.mxu1 %v4853_v40  ;;  %v316_v20 = vadd.f32 %v5610_v52, %v277_v6  ;;  %v549_v24 = vld [vmem:[%s7137_s3 + $0x18] sm:$0xff]  ;;  %v5672_v25 = vpack.c.bf16 %v3590_v5, %v3589_v4  ;;  %v317_v28 = vadd.f32 %v5610_v52, %v278_v12  ;;  %v242_v35 = vld [vmem:[%s5564_s22 + $0x30] sm:$0xff]  ;;  %v5681_v37 = vpack.c.bf16 %v3592_v21, %v3591_v13 }
  0x1e   : > { %v279_v16 = vmul.f32 %v5605_v51, %v240_v7  ;;  %v346_v17 = vmax.f32 %v314_v2, 0.0  ;;  %v347_v19 = vmax.f32 %v315_v3, 0.0  ;;  %4984 = vmatpush3.bf16.msra.mxu0 %v5590_v44  ;;  %4858 = vmatprep.subr.bf16.mxu1 %v4857_v48  ;;  %v319_v34 = vadd.f32 %v5610_v52, %v280_v22  ;;  %v3593_v45 = vld [vmem:[%s7137_s3 + $0x2a0] sm:$0xff]  ;;  %v3594_v46 = vld [vmem:[%s7137_s3 + $0x2a8] sm:$0xff]  ;;  %v243_v47 = vld [vmem:[%s5564_s22 + $0x38] sm:$0xff] }
  0x1f   : > { %4986 = vmatprep.subr.bf16.mxu0 %v5599_v49  ;;  %v348_v33 = vmax.f32 %v316_v20, 0.0  ;;  %v349_v36 = vmax.f32 %v317_v28, 0.0  ;;  %v5683_v39 = vpack.c.bf16 %v549_v24, %v548_v23  ;;  %v281_v55 = vmul.f32 %v5605_v51, %v242_v35  ;;  %v3595_v13 = vld [vmem:[%s7137_s3 + $0x2b0] sm:$0xff]  ;;  %v244_v20 = vld [vmem:[%s5564_s22 + $0x40] sm:$0xff]  ;;  %v245_v21 = vld [vmem:[%s5564_s22 + $0x48] sm:$0xff] }
  0x20   : > { %v318_v29 = vadd.f32 %v5610_v52, %v279_v16  ;;  %v5677_v30 = vrot.slane %v346_v17, 7  ;;  %v415_v32 = vrot.slane %v347_v19, 7  ;;  %v351_v59 = vmax.f32 %v319_v34, 0.0  ;;  %v550_v35 = vld [vmem:[%s7137_s3 + $0x20] sm:$0xff]  ;;  %v555_v44 = vld [vmem:[%s7137_s3 + $0x48] sm:$0xff]  ;;  %vm6412_vm3 = vmneg %vm411_vm0 }
  0x21   : > { %4860 = vmatpush3.bf16.msra.mxu1 %v4857_v48  ;;  %v5696_v43 = vrot.slane %v348_v33, 7  ;;  %v418_v56 = vrot.slane %v349_v36, 7  ;;  %v5722_v3 = vpack.c.bf16 %v3594_v46, %v3593_v45  ;;  %v282_v4 = vmul.f32 %v5605_v51, %v243_v47  ;;  %v551_v47 = vld [vmem:[%s7137_s3 + $0x28] sm:$0xff] }
  0x22   : > { %v350_v38 = vmax.f32 %v318_v29, 0.0  ;;  %v5687_v40 = vsel %vm411_vm0, %v5677_v30, %v415_v32  ;;  %v5691_v41 = vsel %vm411_vm0, 0.0, %v5677_v30  ;;  %v5694_v42 = vsel %vm411_vm0, %v415_v32, 0.0  ;;  %4988 = vmatpush3.bf16.msra.mxu0 %v5599_v49  ;;  %4862 = vmatprep.subr.bf16.mxu1 %v5612_v53  ;;  %v554_v49 = vld [vmem:[%s7137_s3 + $0x40] sm:$0xff] }
  0x23   : > { %7259 = vst [vmem:[#allocation13_spill] sm:$0xff] %v5687_v40  ;;  %v600_v48 = vrot.slane %v5691_v41, 1  ;;  %v601_v50 = vrot.slane %v5687_v40, 1  ;;  %v603_v54 = vrot.slane %v5694_v42, 1  ;;  %4990 = vmatprep.subr.bf16.mxu0 %v5629_v60  ;;  %v5714_v58 = vsel %vm411_vm0, 0.0, %v5696_v43 }
  0x24   : > { %v5716_v63 = vrot.slane %v350_v38, 7  ;;  %v605_v2 = vrot.slane %v5714_v58, 1  ;;  %v5729_v5 = vsel %vm411_vm0, %v5696_v43, %v418_v56  ;;  %v5732_v6 = vsel %vm411_vm0, %v418_v56, 0.0 }
  0x25   : > { %v5719_v0 = vsel %vm594_vm1, %v600_v48, %v601_v50  ;;  %4864 = vmatpush3.bf16.msra.mxu1 %v5612_v53  ;;  %v421_v7 = vrot.slane %v351_v59, 7  ;;  %v3596_v53 = vld [vmem:[%s7137_s3 + $0x2b8] sm:$0xff]  ;;  %v606_v15 = vrot.slane %v5729_v5, 1  ;;  %v608_v16 = vrot.slane %v5732_v6, 1  ;;  %v246_v48 = vld [vmem:[%s5564_s22 + $0x50] sm:$0xff] }
  0x26   : > { %4473 = vmatprep.mubr.f32.mxu0 %v5719_v0  ;;  %v5736_v12 = vsel %vm411_vm0, 0.0, %v5716_v63  ;;  %4992 = vmatpush3.bf16.msra.mxu0 %v5629_v60  ;;  %v320_v19 = vadd.f32 %v5610_v52, %v281_v55  ;;  %v5754_v22 = vsel %vm594_vm1, %v601_v50, %v603_v54  ;;  %v321_v28 = vadd.f32 %v5610_v52, %v282_v4  ;;  %v247_v50 = vld [vmem:[%s5564_s22 + $0x58] sm:$0xff] }
  0x27   : > { %4866 = vmatprep.subr.bf16.mxu1 %v5631_v61  ;;  %v610_v17 = vrot.slane %v5736_v12, 1  ;;  %4994 = vmatprep.subr.bf16.mxu0 %v5633_v62  ;;  %v5758_v23 = vsel %vm411_vm0, %v5716_v63, %v421_v7  ;;  %v5761_v24 = vsel %vm411_vm0, %v421_v7, 0.0  ;;  %v5765_v29 = vsel %vm594_vm1, %v605_v2, %v606_v15 }
  0x28   : > { %7260 = vst [vmem:[#allocation14_spill] sm:$0xff] %v5765_v29  ;;  %v611_v32 = vrot.slane %v5758_v23, 1  ;;  %v613_v33 = vrot.slane %v5761_v24, 1  ;;  %v5769_v34 = vpack.c.bf16 %v3596_v53, %v3595_v13  ;;  %v352_v36 = vmax.f32 %v320_v19, 0.0  ;;  %v3597_v53 = vld [vmem:[%s7137_s3 + $0x2c0] sm:$0xff] }
  0x29   : > { %4868 = vmatpush3.bf16.msra.mxu1 %v5631_v61  ;;  %v353_v38 = vmax.f32 %v321_v28, 0.0  ;;  %v283_v45 = vmul.f32 %v5605_v51, %v244_v20  ;;  %v284_v46 = vmul.f32 %v5605_v51, %v245_v21  ;;  %v5786_v61 = vsel %vm594_vm1, %v606_v15, %v608_v16  ;;  %v3598_v15 = vld [vmem:[%s7137_s3 + $0x2c8] sm:$0xff]  ;;  %v248_v19 = vld [vmem:[%s5564_s22 + $0x60] sm:$0xff] }
  0x2a   : > { %4996 = vmatpush3.bf16.msra.mxu0 %v5633_v62  ;;  %4870 = vmatprep.subr.bf16.mxu1 %v5638_v1  ;;  %7261 = vst [vmem:[#allocation15_spill] sm:$0xff] %v5786_v61  ;;  %v5789_v55 = vsel %vm594_vm1, %v610_v17, %v611_v32  ;;  %v5792_v56 = vsel %vm594_vm1, %v611_v32, %v613_v33  ;;  %v5795_v59 = vrot.slane %v352_v36, 7  ;;  %v249_v36 = vld [vmem:[%s5564_s22 + $0x68] sm:$0xff]  ;;  %v251_v62 = vld [vmem:[%s5564_s22 + $0x78] sm:$0xff] }
  0x2b   : > { %7262 = vst [vmem:[#allocation16_spill] sm:$0xff] %v5789_v55  ;;  %7263 = vst [vmem:[#allocation17_spill] sm:$0xff] %v5792_v56  ;;  %4998 = vmatprep.subr.bf16.mxu0 %v5650_v10  ;;  %v424_v2 = vrot.slane %v353_v38, 7  ;;  %v322_v4 = vadd.f32 %v5610_v52, %v283_v45  ;;  %v323_v7 = vadd.f32 %v5610_v52, %v284_v46 }
  0x2c   : > { %v5799_v13 = vpack.c.bf16 %v551_v47, %v550_v35  ;;  %v285_v16 = vmul.f32 %v5605_v51, %v246_v48  ;;  %v286_v17 = vmul.f32 %v5605_v51, %v247_v50  ;;  %v5818_v28 = vsel %vm411_vm0, 0.0, %v5795_v59  ;;  %v3599_v35 = vld [vmem:[%s7137_s3 + $0x2d0] sm:$0xff] }
  0x2d   : > { %4872 = vmatpush3.bf16.msra.mxu1 %v5638_v1  ;;  %v5814_v21 = vsel %vm411_vm0, %v5795_v59, %v424_v2  ;;  %v5821_v32 = vsel %vm411_vm0, %v424_v2, 0.0  ;;  %v354_v33 = vmax.f32 %v322_v4, 0.0  ;;  %v3600_v1 = vld [vmem:[%s7137_s3 + $0x2d8] sm:$0xff]  ;;  %v615_v38 = vrot.slane %v5818_v28, 1 }
  0x2e   : > { %5000 = vmatpush3.bf16.msra.mxu0 %v5650_v10  ;;  %4874 = vmatprep.subr.bf16.mxu1 %v5652_v11  ;;  %v616_v45 = vrot.slane %v5814_v21, 1  ;;  %v618_v46 = vrot.slane %v5821_v32, 1  ;;  %v355_v47 = vmax.f32 %v323_v7, 0.0  ;;  %v324_v50 = vadd.f32 %v5610_v52, %v285_v16 }
  0x2f   : > { %5002 = vmatprep.subr.bf16.mxu0 %v5672_v25  ;;  %v5836_v48 = vrot.slane %v354_v33, 7  ;;  %v325_v2 = vadd.f32 %v5610_v52, %v286_v17  ;;  %v287_v4 = vmul.f32 %v5605_v51, %v248_v19  ;;  %v5842_v20 = vpack.c.bf16 %v3598_v15, %v3597_v53  ;;  %v552_v53 = vld [vmem:[%s7137_s3 + $0x30] sm:$0xff] }
  0x30   : > { %4154 = vmatmul.mubr.f32.vlgmr.msra.gmra.mrb[0].mxu1 %v5620_v57  ;;  %v427_v54 = vrot.slane %v355_v47, 7  ;;  %v5844_v10 = vpack.c.bf16 %v3600_v1, %v3599_v35  ;;  %v288_v31 = vmul.f32 %v5605_v51, %v249_v36  ;;  %v356_v16 = vmax.f32 %v324_v50, 0.0  ;;  %v553_v1 = vld [vmem:[%s7137_s3 + $0x38] sm:$0xff]  ;;  %v250_v57 = vld [vmem:[%s5564_s22 + $0x70] sm:$0xff] }
  0x31   : > { %7264 = vst [vmem:[#allocation18_spill] sm:$0xff] %v5836_v48  ;;  %4474 = vmatmul.mubr.f32.vlgmr.msra.gmra.mrb[0].mxu0 %v5754_v22  ;;  %4876 = vmatpush3.bf16.msra.mxu1 %v5652_v11  ;;  %v5851_v7 = vsel %vm411_vm0, 0.0, %v5836_v48  ;;  %v357_v17 = vmax.f32 %v325_v2, 0.0  ;;  %v326_v19 = vadd.f32 %v5610_v52, %v287_v4  ;;  %v5860_v15 = vsel %vm594_vm1, %v615_v38, %v616_v45 }
  0x32   : > { %5004 = vmatpush3.bf16.msra.mxu0 %v5672_v25  ;;  %4156 = vmatprep.mubr.f32.mxu1 %v5719_v0  ;;  %7265 = vst [vmem:[#allocation19_spill] sm:$0xff] %v5860_v15  ;;  %v5864_v11 = vsel %vm411_vm0, %v5836_v48, %v427_v54  ;;  %v5867_v33 = vsel %vm411_vm0, %v427_v54, 0.0  ;;  %v327_v35 = vadd.f32 %v5610_v52, %v288_v31  ;;  %v3601_v25 = vld [vmem:[%s7137_s3 + $0x2e0] sm:$0xff]  ;;  %v3602_v0 = vld [vmem:[%s7137_s3 + $0x2e8] sm:$0xff]  ;;  %v620_v54 = vrot.slane %v5851_v7, 1 }
  0x33   : > { %4476 = vmatprep.mubr.f32.mxu0 %v5765_v29  ;;  %5006 = vmatprep.subr.bf16.mxu0 %v5681_v37  ;;  %v5882_v31 = vsel %vm594_vm1, %v616_v45, %v618_v46  ;;  %v5885_v36 = vrot.slane %v356_v16, 7  ;;  %v430_v38 = vrot.slane %v357_v17, 7  ;;  %v621_v47 = vrot.slane %v5864_v11, 1  ;;  %v559_v48 = vld [vmem:[%s7137_s3 + $0x68] sm:$0xff] }
  0x34   : > { %7266 = vst [vmem:[#allocation20_spill] sm:$0xff] %v5882_v31  ;;  %4157 = vmatmul.mubr.f32.gmra.mrb[2].mxu1 %v5754_v22  ;;  %4878 = vmatprep.subr.bf16.mxu1 %v5683_v39  ;;  %v623_v50 = vrot.slane %v5867_v33, 1  ;;  %v358_v2 = vmax.f32 %v326_v19, 0.0  ;;  %v359_v4 = vmax.f32 %v327_v35, 0.0  ;;  %v5903_v46 = vpack.c.bf16 %v553_v1, %v552_v53 }
  0x35   : > { %7267 = vst [vmem:[#allocation21_spill] sm:$0xff] %v5885_v36  ;;  %4477 = vmatmul.mubr.f32.gmra.mrb[2].mxu0 %v5786_v61  ;;  %4159 = vmatprep.mubr.f32.mxu1 %v5765_v29  ;;  %v5897_v45 = vsel %vm411_vm0, %v5885_v36, %v430_v38  ;;  %v5901_v22 = vsel %vm411_vm0, 0.0, %v5885_v36  ;;  %v5905_v16 = vpack.c.bf16 %v3602_v0, %v3601_v25  ;;  %v5912_v35 = vsel %vm411_vm0, %v430_v38, 0.0 }
  0x36   : > { %5008 = vmatpush3.bf16.msra.mxu0 %v5681_v37  ;;  %4479 = vmatprep.mubr.f32.mxu0 %v5789_v55  ;;  %v625_v17 = vrot.slane %v5901_v22, 1  ;;  %v626_v19 = vrot.slane %v5897_v45, 1  ;;  %v5914_v60 = vrot.slane %v358_v2, 7  ;;  %v628_v53 = vrot.slane %v5912_v35, 1 }
  0x37   : > { %5010 = vmatprep.subr.bf16.mxu0 %v5722_v3  ;;  %4880 = vmatpush3.bf16.msra.mxu1 %v5683_v39  ;;  %v433_v1 = vrot.slane %v359_v4, 7  ;;  %v289_v37 = vmul.f32 %v5605_v51, %v250_v57  ;;  %v290_v25 = vmul.f32 %v5605_v51, %v251_v62  ;;  %v5923_v0 = vsel %vm594_vm1, %v620_v54, %v621_v47  ;;  %v3603_v57 = vld [vmem:[%s7137_s3 + $0x2f0] sm:$0xff]  ;;  %v3604_v62 = vld [vmem:[%s7137_s3 + $0x2f8] sm:$0xff] }
  0x38   : > { %7268 = vst [vmem:[#allocation22_spill] sm:$0xff] %v5914_v60  ;;  %4160 = vmatmul.mubr.f32.gmra.mrb[4].mxu1 %v5786_v61  ;;  %7269 = vst [vmem:[#allocation23_spill] sm:$0xff] %v5923_v0  ;;  %4882 = vmatprep.subr.bf16.mxu1 %v5799_v13  ;;  %v5927_v38 = vsel %vm594_vm1, %v621_v47, %v623_v50  ;;  %v5931_v39 = vsel %vm411_vm0, 0.0, %v5914_v60  ;;  %v1181_v54 = vrot.slane %v5687_v40, 2  ;;  %v253_v61 = vld [vmem:[%s5564_s22 + $0x88] sm:$0xff]  ;;  %v7273_v29 = vrot.slane %v5691_v41, 2 }
  0x39   : > { %7270 = vst [vmem:[#allocation24_spill] sm:$0xff] %v5927_v38  ;;  %4480 = vmatmul.mubr.f32.gmra.mrb[4].mxu0 %v5792_v56  ;;  %4162 = vmatprep.mubr.f32.mxu1 %v5789_v55  ;;  %v5943_v47 = vsel %vm594_vm1, %v625_v17, %v626_v19  ;;  %v5947_v50 = vsel %vm411_vm0, %v5914_v60, %v433_v1  ;;  %v630_v2 = vrot.slane %v5931_v39, 1  ;;  %v5951_v4 = vsel %vm411_vm0, %v433_v1, 0.0  ;;  %v252_v55 = vld [vmem:[%s5564_s22 + $0x80] sm:$0xff]  ;;  %v254_v60 = vld [vmem:[%s5564_s22 + $0x90] sm:$0xff] }
  0x3a   : > { %7271 = vst [vmem:[#allocation25_spill] sm:$0xff] %v5943_v47  ;;  %5012 = vmatpush3.bf16.msra.mxu0 %v5722_v3  ;;  %4482 = vmatprep.mubr.f32.mxu0 %v5860_v15  ;;  %v631_v17 = vrot.slane %v5947_v50, 1  ;;  %v633_v27 = vrot.slane %v5951_v4, 1  ;;  %v328_v1 = vadd.f32 %v5610_v52, %v289_v37  ;;  %v329_v14 = vadd.f32 %v5610_v52, %v290_v25  ;;  %v3605_v41 = vld [vmem:[%s7137_s3 + $0x300] sm:$0xff] }
  0x3b   : > { %5014 = vmatprep.subr.bf16.mxu0 %v5769_v34  ;;  %4884 = vmatpush3.bf16.msra.mxu1 %v5799_v13  ;;  %v5970_v9 = vsel %vm594_vm1, %v626_v19, %v628_v53  ;;  %v5972_v3 = vpack.c.bf16 %v3604_v62, %v3603_v57  ;;  %v5977_v18 = vsel %vm1174_vm2, %v7273_v29, %v1181_v54  ;;  %v7274_v13 = vrot.slane %v5694_v42, 2  ;;  %v3606_v29 = vld [vmem:[%s7137_s3 + $0x308] sm:$0xff] }
  0x3c   : > { %7272 = vst [vmem:[#allocation26_spill] sm:$0xff] %v5970_v9  ;;  %4163 = vmatmul.mubr.f32.gmra.mrb[6].mxu1 %v5792_v56  ;;  %4886 = vmatprep.subr.bf16.mxu1 %v5903_v46  ;;  %v360_v37 = vmax.f32 %v328_v1, 0.0  ;;  %v361_v25 = vmax.f32 %v329_v14, 0.0  ;;  %v4889_v36 = vpack.c.bf16 %v555_v44, %v554_v49  ;;  %v5996_v14 = vsel %vm594_vm1, %v630_v2, %v631_v17  ;;  %v255_v2 = vld [vmem:[%s5564_s22 + $0x98] sm:$0xff] }
  0x3d   : > { %v5985_v19 = vsel %vm1174_vm2, %v1181_v54, %v7274_v13  ;;  %4483 = vmatmul.mubr.f32.gmra.mrb[6].mxu0 %v5882_v31  ;;  %4165 = vmatprep.mubr.f32.mxu1 %v5860_v15  ;;  %7276 = vst [vmem:[#allocation28_spill] sm:$0xff] %v5996_v14  ;;  %v291_v44 = vmul.f32 %v5605_v51, %v252_v55  ;;  %v1185_v55 = vrot.slane %v5714_v58, 2  ;;  %v556_v58 = vld [vmem:[%s7137_s3 + $0x50] sm:$0xff]  ;;  %v557_v1 = vld [vmem:[%s7137_s3 + $0x58] sm:$0xff] }
  0x3e   : > { %7275 = vst [vmem:[#allocation27_spill] sm:$0xff] %v5985_v19  ;;  %v292_v49 = vmul.f32 %v5605_v51, %v253_v61  ;;  %5016 = vmatpush3.bf16.msra.mxu0 %v5769_v34  ;;  %4485 = vmatprep.mubr.f32.mxu0 %v5923_v0  ;;  %v6003_v42 = vsel %vm594_vm1, %v631_v17, %v633_v27  ;;  %v6005_v53 = vrot.slane %v360_v37, 7  ;;  %v436_v57 = vrot.slane %v361_v25, 7 }
  0x3f   : > { %7277 = vst [vmem:[#allocation29_spill] sm:$0xff] %v6003_v42  ;;  %v293_v62 = vmul.f32 %v5605_v51, %v254_v60  ;;  %5018 = vmatprep.subr.bf16.mxu0 %v5842_v20  ;;  %4888 = vmatpush3.bf16.msra.mxu1 %v5903_v46  ;;  %v6010_v54 = vpack.c.bf16 %v3606_v29, %v3605_v41  ;;  %v1186_v17 = vrot.slane %v5729_v5, 2  ;;  %v1188_v41 = vrot.slane %v5732_v6, 2 }
  0x40   : > { %7278 = vst [vmem:[#allocation30_spill] sm:$0xff] %v6005_v53  ;;  %v330_v61 = vadd.f32 %v5610_v52, %v291_v44  ;;  %v331_v34 = vadd.f32 %v5610_v52, %v292_v49  ;;  %4166 = vmatmul.mubr.f32.gmra.mrb[8].mxu1 %v5882_v31  ;;  %v6019_v27 = vsel %vm411_vm0, %v6005_v53, %v436_v57  ;;  %v6023_v60 = vsel %vm411_vm0, 0.0, %v6005_v53  ;;  %v256_v31 = vld [vmem:[%s5564_s22 + $0xa0] sm:$0xff] }
  0x41   : > { %7279 = vst [vmem:[#allocation31_spill] sm:$0xff] %v6019_v27  ;;  %v6026_v46 = vsel %vm411_vm0, %v436_v57, 0.0  ;;  %4890 = vmatprep.subr.bf16.mxu1 %v4889_v36  ;;  %4486 = vmatmul.mubr.f32.gmra.mrb[8].mxu0 %v5927_v38  ;;  %v635_v37 = vrot.slane %v6023_v60, 1  ;;  %v636_v25 = vrot.slane %v6019_v27, 1  ;;  %v294_v49 = vmul.f32 %v5605_v51, %v255_v2  ;;  %v558_v53 = vld [vmem:[%s7137_s3 + $0x60] sm:$0xff] }
  0x42   : > { %4168 = vmatprep.mubr.f32.mxu1 %v5923_v0  ;;  %v362_v13 = vmax.f32 %v330_v61, 0.0  ;;  %5020 = vmatpush3.bf16.msra.mxu0 %v5842_v20  ;;  %v638_v29 = vrot.slane %v6026_v46, 1  ;;  %v363_v44 = vmax.f32 %v331_v34, 0.0  ;;  %v332_v57 = vadd.f32 %v5610_v52, %v293_v62 }
  0x43   : > { %4488 = vmatprep.mubr.f32.mxu0 %v5943_v47  ;;  %5022 = vmatprep.subr.bf16.mxu0 %v5844_v10  ;;  %v1190_v6 = vrot.slane %v5736_v12, 2  ;;  %v1191_v20 = vrot.slane %v5758_v23, 2  ;;  %v4893_v61 = vpack.c.bf16 %v557_v1, %v556_v58  ;;  %v6053_v34 = vsel %vm1174_vm2, %v1185_v55, %v1186_v17  ;;  %v3608_v12 = vld [vmem:[%s7137_s3 + $0x318] sm:$0xff] }
  0x44   : > { %4892 = vmatpush3.bf16.msra.mxu1 %v4889_v36  ;;  %v6047_v0 = vrot.slane %v362_v13, 7  ;;  %v439_v15 = vrot.slane %v363_v44, 7  ;;  %7281 = vst [vmem:[#allocation33_spill] sm:$0xff] %v6053_v34  ;;  %v333_v62 = vadd.f32 %v5610_v52, %v294_v49  ;;  %v364_v2 = vmax.f32 %v332_v57, 0.0  ;;  %v3607_v36 = vld [vmem:[%s7137_s3 + $0x310] sm:$0xff]  ;;  %v257_v13 = vld [vmem:[%s5564_s22 + $0xa8] sm:$0xff] }
  0x45   : > { %4169 = vmatmul.mubr.f32.gmra.mrb[10].mxu1 %v5927_v38  ;;  %4489 = vmatmul.mubr.f32.gmra.mrb[10].mxu0 %v5970_v9  ;;  %v6065_v58 = vsel %vm594_vm1, %v635_v37, %v636_v25  ;;  %v6072_v1 = vsel %vm1174_vm2, %v1186_v17, %v1188_v41  ;;  %v295_v44 = vmul.f32 %v5605_v51, %v256_v31  ;;  %v1193_v31 = vrot.slane %v5761_v24, 2 }
  0x46   : > { %7280 = vst [vmem:[#allocation32_spill] sm:$0xff] %v6047_v0  ;;  %4171 = vmatprep.mubr.f32.mxu1 %v5943_v47  ;;  %7282 = vst [vmem:[#allocation34_spill] sm:$0xff] %v6065_v58  ;;  %v6069_v55 = vsel %vm411_vm0, 0.0, %v6047_v0  ;;  %5024 = vmatpush3.bf16.msra.mxu0 %v5844_v10  ;;  %v6079_v49 = vsel %vm594_vm1, %v636_v25, %v638_v29  ;;  %v6083_v37 = vsel %vm411_vm0, %v6047_v0, %v439_v15 }
  0x47   : > { %4491 = vmatprep.mubr.f32.mxu0 %v5996_v14  ;;  %7283 = vst [vmem:[#allocation35_spill] sm:$0xff] %v6079_v49  ;;  %v6086_v57 = vsel %vm411_vm0, %v439_v15, 0.0  ;;  %v365_v47 = vmax.f32 %v333_v62, 0.0  ;;  %5026 = vmatprep.subr.bf16.mxu0 %v5905_v16  ;;  %v6089_v17 = vrot.slane %v364_v2, 7  ;;  %v6092_v10 = vsel %vm1174_vm2, %v1190_v6, %v1191_v20 }
  0x48   : > { %7285 = vst [vmem:[#allocation37_spill] sm:$0xff] %v6092_v10  ;;  %4894 = vmatprep.subr.bf16.mxu1 %v4893_v61  ;;  %v6095_v25 = vpack.c.bf16 %v3608_v12, %v3607_v36  ;;  %v640_v15 = vrot.slane %v6069_v55, 1  ;;  %v296_v29 = vmul.f32 %v5605_v51, %v257_v13  ;;  %v334_v62 = vadd.f32 %v5610_v52, %v295_v44  ;;  %v258_v12 = vld [vmem:[%s5564_s22 + $0xb0] sm:$0xff] }
  0x49   : > { %7284 = vst [vmem:[#allocation36_spill] sm:$0xff] %v6089_v17  ;;  %4172 = vmatmul.mubr.f32.gmra.mrb[12].mxu1 %v5970_v9  ;;  %v442_v41 = vrot.slane %v365_v47, 7  ;;  %4492 = vmatmul.mubr.f32.gmra.mrb[12].mxu0 %v6003_v42  ;;  %v641_v6 = vrot.slane %v6083_v37, 1  ;;  %v643_v2 = vrot.slane %v6086_v57, 1  ;;  %v6107_v24 = vsel %vm411_vm0, 0.0, %v6089_v17  ;;  %v259_v47 = vld [vmem:[%s5564_s22 + $0xb8] sm:$0xff] }
  0x4a   : > { %4174 = vmatprep.mubr.f32.mxu1 %v5996_v14  ;;  %v1195_v36 = vrot.slane %v5818_v28, 2  ;;  %5028 = vmatpush3.bf16.msra.mxu0 %v5905_v16  ;;  %v335_v14 = vadd.f32 %v5610_v52, %v296_v29  ;;  %v1196_v9 = vrot.slane %v5814_v21, 2  ;;  %v645_v28 = vrot.slane %v6107_v24, 1 }
  0x4b   : > { %4494 = vmatprep.mubr.f32.mxu0 %v6065_v58  ;;  %v6116_v13 = vsel %vm411_vm0, %v6089_v17, %v442_v41  ;;  %v6119_v44 = vsel %vm411_vm0, %v442_v41, 0.0  ;;  %5030 = vmatprep.subr.bf16.mxu0 %v5972_v3  ;;  %v366_v56 = vmax.f32 %v334_v62, 0.0  ;;  %v6129_v17 = vsel %vm1174_vm2, %v1191_v20, %v1193_v31 }
  0x4c   : > { %v646_v38 = vrot.slane %v6116_v13, 1  ;;  %v648_v16 = vrot.slane %v6119_v44, 1  ;;  %4896 = vmatpush3.bf16.msra.mxu1 %v4893_v61  ;;  %7286 = vst [vmem:[#allocation38_spill] sm:$0xff] %v6129_v17  ;;  %v367_v41 = vmax.f32 %v335_v14, 0.0  ;;  %v297_v29 = vmul.f32 %v5605_v51, %v258_v12 }
  0x4d   : > { %4175 = vmatmul.mubr.f32.gmra.mrb[14].mxu1 %v6003_v42  ;;  %v298_v0 = vmul.f32 %v5605_v51, %v259_v47  ;;  %4495 = vmatmul.mubr.f32.gmra.mrb[14].mxu0 %v6079_v49  ;;  %v6142_v20 = vsel %vm594_vm1, %v640_v15, %v641_v6  ;;  %v6145_v14 = vsel %vm594_vm1, %v641_v6, %v643_v2  ;;  %v6147_v61 = vrot.slane %v366_v56, 7  ;;  %v260_v2 = vld [vmem:[%s5564_s22 + $0xc0] sm:$0xff] }
  0x4e   : > { %4177 = vmatprep.mubr.f32.mxu1 %v6065_v58  ;;  %7287 = vst [vmem:[#allocation39_spill] sm:$0xff] %v6142_v20  ;;  %7288 = vst [vmem:[#allocation40_spill] sm:$0xff] %v6145_v14  ;;  %v1198_v31 = vrot.slane %v5821_v32, 2  ;;  %5032 = vmatpush3.bf16.msra.mxu0 %v5972_v3  ;;  %v445_v62 = vrot.slane %v367_v41, 7  ;;  %v6153_v12 = vsel %vm1174_vm2, %v1195_v36, %v1196_v9  ;;  %v1200_v41 = vrot.slane %v5851_v7, 2 }
  0x4f   : > { %4553 = vmatprep.mubr.f32.mxu0 %v5977_v18  ;;  %7289 = vst [vmem:[#allocation41_spill] sm:$0xff] %v6153_v12  ;;  %v336_v47 = vadd.f32 %v5610_v52, %v297_v29  ;;  %v337_v15 = vadd.f32 %v5610_v52, %v298_v0  ;;  %5034 = vmatprep.subr.bf16.mxu0 %v6010_v54  ;;  %v6166_v3 = vsel %vm411_vm0, 0.0, %v6147_v61 }
  0x50   : > { %v6159_v56 = vsel %vm594_vm1, %v645_v28, %v646_v38  ;;  %v6162_v32 = vsel %vm594_vm1, %v646_v38, %v648_v16  ;;  %v4897_v6 = vpack.c.bf16 %v559_v48, %v558_v53  ;;  %v6172_v36 = vsel %vm411_vm0, %v6147_v61, %v445_v62  ;;  %v3609_v38 = vld [vmem:[%s7137_s3 + $0x320] sm:$0xff]  ;;  %v3610_v48 = vld [vmem:[%s7137_s3 + $0x328] sm:$0xff] }
  0x51   : > { %7290 = vst [vmem:[#allocation42_spill] sm:$0xff] %v6159_v56  ;;  %7291 = vst [vmem:[#allocation43_spill] sm:$0xff] %v6162_v32  ;;  %4178 = vmatmul.mubr.f32.gmra.mrb[16].mxu1 %v6079_v49  ;;  %v6175_v0 = vsel %vm411_vm0, %v445_v62, 0.0  ;;  %v368_v28 = vmax.f32 %v336_v47, 0.0  ;;  %v261_v53 = vld [vmem:[%s5564_s22 + $0xc8] sm:$0xff]  ;;  %4554 = vmatmul.mubr.f32.vlgmr.msra.gmra.mrb[0].mxu0 %v5985_v19  ;;  %v650_v16 = vrot.slane %v6166_v3, 1  ;;  %v6190_v62 = vsel %vm1174_vm2, %v1196_v9, %v1198_v31 }
  0x52   : > { %4180 = vmatprep.mubr.f32.mxu1 %v6142_v20  ;;  %v651_v29 = vrot.slane %v6172_v36, 1  ;;  %7292 = vst [vmem:[#allocation44_spill] sm:$0xff] %v6190_v62  ;;  %v369_v7 = vmax.f32 %v337_v15, 0.0  ;;  %5036 = vmatpush3.bf16.msra.mxu0 %v6010_v54  ;;  %v1201_v49 = vrot.slane %v5864_v11, 2  ;;  %v1203_v20 = vrot.slane %v5867_v33, 2  ;;  %v263_v19 = vld [vmem:[%s5564_s22 + $0xd8] sm:$0xff] }
  0x53   : > { %4556 = vmatprep.mubr.f32.mxu0 %v6053_v34  ;;  %v6194_v47 = vrot.slane %v368_v28, 7  ;;  %v299_v58 = vmul.f32 %v5605_v51, %v260_v2  ;;  %5038 = vmatprep.subr.bf16.mxu0 %v6095_v25  ;;  %v653_v9 = vrot.slane %v6175_v0, 1  ;;  %v5041_v15 = vpack.c.bf16 %v3610_v48, %v3609_v38  ;;  %v262_v34 = vld [vmem:[%s5564_s22 + $0xd0] sm:$0xff] }
  0x54   : > { %v448_v31 = vrot.slane %v369_v7, 7  ;;  %4898 = vmatprep.subr.bf16.mxu1 %v4897_v6  ;;  %v300_v54 = vmul.f32 %v5605_v51, %v261_v53  ;;  %v1205_v33 = vrot.slane %v5901_v22, 2  ;;  %v6215_v38 = vsel %vm594_vm1, %v650_v16, %v651_v29 }
  0x55   : > { %4181 = vmatmul.mubr.f32.gmra.mrb[18].mxu1 %v6145_v14  ;;  %v6205_v28 = vsel %vm411_vm0, 0.0, %v6194_v47  ;;  %v338_v42 = vadd.f32 %v5610_v52, %v299_v58  ;;  %4557 = vmatmul.mubr.f32.gmra.mrb[2].mxu0 %v6072_v1  ;;  %7293 = vst [vmem:[#allocation45_spill] sm:$0xff] %v6215_v38  ;;  %v301_v14 = vmul.f32 %v5605_v51, %v262_v34 }
  0x56   : > { %4183 = vmatprep.mubr.f32.mxu1 %v6159_v56  ;;  %v6219_v48 = vsel %vm411_vm0, %v6194_v47, %v448_v31  ;;  %v6222_v53 = vsel %vm411_vm0, %v448_v31, 0.0  ;;  %v339_v22 = vadd.f32 %v5610_v52, %v300_v54  ;;  %4559 = vmatprep.mubr.f32.mxu0 %v6092_v10  ;;  %v655_v58 = vrot.slane %v6205_v28, 1  ;;  %v561_v10 = vld [vmem:[%s7137_s3 + $0x78] sm:$0xff] }
  0x57   : > { %5040 = vmatpush3.bf16.msra.mxu0 %v6095_v25  ;;  %v656_v7 = vrot.slane %v6219_v48, 1  ;;  %v658_v16 = vrot.slane %v6222_v53, 1  ;;  %v370_v2 = vmax.f32 %v338_v42, 0.0  ;;  %v6231_v56 = vsel %vm1174_vm2, %v1200_v41, %v1201_v49  ;;  %4900 = vmatpush3.bf16.msra.mxu1 %v4897_v6  ;;  %v560_v25 = vld [vmem:[%s7137_s3 + $0x70] sm:$0xff] }
  0x58   : > { %5042 = vmatprep.subr.bf16.mxu0 %v5041_v15  ;;  %v371_v31 = vmax.f32 %v339_v22, 0.0  ;;  %v302_v54 = vmul.f32 %v5605_v51, %v263_v19  ;;  %v6243_v42 = vsel %vm594_vm1, %v651_v29, %v653_v9  ;;  %v6246_v6 = vsel %vm1174_vm2, %v1201_v49, %v1203_v20 }
  0x59   : > { %4184 = vmatmul.mubr.f32.gmra.mrb[20].mxu1 %v6162_v32  ;;  %7294 = vst [vmem:[#allocation46_spill] sm:$0xff] %v6243_v42  ;;  %v6248_v41 = vrot.slane %v370_v2, 7  ;;  %v7295_v19 = vrot.slane %v5897_v45, 2  ;;  %4560 = vmatmul.mubr.f32.gmra.mrb[4].mxu0 %v6129_v17  ;;  %v1208_v32 = vrot.slane %v5912_v35, 2  ;;  %v340_v29 = vadd.f32 %v5610_v52, %v301_v14  ;;  %v3611_v35 = vld [vmem:[%s7137_s3 + $0x330] sm:$0xff]  ;;  %v3612_v14 = vld [vmem:[%s7137_s3 + $0x338] sm:$0xff] }
  0x5a   : > { %4186 = vmatprep.mubr.f32.mxu1 %v6215_v38  ;;  %v451_v22 = vrot.slane %v371_v31, 7  ;;  %v341_v49 = vadd.f32 %v5610_v52, %v302_v54  ;;  %4562 = vmatprep.mubr.f32.mxu0 %v6153_v12  ;;  %v6262_v20 = vsel %vm594_vm1, %v655_v58, %v656_v7  ;;  %v6265_v9 = vsel %vm594_vm1, %v656_v7, %v658_v16  ;;  %v264_v31 = vld [vmem:[%s5564_s22 + $0xe0] sm:$0xff] }
  0x5b   : > { %v6253_v34 = vsel %vm1174_vm2, %v1205_v33, %v7295_v19  ;;  %7297 = vst [vmem:[#allocation48_spill] sm:$0xff] %v6262_v20  ;;  %7298 = vst [vmem:[#allocation49_spill] sm:$0xff] %v6265_v9  ;;  %5044 = vmatpush3.bf16.msra.mxu0 %v5041_v15  ;;  %v6269_v33 = vsel %vm411_vm0, 0.0, %v6248_v41  ;;  %v4901_v2 = vpack.c.bf16 %v561_v10, %v560_v25  ;;  %v372_v16 = vmax.f32 %v340_v29, 0.0  ;;  %v265_v10 = vld [vmem:[%s5564_s22 + $0xe8] sm:$0xff] }
  0x5c   : > { %7296 = vst [vmem:[#allocation47_spill] sm:$0xff] %v6253_v34  ;;  %v6280_v58 = vsel %vm411_vm0, %v6248_v41, %v451_v22  ;;  %v660_v15 = vrot.slane %v6269_v33, 1  ;;  %v6284_v7 = vsel %vm411_vm0, %v451_v22, 0.0  ;;  %v373_v19 = vmax.f32 %v341_v49, 0.0 }
  0x5d   : > { %4187 = vmatmul.mubr.f32.gmra.mrb[22].mxu1 %v6243_v42  ;;  %v661_v54 = vrot.slane %v6280_v58, 1  ;;  %v663_v25 = vrot.slane %v6284_v7, 1  ;;  %v1210_v38 = vrot.slane %v5931_v39, 2  ;;  %4902 = vmatprep.subr.bf16.mxu1 %v4901_v2  ;;  %v6293_v12 = vrot.slane %v372_v16, 7 }
  0x5e   : > { %4563 = vmatmul.mubr.f32.gmra.mrb[6].mxu0 %v6190_v62  ;;  %4189 = vmatprep.mubr.f32.mxu1 %v6262_v20  ;;  %v1211_v22 = vrot.slane %v5947_v50, 2  ;;  %v5045_v29 = vpack.c.bf16 %v3612_v14, %v3611_v35  ;;  %v303_v17 = vmul.f32 %v5605_v51, %v264_v31  ;;  %v454_v49 = vrot.slane %v373_v19, 7 }
  0x5f   : > { %7299 = vst [vmem:[#allocation50_spill] sm:$0xff] %v6293_v12  ;;  %4565 = vmatprep.mubr.f32.mxu0 %v6231_v56  ;;  %v6299_v42 = vsel %vm594_vm1, %v660_v15, %v661_v54  ;;  %v1213_v39 = vrot.slane %v5951_v4, 2  ;;  %4904 = vmatpush3.bf16.msra.mxu1 %v4901_v2  ;;  %v304_v62 = vmul.f32 %v5605_v51, %v265_v10  ;;  %v6308_v16 = vsel %vm411_vm0, 0.0, %v6293_v12 }
  0x60   : > { %7300 = vst [vmem:[#allocation51_spill] sm:$0xff] %v6299_v42  ;;  %v6304_v20 = vsel %vm594_vm1, %v661_v54, %v663_v25  ;;  %5046 = vmatprep.subr.bf16.mxu0 %v5045_v29  ;;  %v342_v35 = vadd.f32 %v5610_v52, %v303_v17  ;;  %v1215_v14 = vrot.slane %v6023_v60, 2  ;;  %v6315_v4 = vsel %vm411_vm0, %v6293_v12, %v454_v49  ;;  %v3509_v17 = vld [vmem:[%s7137_s3 + $0x100] sm:$0xff]  ;;  %v3510_v60 = vld [vmem:[%s7137_s3 + $0x108] sm:$0xff] }
  0x61   : > { %7301 = vst [vmem:[#allocation52_spill] sm:$0xff] %v6304_v20  ;;  %4190 = vmatmul.mubr.f32.gmra.mrb[24].mxu1 %v6265_v9  ;;  %7302 = vst [vmem:[#allocation53_spill] sm:$0xff] %v6315_v4  ;;  %v665_v51 = vrot.slane %v6308_v16, 1  ;;  %v6319_v2 = vsel %vm411_vm0, %v454_v49, 0.0  ;;  %5048 = vmatpush3.bf16.msra.mxu0 %v5045_v29  ;;  %v343_v31 = vadd.f32 %v5610_v52, %v304_v62  ;;  %v666_v15 = vrot.slane %v6315_v4, 1  ;;  %v3613_v29 = vld [vmem:[%s7137_s3 + $0x340] sm:$0xff] }
  0x62   : > { %4566 = vmatmul.mubr.f32.gmra.mrb[8].mxu0 %v6246_v6  ;;  %4192 = vmatprep.mubr.f32.mxu1 %v6299_v42  ;;  %v668_v10 = vrot.slane %v6319_v2, 1  ;;  %v374_v54 = vmax.f32 %v342_v35, 0.0  ;;  %v1216_v25 = vrot.slane %v6019_v27, 2  ;;  %v7303_v52 = vrot.slane %v5897_v45, 2  ;;  %v3614_v49 = vld [vmem:[%s7137_s3 + $0x348] sm:$0xff] }
  0x63   : > { %4568 = vmatprep.mubr.f32.mxu0 %v6253_v34  ;;  %v375_v19 = vmax.f32 %v343_v31, 0.0  ;;  %v6346_v35 = vsel %vm594_vm1, %v665_v51, %v666_v15  ;;  %v6349_v42 = vsel %vm1174_vm2, %v1210_v38, %v1211_v22  ;;  %v6353_v34 = vpack.c.bf16 %v3510_v60, %v3509_v17 }
  0x64   : > { %v6337_v62 = vsel %vm1174_vm2, %v7303_v52, %v1208_v32  ;;  %7304 = vst [vmem:[#allocation54_spill] sm:$0xff] %v6346_v35  ;;  %7305 = vst [vmem:[#allocation55_spill] sm:$0xff] %v6349_v42  ;;  %v6351_v9 = vrot.slane %v374_v54, 7  ;;  %v6357_v32 = vsel %vm1174_vm2, %v1211_v22, %v1213_v39  ;;  %v6362_v51 = vsel %vm594_vm1, %v666_v15, %v668_v10  ;;  %v3616_v10 = vld [vmem:[%s7137_s3 + $0x358] sm:$0xff] }
  0x65   : > { %4193 = vmatmul.mubr.f32.gmra.mrb[26].mxu1 %v6304_v20  ;;  %7307 = vst [vmem:[#allocation57_spill] sm:$0xff] %v6357_v32  ;;  %v457_v31 = vrot.slane %v375_v19, 7  ;;  %7308 = vst [vmem:[#allocation58_spill] sm:$0xff] %v6362_v51  ;;  %v6369_v17 = vsel %vm1174_vm2, %v1215_v14, %v1216_v25  ;;  %v5049_v60 = vpack.c.bf16 %v3614_v49, %v3613_v29  ;;  %v1218_v15 = vrot.slane %v6026_v46, 2  ;;  %v3615_v14 = vld [vmem:[%s7137_s3 + $0x350] sm:$0xff]  ;;  %v3617_v20 = vld [vmem:[%s7137_s3 + $0x360] sm:$0xff] }
  0x66   : > { %7306 = vst [vmem:[#allocation56_spill] sm:$0xff] %v6351_v9  ;;  %4569 = vmatmul.mubr.f32.gmra.mrb[10].mxu0 %v6337_v62  ;;  %4195 = vmatprep.mubr.f32.mxu1 %v6346_v35  ;;  %v6366_v38 = vsel %vm411_vm0, 0.0, %v6351_v9  ;;  %7309 = vst [vmem:[#allocation59_spill] sm:$0xff] %v6369_v17  ;;  %v1220_v29 = vrot.slane %v6069_v55, 2  ;;  %v1221_v49 = vrot.slane %v6083_v37, 2  ;;  %v5053_v35 = vpack.c.bf16 %v3616_v10, %v3615_v14  ;;  %v3618_v55 = vld [vmem:[%s7137_s3 + $0x368] sm:$0xff] }
  0x67   : > { %4571 = vmatprep.mubr.f32.mxu0 %v6349_v42  ;;  %v6374_v22 = vsel %vm411_vm0, %v6351_v9, %v457_v31  ;;  %v670_v39 = vrot.slane %v6366_v38, 1  ;;  %v6378_v54 = vsel %vm411_vm0, %v457_v31, 0.0  ;;  %4906 = vmatprep.subr.bf16.mxu1 %v6353_v34  ;;  %v1223_v14 = vrot.slane %v6086_v57, 2 }
  0x68   : > { %7310 = vst [vmem:[#allocation60_spill] sm:$0xff] %v6374_v22  ;;  %v671_v52 = vrot.slane %v6374_v22, 1  ;;  %v673_v19 = vrot.slane %v6378_v54, 1  ;;  %5050 = vmatprep.subr.bf16.mxu0 %v5049_v60  ;;  %v6418_v10 = vsel %vm1174_vm2, %v1220_v29, %v1221_v49  ;;  %v5057_v57 = vpack.c.bf16 %v3618_v55, %v3617_v20  ;;  %v3619_v29 = vld [vmem:[%s7137_s3 + $0x370] sm:$0xff] }
  0x69   : > { %4196 = vmatmul.mubr.f32.gmra.mrb[28].mxu1 %v6362_v51  ;;  %5052 = vmatpush3.bf16.msra.mxu0 %v5049_v60  ;;  %v6409_v60 = vsel %vm1174_vm2, %v1216_v25, %v1218_v15  ;;  %v3511_v25 = vld [vmem:[%s7137_s3 + $0x110] sm:$0xff]  ;;  %v3512_v15 = vld [vmem:[%s7137_s3 + $0x118] sm:$0xff]  ;;  %v6443_v20 = vsel %vm1174_vm2, %v1221_v49, %v1223_v14  ;;  %v1230_v55 = vrot.slane %v6166_v3, 2  ;;  %v1231_v51 = vrot.slane %v6172_v36, 2  ;;  %v5410_v3 = vld [vmem:[%s7135_s1] ss:$0 sm:$0xff] }
  0x6a   : > { %4572 = vmatmul.mubr.f32.gmra.mrb[12].mxu0 %v6357_v32  ;;  %v6395_v46 = vsel %vm594_vm1, %v670_v39, %v671_v52  ;;  %v6398_v31 = vsel %vm594_vm1, %v671_v52, %v673_v19  ;;  %7313 = vst [vmem:[#allocation63_spill] sm:$0xff] %v6409_v60  ;;  %v1225_v52 = vrot.slane %v6107_v24, 2  ;;  %v1226_v19 = vrot.slane %v6116_v13, 2  ;;  %5054 = vmatprep.subr.bf16.mxu0 %v5053_v35  ;;  %v3620_v24 = vld [vmem:[%s7137_s3 + $0x378] sm:$0xff]  ;;  %v3513_v32 = vld [vmem:[%s7137_s3 + $0x120] sm:$0xff] }
  0x6b   : > { %7311 = vst [vmem:[#allocation61_spill] sm:$0xff] %v6395_v46  ;;  %7312 = vst [vmem:[#allocation62_spill] sm:$0xff] %v6398_v31  ;;  %4198 = vmatprep.mubr.f32.mxu1 %v6395_v46  ;;  %4574 = vmatprep.mubr.f32.mxu0 %v6369_v17  ;;  %v267_v46 = vld [vmem:[%s5564_s22 + $0xf8] sm:$0xff]  ;;  %v4909_v17 = vpack.c.bf16 %v3512_v15, %v3511_v25  ;;  %v5061_v42 = vpack.c.bf16 %v3620_v24, %v3619_v29  ;;  %v3654_v25 = vld [vmem:[%s7137_s3 + $0x388] sm:$0xff]  ;;  %v1178_v15 = vrot.slane %v5532_v26, 2 }
  0x6c   : > { %v306_v14 = vmul.f32 %v5410_v3, %v267_v46  ;;  %v1233_v26 = vrot.slane %v6175_v0, 2  ;;  %v1235_v29 = vrot.slane %v6205_v28, 2  ;;  %v5411_v0 = vld [vmem:[%s7136_s2] ss:$0 sm:$0xff] }
  0x6d   : > { %4199 = vmatmul.mubr.f32.gmra.mrb[30].mxu1 %v6398_v31  ;;  %5056 = vmatpush3.bf16.msra.mxu0 %v5053_v35  ;;  %v266_v31 = vld [vmem:[%s5564_s22 + $0xf0] sm:$0xff]  ;;  %v1228_v35 = vrot.slane %v6119_v44, 2  ;;  %v3514_v44 = vld [vmem:[%s7137_s3 + $0x128] sm:$0xff] }
  0x6e   : > { %4575 = vmatmul.mubr.f32.gmra.mrb[14].mxu0 %v6409_v60  ;;  %4233 = vmatprep.mubr.msk.f32.mxu1 %vm6412_vm3, %v5477_v8  ;;  %v6449_v60 = vsel %vm1174_vm2, %v1225_v52, %v1226_v19  ;;  %v305_v49 = vmul.f32 %v5410_v3, %v266_v31  ;;  %v3653_v52 = vld [vmem:[%s7137_s3 + $0x380] sm:$0xff]  ;;  %v6479_v31 = vsel %vm1174_vm2, %v1230_v55, %v1231_v51 }
  0x6f   : > { %4577 = vmatprep.mubr.f32.mxu0 %v6418_v10  ;;  %5058 = vmatprep.subr.bf16.mxu0 %v5057_v57  ;;  %v6476_v46 = vsel %vm1174_vm2, %v1226_v19, %v1228_v35  ;;  %v4913_v24 = vpack.c.bf16 %v3514_v44, %v3513_v32  ;;  %v6484_v3 = vpack.c.bf16 %v3654_v25, %v3653_v52  ;;  %v3515_v19 = vld [vmem:[%s7137_s3 + $0x130] sm:$0xff]  ;;  %v3516_v35 = vld [vmem:[%s7137_s3 + $0x138] sm:$0xff]  ;;  %v1238_v44 = vrot.slane %v6222_v53, 2  ;;  %v3518_v53 = vld [vmem:[%s7137_s3 + $0x148] sm:$0xff] }
  0x70   : > { %v344_v28 = vadd.f32 %v5411_v0, %v305_v49  ;;  %v345_v32 = vadd.f32 %v5411_v0, %v306_v14  ;;  %v1240_v14 = vrot.slane %v6269_v33, 2  ;;  %v1241_v52 = vrot.slane %v6280_v58, 2 }
  0x71   : > { %4234 = vmatmul.mubr.f32.vlgmr.msra.gmra.mrb[0].mxu1 %v5477_v8  ;;  %5060 = vmatpush3.bf16.msra.mxu0 %v5057_v57  ;;  %v7234_v57 = vrot.slane %v5477_v8, 2  ;;  %v4917_v25 = vpack.c.bf16 %v3516_v35, %v3515_v19  ;;  %v1246_v19 = vrot.slane %v6315_v4, 2 }
  0x72   : > { %4578 = vmatmul.mubr.f32.gmra.mrb[16].mxu0 %v6443_v20  ;;  %4908 = vmatpush3.bf16.msra.mxu1 %v6353_v34  ;;  %v1236_v34 = vrot.slane %v6219_v48, 2  ;;  %v377_v0 = vmax.f32 %v345_v32, 0.0 }
  0x73   : > { %4236 = vmatprep.mubr.msk.f32.mxu1 %vm6412_vm3, %v5677_v30  ;;  %4580 = vmatprep.mubr.f32.mxu0 %v6449_v60  ;;  %v6503_v55 = vsel %vm1174_vm2, %v7234_v57, %v1178_v15  ;;  %v376_v15 = vmax.f32 %v344_v28, 0.0 }
  0x74   : > { %4910 = vmatprep.subr.bf16.mxu1 %v4909_v17  ;;  %5062 = vmatprep.subr.bf16.mxu0 %v5061_v42  ;;  %7316 = vst [vmem:[#allocation64_spill] sm:$0xff] %v6503_v55  ;;  %v6511_v49 = vsel %vm1174_vm2, %v1235_v29, %v1236_v34  ;;  %v6529_v33 = vsel %vm1174_vm2, %v1236_v34, %v1238_v44  ;;  %v1245_v29 = vrot.slane %v6308_v16, 2  ;;  %v460_v32 = vrot.slane %v377_v0, 7  ;;  %v3519_v34 = vld [vmem:[%s7137_s3 + $0x150] sm:$0xff] }
  0x75   : > { %4237 = vmatmul.mubr.f32.gmra.mrb[2].mxu1 %v5687_v40  ;;  %5064 = vmatpush3.bf16.msra.mxu0 %v5061_v42  ;;  %v6507_v42 = vsel %vm1174_vm2, %v1231_v51, %v1233_v26  ;;  %v3517_v51 = vld [vmem:[%s7137_s3 + $0x140] sm:$0xff]  ;;  %v6533_v26 = vsel %vm1174_vm2, %v1240_v14, %v1241_v52  ;;  %v6538_v28 = vrot.slane %v376_v15, 7  ;;  %v1250_v44 = vrot.slane %v6366_v38, 2  ;;  %v3522_v38 = vld [vmem:[%s7137_s3 + $0x168] sm:$0xff] }
  0x76   : > { %4581 = vmatmul.mubr.f32.gmra.mrb[18].mxu0 %v6476_v46  ;;  %4239 = vmatprep.mubr.msk.f32.mxu1 %vm6412_vm3, %v5696_v43  ;;  %v4921_v35 = vpack.c.bf16 %v3518_v53, %v3517_v51  ;;  %v1251_v14 = vrot.slane %v6374_v22, 2  ;;  %v6558_v15 = vsel %vm1174_vm2, %v1245_v29, %v1246_v19  ;;  %v1253_v29 = vrot.slane %v6378_v54, 2  ;;  %v3524_v54 = vld [vmem:[%s7137_s3 + $0x178] sm:$0xff] }
  0x77   : > { %4583 = vmatprep.mubr.f32.mxu0 %v6479_v31  ;;  %4912 = vmatpush3.bf16.msra.mxu1 %v4909_v17  ;;  %v1243_v17 = vrot.slane %v6284_v7, 2  ;;  %7317 = vst [vmem:[#allocation65_spill] sm:$0xff] %v6538_v28  ;;  %v3520_v7 = vld [vmem:[%s7137_s3 + $0x158] sm:$0xff]  ;;  %v6563_v51 = vsel %vm411_vm0, %v6538_v28, %v460_v32  ;;  %v6590_v57 = vsel %vm411_vm0, %v460_v32, 0.0 }
  0x78   : > { %4914 = vmatprep.subr.bf16.mxu1 %v4913_v24  ;;  %5066 = vmatprep.subr.bf16.mxu0 %v6484_v3  ;;  %v4925_v0 = vpack.c.bf16 %v3520_v7, %v3519_v34  ;;  %v2119_v7 = vrot.slane %v6563_v51, 2  ;;  %v6605_v32 = vsel %vm1174_vm2, %v1251_v14, %v1253_v29 }
  0x79   : > { %4240 = vmatmul.mubr.f32.gmra.mrb[4].mxu1 %v5729_v5  ;;  %v6552_v16 = vsel %vm1174_vm2, %v1241_v52, %v1243_v17  ;;  %v6567_v52 = vsel %vm411_vm0, 0.0, %v6538_v28  ;;  %v6584_v17 = vsel %vm1174_vm2, %v1250_v44, %v1251_v14  ;;  %v7322_v14 = vld [vmem:[#allocation22_spill] sm:$0xff] }
  0x7a   : > { %4584 = vmatmul.mubr.f32.gmra.mrb[20].mxu0 %v6507_v42  ;;  %4242 = vmatprep.mubr.msk.f32.mxu1 %vm6412_vm3, %v5716_v63  ;;  %7318 = vst [vmem:[#allocation66_spill] sm:$0xff] %v6567_v52  ;;  %v2118_v34 = vrot.slane %v6567_v52, 2  ;;  %v3526_v52 = vld [vmem:[%s7137_s3 + $0x188] sm:$0xff] }
  0x7b   : > { %4586 = vmatprep.mubr.f32.mxu0 %v6511_v49  ;;  %4916 = vmatpush3.bf16.msra.mxu1 %v4913_v24  ;;  %v1248_v24 = vrot.slane %v6319_v2, 2  ;;  %v3521_v2 = vld [vmem:[%s7137_s3 + $0x160] sm:$0xff] }
  0x7c   : > { %4918 = vmatprep.subr.bf16.mxu1 %v4917_v25  ;;  %v4929_v40 = vpack.c.bf16 %v3522_v38, %v3521_v2  ;;  %v6609_v44 = vsel %vm1174_vm2, %v2118_v34, %v2119_v7  ;;  %v3525_v38 = vld [vmem:[%s7137_s3 + $0x180] sm:$0xff]  ;;  %v3655_v34 = vld [vmem:[%s7137_s3 + $0x390] sm:$0xff] }
  0x7d   : > { %4243 = vmatmul.mubr.f32.gmra.mrb[6].mxu1 %v5758_v23  ;;  %v6581_v53 = vsel %vm1174_vm2, %v1246_v19, %v1248_v24  ;;  %v3523_v19 = vld [vmem:[%s7137_s3 + $0x170] sm:$0xff]  ;;  %v2121_v24 = vrot.slane %v6590_v57, 2  ;;  %v6626_v29 = vpack.c.bf16 %v3526_v52, %v3525_v38  ;;  %v3657_v52 = vld [vmem:[%s7137_s3 + $0x3a0] sm:$0xff] }
  0x7e   : > { %4587 = vmatmul.mubr.f32.gmra.mrb[22].mxu0 %v6529_v33  ;;  %4245 = vmatprep.mubr.msk.f32.mxu1 %vm6412_vm3, %v5795_v59  ;;  %v4933_v2 = vpack.c.bf16 %v3524_v54, %v3523_v19  ;;  %v3656_v19 = vld [vmem:[%s7137_s3 + $0x398] sm:$0xff]  ;;  %v7324_v54 = vld [vmem:[#allocation30_spill] sm:$0xff]  ;;  %v3659_v38 = vld [vmem:[%s7137_s3 + $0x3b0] sm:$0xff] }
  0x7f   : > { %4589 = vmatprep.mubr.f32.mxu0 %v6533_v26  ;;  %4920 = vmatpush3.bf16.msra.mxu1 %v4917_v25  ;;  %v7319_v25 = vld [vmem:[#allocation18_spill] sm:$0xff] }
  0x80   : > { %4922 = vmatprep.subr.bf16.mxu1 %v4921_v35  ;;  %7321 = vst [vmem:[#allocation18_spill] sm:$0xff] %v6609_v44 }
  0x81   : > { %4246 = vmatmul.mubr.f32.gmra.mrb[8].mxu1 %v5814_v21 }
  0x82   : > { %4590 = vmatmul.mubr.f32.gmra.mrb[24].mxu0 %v6552_v16  ;;  %4248 = vmatprep.mubr.msk.f32.mxu1 %vm6412_vm3, %v7319_v25 }
  0x83   : > { %4592 = vmatprep.mubr.f32.mxu0 %v6558_v15  ;;  %4924 = vmatpush3.bf16.msra.mxu1 %v4921_v35  ;;  %v7320_v35 = vld [vmem:[#allocation21_spill] sm:$0xff] }
  0x84   : > { %4926 = vmatprep.subr.bf16.mxu1 %v4925_v0 }
  0x85   : > { %4249 = vmatmul.mubr.f32.gmra.mrb[10].mxu1 %v5864_v11 }
  0x86   : > { %4593 = vmatmul.mubr.f32.gmra.mrb[26].mxu0 %v6581_v53  ;;  %4251 = vmatprep.mubr.msk.f32.mxu1 %vm6412_vm3, %v7320_v35 }
  0x87   : > { %4595 = vmatprep.mubr.f32.mxu0 %v6584_v17  ;;  %4928 = vmatpush3.bf16.msra.mxu1 %v4925_v0  ;;  %v6624_v0 = vsel %vm1174_vm2, %v2119_v7, %v2121_v24  ;;  %v3658_v7 = vld [vmem:[%s7137_s3 + $0x3a8] sm:$0xff]  ;;  %v7325_v24 = vld [vmem:[#allocation32_spill] sm:$0xff] }
  0x88   : > { %4930 = vmatprep.subr.bf16.mxu1 %v4929_v40  ;;  %7323 = vst [vmem:[#allocation21_spill] sm:$0xff] %v6624_v0 }
  0x89   : > { %4252 = vmatmul.mubr.f32.gmra.mrb[12].mxu1 %v5897_v45 }
  0x8a   : > { %4596 = vmatmul.mubr.f32.gmra.mrb[28].mxu0 %v6605_v32  ;;  %4254 = vmatprep.mubr.msk.f32.mxu1 %vm6412_vm3, %v7322_v14 }
  0x8b   : > { %4598 = vmatprep.mubr.f32.mxu0 %v6609_v44  ;;  %4932 = vmatpush3.bf16.msra.mxu1 %v4929_v40  ;;  %v5069_v40 = vpack.c.bf16 %v3656_v19, %v3655_v34  ;;  %v3660_v34 = vld [vmem:[%s7137_s3 + $0x3b8] sm:$0xff]  ;;  %v7326_v19 = vld [vmem:[#allocation36_spill] sm:$0xff]  ;;  %v3670_v44 = vld [vmem:[%s7137_s3 + $0x408] sm:$0xff] }
  0x8c   : > { %4934 = vmatprep.subr.bf16.mxu1 %v4933_v2 }
  0x8d   : > { %4255 = vmatmul.mubr.f32.gmra.mrb[14].mxu1 %v5947_v50 }
  0x8e   : > { %4599 = vmatmul.mubr.f32.gmra.mrb[30].mxu0 %v6624_v0  ;;  %4257 = vmatprep.mubr.msk.f32.mxu1 %vm6412_vm3, %v7324_v54  ;;  %v3669_v0 = vld [vmem:[%s7137_s3 + $0x400] sm:$0xff] }
  0x8f   : > { %4633 = vmatprep.mubr.msk.f32.mxu0 %vm6412_vm3, %v5696_v43  ;;  %4936 = vmatpush3.bf16.msra.mxu1 %v4933_v2  ;;  %v5073_v2 = vpack.c.bf16 %v3658_v7, %v3657_v52  ;;  %v3661_v52 = vld [vmem:[%s7137_s3 + $0x3c0] sm:$0xff]  ;;  %v3662_v7 = vld [vmem:[%s7137_s3 + $0x3c8] sm:$0xff] }
  0x90   : > { %4938 = vmatprep.subr.bf16.mxu1 %v6626_v29 }
  0x91   : > { %4258 = vmatmul.mubr.f32.gmra.mrb[16].mxu1 %v6019_v27 }
  0x92   : > { %4634 = vmatmul.mubr.f32.vlgmr.msra.gmra.mrb[0].mxu0 %v5729_v5  ;;  %4260 = vmatprep.mubr.msk.f32.mxu1 %vm6412_vm3, %v7325_v24 }
  0x93   : > { %5068 = vmatpush3.bf16.msra.mxu0 %v6484_v3  ;;  %4636 = vmatprep.mubr.msk.f32.mxu0 %vm6412_vm3, %v5716_v63  ;;  %v5077_v3 = vpack.c.bf16 %v3660_v34, %v3659_v38  ;;  %v3663_v38 = vld [vmem:[%s7137_s3 + $0x3d0] sm:$0xff]  ;;  %v3664_v34 = vld [vmem:[%s7137_s3 + $0x3d8] sm:$0xff] }
  0x94   : > { %5070 = vmatprep.subr.bf16.mxu0 %v5069_v40 }
  0x95   : > { %4261 = vmatmul.mubr.f32.gmra.mrb[18].mxu1 %v6083_v37 }
  0x96   : > { %4637 = vmatmul.mubr.f32.gmra.mrb[2].mxu0 %v5758_v23  ;;  %4263 = vmatprep.mubr.msk.f32.mxu1 %vm6412_vm3, %v7326_v19 }
  0x97   : > { %4639 = vmatprep.mubr.msk.f32.mxu0 %vm6412_vm3, %v5795_v59  ;;  %5072 = vmatpush3.bf16.msra.mxu0 %v5069_v40  ;;  %v5081_v40 = vpack.c.bf16 %v3662_v7, %v3661_v52  ;;  %v3665_v52 = vld [vmem:[%s7137_s3 + $0x3e0] sm:$0xff]  ;;  %v3666_v7 = vld [vmem:[%s7137_s3 + $0x3e8] sm:$0xff] }
  0x98   : > { %5074 = vmatprep.subr.bf16.mxu0 %v5073_v2 }
  0x99   : > { %4264 = vmatmul.mubr.f32.gmra.mrb[20].mxu1 %v6116_v13 }
  0x9a   : > { %4640 = vmatmul.mubr.f32.gmra.mrb[4].mxu0 %v5814_v21  ;;  %4266 = vmatprep.mubr.msk.f32.mxu1 %vm6412_vm3, %v6147_v61 }
  0x9b   : > { %4642 = vmatprep.mubr.msk.f32.mxu0 %vm6412_vm3, %v7319_v25  ;;  %5076 = vmatpush3.bf16.msra.mxu0 %v5073_v2  ;;  %v5085_v2 = vpack.c.bf16 %v3664_v34, %v3663_v38  ;;  %v3667_v38 = vld [vmem:[%s7137_s3 + $0x3f0] sm:$0xff]  ;;  %v3668_v34 = vld [vmem:[%s7137_s3 + $0x3f8] sm:$0xff] }
  0x9c   : > { %5078 = vmatprep.subr.bf16.mxu0 %v5077_v3 }
  0x9d   : > { %4267 = vmatmul.mubr.f32.gmra.mrb[22].mxu1 %v6172_v36 }
  0x9e   : > { %4643 = vmatmul.mubr.f32.gmra.mrb[6].mxu0 %v5864_v11  ;;  %4269 = vmatprep.mubr.msk.f32.mxu1 %vm6412_vm3, %v6194_v47 }
  0x9f   : > { %4645 = vmatprep.mubr.msk.f32.mxu0 %vm6412_vm3, %v7320_v35  ;;  %5080 = vmatpush3.bf16.msra.mxu0 %v5077_v3  ;;  %v5089_v3 = vpack.c.bf16 %v3666_v7, %v3665_v52  ;;  %v5093_v7 = vpack.c.bf16 %v3668_v34, %v3667_v38  ;;  %v6748_v34 = vpack.c.bf16 %v3670_v44, %v3669_v0  ;;  %v3529_v0 = vld [vmem:[%s7137_s3 + $0x1a0] sm:$0xff] }
  0xa0   : > { %5082 = vmatprep.subr.bf16.mxu0 %v5081_v40 }
  0xa1   : > { %4270 = vmatmul.mubr.f32.gmra.mrb[24].mxu1 %v6219_v48 }
  0xa2   : > { %4646 = vmatmul.mubr.f32.gmra.mrb[8].mxu0 %v5897_v45  ;;  %4272 = vmatprep.mubr.msk.f32.mxu1 %vm6412_vm3, %v6248_v41 }
  0xa3   : > { %4648 = vmatprep.mubr.msk.f32.mxu0 %vm6412_vm3, %v7322_v14  ;;  %5084 = vmatpush3.bf16.msra.mxu0 %v5081_v40  ;;  %v7327_v40 = vld [vmem:[#allocation4_spill] sm:$0xff] }
  0xa4   : > { %5086 = vmatprep.subr.bf16.mxu0 %v5085_v2  ;;  %v1175_v52 = vrot.slane %v7327_v40, 2  ;;  %v3527_v40 = vld [vmem:[%s7137_s3 + $0x190] sm:$0xff] }
  0xa5   : > { %4273 = vmatmul.mubr.f32.gmra.mrb[26].mxu1 %v6280_v58 }
  0xa6   : > { %4649 = vmatmul.mubr.f32.gmra.mrb[10].mxu0 %v5947_v50  ;;  %4275 = vmatprep.mubr.msk.f32.mxu1 %vm6412_vm3, %v6293_v12 }
  0xa7   : > { %4651 = vmatprep.mubr.msk.f32.mxu0 %vm6412_vm3, %v7324_v54  ;;  %5088 = vmatpush3.bf16.msra.mxu0 %v5085_v2  ;;  %v7328_v2 = vrot.slane %v5477_v8, 2 }
  0xa8   : > { %5090 = vmatprep.subr.bf16.mxu0 %v5089_v3 }
  0xa9   : > { %4276 = vmatmul.mubr.f32.gmra.mrb[28].mxu1 %v6315_v4  ;;  %v6746_v38 = vsel %vm1174_vm2, %v1175_v52, %v7328_v2  ;;  %v7330_v52 = vld [vmem:[#allocation27_spill] sm:$0xff]  ;;  %v3532_v2 = vld [vmem:[%s7137_s3 + $0x1b8] sm:$0xff] }
  0xaa   : > { %4652 = vmatmul.mubr.f32.gmra.mrb[12].mxu0 %v6019_v27  ;;  %4278 = vmatprep.mubr.msk.f32.mxu1 %vm6412_vm3, %v6351_v9  ;;  %7329 = vst [vmem:[#allocation22_spill] sm:$0xff] %v6746_v38  ;;  %v3528_v27 = vld [vmem:[%s7137_s3 + $0x198] sm:$0xff] }
  0xab   : > { %4654 = vmatprep.mubr.msk.f32.mxu0 %vm6412_vm3, %v7325_v24  ;;  %5092 = vmatpush3.bf16.msra.mxu0 %v5089_v3  ;;  %v4941_v44 = vpack.c.bf16 %v3528_v27, %v3527_v40  ;;  %v3530_v3 = vld [vmem:[%s7137_s3 + $0x1a8] sm:$0xff]  ;;  %v3533_v40 = vld [vmem:[%s7137_s3 + $0x1c0] sm:$0xff] }
  0xac   : > { %5094 = vmatprep.subr.bf16.mxu0 %v5093_v7  ;;  %v4945_v27 = vpack.c.bf16 %v3530_v3, %v3529_v0  ;;  %v3534_v0 = vld [vmem:[%s7137_s3 + $0x1c8] sm:$0xff]  ;;  %v7332_v3 = vld [vmem:[#allocation37_spill] sm:$0xff] }
  0xad   : > { %4279 = vmatmul.mubr.f32.gmra.mrb[30].mxu1 %v6374_v22 }
  0xae   : > { %4655 = vmatmul.mubr.f32.gmra.mrb[14].mxu0 %v6083_v37  ;;  %4313 = vmatprep.mubr.f32.mxu1 %v6746_v38  ;;  %v3538_v38 = vld [vmem:[%s7137_s3 + $0x1e8] sm:$0xff] }
  0xaf   : > { %4657 = vmatprep.mubr.msk.f32.mxu0 %vm6412_vm3, %v7326_v19  ;;  %5096 = vmatpush3.bf16.msra.mxu0 %v5093_v7  ;;  %v3531_v7 = vld [vmem:[%s7137_s3 + $0x1b0] sm:$0xff] }
  0xb0   : > { %5098 = vmatprep.subr.bf16.mxu0 %v6748_v34 }
  0xb1   : > { %4314 = vmatmul.mubr.f32.vlgmr.msra.gmra.mrb[0].mxu1 %v6503_v55  ;;  %v7334_v55 = vld [vmem:[#allocation41_spill] sm:$0xff] }
  0xb2   : > { %4658 = vmatmul.mubr.f32.gmra.mrb[16].mxu0 %v6116_v13  ;;  %4940 = vmatpush3.bf16.msra.mxu1 %v6626_v29  ;;  %v7331_v29 = vld [vmem:[#allocation33_spill] sm:$0xff] }
  0xb3   : > { %4316 = vmatprep.mubr.f32.mxu1 %v5977_v18  ;;  %4660 = vmatprep.mubr.msk.f32.mxu0 %vm6412_vm3, %v6147_v61  ;;  %v4949_v18 = vpack.c.bf16 %v3532_v2, %v3531_v7  ;;  %v3535_v7 = vld [vmem:[%s7137_s3 + $0x1d0] sm:$0xff]  ;;  %v3536_v2 = vld [vmem:[%s7137_s3 + $0x1d8] sm:$0xff] }
  0xb4   : > { %4942 = vmatprep.subr.bf16.mxu1 %v4941_v44 }
  0xb5   : > { %4317 = vmatmul.mubr.f32.gmra.mrb[2].mxu1 %v7330_v52  ;;  %v7333_v52 = vld [vmem:[#allocation38_spill] sm:$0xff] }
  0xb6   : > { %4661 = vmatmul.mubr.f32.gmra.mrb[18].mxu0 %v6172_v36  ;;  %4319 = vmatprep.mubr.f32.mxu1 %v7331_v29 }
  0xb7   : > { %4663 = vmatprep.mubr.msk.f32.mxu0 %vm6412_vm3, %v6194_v47  ;;  %4944 = vmatpush3.bf16.msra.mxu1 %v4941_v44  ;;  %v4953_v44 = vpack.c.bf16 %v3534_v0, %v3533_v40  ;;  %v7335_v40 = vld [vmem:[#allocation44_spill] sm:$0xff]  ;;  %v3537_v0 = vld [vmem:[%s7137_s3 + $0x1e0] sm:$0xff] }
  0xb8   : > { %4946 = vmatprep.subr.bf16.mxu1 %v4945_v27 }
  0xb9   : > { %4320 = vmatmul.mubr.f32.gmra.mrb[4].mxu1 %v6072_v1 }
  0xba   : > { %4664 = vmatmul.mubr.f32.gmra.mrb[20].mxu0 %v6219_v48  ;;  %4322 = vmatprep.mubr.f32.mxu1 %v7332_v3 }
  0xbb   : > { %4666 = vmatprep.mubr.msk.f32.mxu0 %vm6412_vm3, %v6248_v41  ;;  %4948 = vmatpush3.bf16.msra.mxu1 %v4945_v27  ;;  %v4957_v27 = vpack.c.bf16 %v3536_v2, %v3535_v7  ;;  %v3539_v7 = vld [vmem:[%s7137_s3 + $0x1f0] sm:$0xff]  ;;  %v3540_v2 = vld [vmem:[%s7137_s3 + $0x1f8] sm:$0xff] }
  0xbc   : > { %4950 = vmatprep.subr.bf16.mxu1 %v4949_v18 }
  0xbd   : > { %4323 = vmatmul.mubr.f32.gmra.mrb[6].mxu1 %v7333_v52 }
  0xbe   : > { %4667 = vmatmul.mubr.f32.gmra.mrb[22].mxu0 %v6280_v58  ;;  %4325 = vmatprep.mubr.f32.mxu1 %v7334_v55 }
  0xbf   : > { %4669 = vmatprep.mubr.msk.f32.mxu0 %vm6412_vm3, %v6293_v12  ;;  %4952 = vmatpush3.bf16.msra.mxu1 %v4949_v18  ;;  %v4961_v18 = vpack.c.bf16 %v3538_v38, %v3537_v0  ;;  %v4965_v38 = vpack.c.bf16 %v3540_v2, %v3539_v7  ;;  %v7338_v0 = vld [vmem:[#allocation57_spill] sm:$0xff]  ;;  %v7339_v2 = vld [vmem:[#allocation59_spill] sm:$0xff] }
  0xc0   : > { %4954 = vmatprep.subr.bf16.mxu1 %v4953_v44  ;;  %v3672_v7 = vld [vmem:[%s7137_s3 + $0x418] sm:$0xff]  ;;  %v7343_v12 = vld [vmem:[#allocation15_spill] sm:$0xff] }
  0xc1   : > { %4326 = vmatmul.mubr.f32.gmra.mrb[8].mxu1 %v7335_v40 }
  0xc2   : > { %4670 = vmatmul.mubr.f32.gmra.mrb[24].mxu0 %v6315_v4  ;;  %4328 = vmatprep.mubr.f32.mxu1 %v6231_v56  ;;  %v7336_v4 = vld [vmem:[#allocation47_spill] sm:$0xff] }
  0xc3   : > { %4672 = vmatprep.mubr.msk.f32.mxu0 %vm6412_vm3, %v6351_v9  ;;  %4956 = vmatpush3.bf16.msra.mxu1 %v4953_v44  ;;  %v7337_v44 = vld [vmem:[#allocation55_spill] sm:$0xff] }
  0xc4   : > { %4958 = vmatprep.subr.bf16.mxu1 %v4957_v27  ;;  %v7342_v9 = vld [vmem:[#allocation63_spill] sm:$0xff] }
  0xc5   : > { %4329 = vmatmul.mubr.f32.gmra.mrb[10].mxu1 %v6246_v6 }
  0xc6   : > { %4673 = vmatmul.mubr.f32.gmra.mrb[26].mxu0 %v6374_v22  ;;  %4331 = vmatprep.mubr.f32.mxu1 %v7336_v4 }
  0xc7   : > { %4675 = vmatprep.mubr.msk.f32.mxu0 %vm6412_vm3, %v6538_v28  ;;  %4960 = vmatpush3.bf16.msra.mxu1 %v4957_v27  ;;  %v3671_v27 = vld [vmem:[%s7137_s3 + $0x410] sm:$0xff]  ;;  %v7340_v28 = vld [vmem:[#allocation14_spill] sm:$0xff] }
  0xc8   : > { %4962 = vmatprep.subr.bf16.mxu1 %v4961_v18  ;;  %v5101_v22 = vpack.c.bf16 %v3672_v7, %v3671_v27  ;;  %v3676_v27 = vld [vmem:[%s7137_s3 + $0x438] sm:$0xff] }
  0xc9   : > { %4332 = vmatmul.mubr.f32.gmra.mrb[12].mxu1 %v6337_v62  ;;  %v7345_v7 = vld [vmem:[#allocation17_spill] sm:$0xff] }
  0xca   : > { %4676 = vmatmul.mubr.f32.gmra.mrb[28].mxu0 %v6563_v51  ;;  %4334 = vmatprep.mubr.f32.mxu1 %v7337_v44  ;;  %v3674_v44 = vld [vmem:[%s7137_s3 + $0x428] sm:$0xff] }
  0xcb   : > { %4678 = vmatprep.mubr.msk.f32.mxu0 %vm6412_vm3, %v5477_v8  ;;  %4964 = vmatpush3.bf16.msra.mxu1 %v4961_v18  ;;  %v7341_v18 = vld [vmem:[#allocation2_spill] sm:$0xff] }
  0xcc   : > { %4966 = vmatprep.subr.bf16.mxu1 %v4965_v38 }
  0xcd   : > { %4335 = vmatmul.mubr.f32.gmra.mrb[14].mxu1 %v7338_v0  ;;  %v3673_v0 = vld [vmem:[%s7137_s3 + $0x420] sm:$0xff] }
  0xce   : > { %4679 = vmatmul.mubr.f32.gmra.mrb[30].mxu0 %v5477_v8  ;;  %4337 = vmatprep.mubr.f32.mxu1 %v7339_v2  ;;  %v7344_v8 = vld [vmem:[#allocation16_spill] sm:$0xff] }
  0xcf   : > { %4713 = vmatprep.mubr.f32.mxu0 %v7340_v28  ;;  %4968 = vmatpush3.bf16.msra.mxu1 %v4965_v38  ;;  %v5105_v28 = vpack.c.bf16 %v3674_v44, %v3673_v0  ;;  %v3675_v38 = vld [vmem:[%s7137_s3 + $0x430] sm:$0xff]  ;;  %v3677_v44 = vld [vmem:[%s7137_s3 + $0x440] sm:$0xff]  ;;  %v3678_v0 = vld [vmem:[%s7137_s3 + $0x448] sm:$0xff] }
  0xd0   : > { %5129 = vmatprep.subr.bf16.mxu1 %v7341_v18 }
  0xd1   : > { %4338 = vmatmul.mubr.f32.gmra.mrb[16].mxu1 %v7342_v9 }
  0xd2   : > { %4714 = vmatmul.mubr.f32.vlgmr.msra.gmra.mrb[0].mxu0 %v7343_v12  ;;  %4340 = vmatprep.mubr.f32.mxu1 %v6418_v10  ;;  %v7346_v12 = vld [vmem:[#allocation19_spill] sm:$0xff] }
  0xd3   : > { %5100 = vmatpush3.bf16.msra.mxu0 %v6748_v34  ;;  %4716 = vmatprep.mubr.f32.mxu0 %v7344_v8  ;;  %v5109_v34 = vpack.c.bf16 %v3676_v27, %v3675_v38  ;;  %v7347_v8 = vld [vmem:[#allocation20_spill] sm:$0xff]  ;;  %v3680_v27 = vld [vmem:[%s7137_s3 + $0x458] sm:$0xff] }
  0xd4   : > { %5102 = vmatprep.subr.bf16.mxu0 %v5101_v22  ;;  %v3679_v38 = vld [vmem:[%s7137_s3 + $0x450] sm:$0xff] }
  0xd5   : > { %4341 = vmatmul.mubr.f32.gmra.mrb[18].mxu1 %v6443_v20 }
  0xd6   : > { %4717 = vmatmul.mubr.f32.gmra.mrb[2].mxu0 %v7345_v7  ;;  %4343 = vmatprep.mubr.f32.mxu1 %v6449_v60  ;;  %v7348_v7 = vld [vmem:[#allocation23_spill] sm:$0xff] }
  0xd7   : > { %4719 = vmatprep.mubr.f32.mxu0 %v7346_v12  ;;  %5104 = vmatpush3.bf16.msra.mxu0 %v5101_v22  ;;  %v5113_v22 = vpack.c.bf16 %v3678_v0, %v3677_v44  ;;  %v7349_v12 = vld [vmem:[#allocation24_spill] sm:$0xff]  ;;  %v3681_v44 = vld [vmem:[%s7137_s3 + $0x460] sm:$0xff]  ;;  %v3682_v0 = vld [vmem:[%s7137_s3 + $0x468] sm:$0xff] }
  0xd8   : > { %5106 = vmatprep.subr.bf16.mxu0 %v5105_v28 }
  0xd9   : > { %4344 = vmatmul.mubr.f32.gmra.mrb[20].mxu1 %v6476_v46 }
  0xda   : > { %4720 = vmatmul.mubr.f32.gmra.mrb[4].mxu0 %v7347_v8  ;;  %4346 = vmatprep.mubr.f32.mxu1 %v6479_v31  ;;  %v7350_v8 = vld [vmem:[#allocation25_spill] sm:$0xff] }
  0xdb   : > { %4722 = vmatprep.mubr.f32.mxu0 %v7348_v7  ;;  %5108 = vmatpush3.bf16.msra.mxu0 %v5105_v28  ;;  %v5117_v28 = vpack.c.bf16 %v3680_v27, %v3679_v38  ;;  %v7351_v7 = vld [vmem:[#allocation26_spill] sm:$0xff]  ;;  %v3683_v38 = vld [vmem:[%s7137_s3 + $0x470] sm:$0xff]  ;;  %v3684_v27 = vld [vmem:[%s7137_s3 + $0x478] sm:$0xff] }
  0xdc   : > { %5110 = vmatprep.subr.bf16.mxu0 %v5109_v34 }
  0xdd   : > { %4347 = vmatmul.mubr.f32.gmra.mrb[22].mxu1 %v6507_v42 }
  0xde   : > { %4723 = vmatmul.mubr.f32.gmra.mrb[6].mxu0 %v7349_v12  ;;  %4349 = vmatprep.mubr.f32.mxu1 %v6511_v49  ;;  %v7352_v12 = vld [vmem:[#allocation28_spill] sm:$0xff] }
  0xdf   : > { %4725 = vmatprep.mubr.f32.mxu0 %v7350_v8  ;;  %5112 = vmatpush3.bf16.msra.mxu0 %v5109_v34  ;;  %v5121_v34 = vpack.c.bf16 %v3682_v0, %v3681_v44  ;;  %v7353_v8 = vld [vmem:[#allocation29_spill] sm:$0xff]  ;;  %v7355_v44 = vld [vmem:[#allocation35_spill] sm:$0xff] }
  0xe0   : > { %5114 = vmatprep.subr.bf16.mxu0 %v5113_v22  ;;  %v7356_v0 = vld [vmem:[#allocation39_spill] sm:$0xff] }
  0xe1   : > { %4350 = vmatmul.mubr.f32.gmra.mrb[24].mxu1 %v6529_v33 }
  0xe2   : > { %4726 = vmatmul.mubr.f32.gmra.mrb[8].mxu0 %v7351_v7  ;;  %4352 = vmatprep.mubr.f32.mxu1 %v6533_v26  ;;  %v7354_v7 = vld [vmem:[#allocation34_spill] sm:$0xff] }
  0xe3   : > { %4728 = vmatprep.mubr.f32.mxu0 %v7352_v12  ;;  %5116 = vmatpush3.bf16.msra.mxu0 %v5113_v22  ;;  %v5125_v22 = vpack.c.bf16 %v3684_v27, %v3683_v38  ;;  %v7357_v12 = vld [vmem:[#allocation40_spill] sm:$0xff]  ;;  %v7359_v38 = vld [vmem:[#allocation13_spill] sm:$0xff]  ;;  %v7360_v27 = vld [vmem:[#allocation43_spill] sm:$0xff] }
  0xe4   : > { %5118 = vmatprep.subr.bf16.mxu0 %v5117_v28 }
  0xe5   : > { %4353 = vmatmul.mubr.f32.gmra.mrb[26].mxu1 %v6552_v16 }
  0xe6   : > { %4729 = vmatmul.mubr.f32.gmra.mrb[10].mxu0 %v7353_v8  ;;  %4355 = vmatprep.mubr.f32.mxu1 %v6558_v15  ;;  %v7362_v8 = vld [vmem:[#allocation3_spill] sm:$0xff] }
  0xe7   : > { %4731 = vmatprep.mubr.f32.mxu0 %v7354_v7  ;;  %5120 = vmatpush3.bf16.msra.mxu0 %v5117_v28  ;;  %v7358_v28 = vld [vmem:[#allocation42_spill] sm:$0xff]  ;;  %v7364_v7 = vld [vmem:[#allocation48_spill] sm:$0xff] }
  0xe8   : > { %5122 = vmatprep.subr.bf16.mxu0 %v5121_v34 }
  0xe9   : > { %4356 = vmatmul.mubr.f32.gmra.mrb[28].mxu1 %v6581_v53 }
  0xea   : > { %4732 = vmatmul.mubr.f32.gmra.mrb[12].mxu0 %v7355_v44  ;;  %4358 = vmatprep.mubr.f32.mxu1 %v6584_v17  ;;  %v7371_v44 = vld [vmem:[#allocation66_spill] sm:$0xff] }
  0xeb   : > { %4734 = vmatprep.mubr.f32.mxu0 %v7356_v0  ;;  %5124 = vmatpush3.bf16.msra.mxu0 %v5121_v34  ;;  %v7361_v34 = vld [vmem:[#allocation45_spill] sm:$0xff] }
  0xec   : > { %5126 = vmatprep.subr.bf16.mxu0 %v5125_v22 }
  0xed   : > { %4359 = vmatmul.mubr.f32.gmra.mrb[30].mxu1 %v6605_v32 }
  0xee   : > { %4735 = vmatmul.mubr.f32.gmra.mrb[14].mxu0 %v7357_v12  ;;  %4393 = vmatprep.mubr.msk.f32.mxu1 %vm6412_vm3, %v5677_v30  ;;  %v7363_v30 = vld [vmem:[#allocation46_spill] sm:$0xff] }
  0xef   : > { %4737 = vmatprep.mubr.f32.mxu0 %v7358_v28  ;;  %5128 = vmatpush3.bf16.msra.mxu0 %v5125_v22  ;;  %v7368_v22 = vld [vmem:[#allocation7_spill] sm:$0xff] }
  0xf1   : > { %4394 = vmatmul.mubr.f32.vlgmr.msra.gmra.mrb[0].mxu1 %v7359_v38  ;;  %v1838_v38 = vrot.slane %v6563_v51, 1 }
  0xf2   : > { %4738 = vmatmul.mubr.f32.gmra.mrb[16].mxu0 %v7360_v27  ;;  %5137 = vmatpush3.bf16.msra.mxu1 %v7341_v18  ;;  %v7365_v18 = vld [vmem:[#allocation5_spill] sm:$0xff] }
  0xf3   : > { %4396 = vmatprep.mubr.msk.f32.mxu1 %vm6412_vm3, %v5696_v43  ;;  %4740 = vmatprep.mubr.f32.mxu0 %v7361_v34  ;;  %v7366_v43 = vld [vmem:[#allocation49_spill] sm:$0xff] }
  0xf4   : > { %5130 = vmatprep.subr.bf16.mxu1 %v7362_v8 }
  0xf5   : > { %4397 = vmatmul.mubr.f32.gmra.mrb[2].mxu1 %v5729_v5  ;;  %v7367_v5 = vld [vmem:[#allocation51_spill] sm:$0xff] }
  0xf6   : > { %4741 = vmatmul.mubr.f32.gmra.mrb[18].mxu0 %v7363_v30  ;;  %4399 = vmatprep.mubr.msk.f32.mxu1 %vm6412_vm3, %v5716_v63  ;;  %v7369_v63 = vld [vmem:[#allocation52_spill] sm:$0xff] }
  0xf7   : > { %4743 = vmatprep.mubr.f32.mxu0 %v7364_v7  ;;  %5138 = vmatpush3.bf16.msra.mxu1 %v7362_v8  ;;  %v7372_v8 = vld [vmem:[#allocation8_spill] sm:$0xff] }
  0xf8   : > { %5131 = vmatprep.subr.bf16.mxu1 %v7365_v18 }
  0xf9   : > { %4400 = vmatmul.mubr.f32.gmra.mrb[4].mxu1 %v5758_v23  ;;  %v7370_v23 = vld [vmem:[#allocation54_spill] sm:$0xff] }
  0xfa   : > { %4744 = vmatmul.mubr.f32.gmra.mrb[20].mxu0 %v7366_v43  ;;  %4402 = vmatprep.mubr.msk.f32.mxu1 %vm6412_vm3, %v5795_v59  ;;  %v1837_v59 = vrot.slane %v7371_v44, 1  ;;  %v7375_v44 = vld [vmem:[#allocation10_spill] sm:$0xff] }
  0xfb   : > { %4746 = vmatprep.mubr.f32.mxu0 %v7367_v5  ;;  %5139 = vmatpush3.bf16.msra.mxu1 %v7365_v18  ;;  %v7373_v18 = vld [vmem:[#allocation58_spill] sm:$0xff] }
  0xfc   : > { %5132 = vmatprep.subr.bf16.mxu1 %v7368_v22 }
  0xfd   : > { %4403 = vmatmul.mubr.f32.gmra.mrb[6].mxu1 %v5814_v21  ;;  %v7374_v21 = vld [vmem:[#allocation61_spill] sm:$0xff] }
  0xfe   : > { %4747 = vmatmul.mubr.f32.gmra.mrb[22].mxu0 %v7369_v63  ;;  %4405 = vmatprep.mubr.msk.f32.mxu1 %vm6412_vm3, %v7319_v25  ;;  %v1840_v25 = vrot.slane %v6590_v57, 1  ;;  %v7377_v57 = vld [vmem:[#allocation11_spill] sm:$0xff] }
  0xff   : > { %4749 = vmatprep.mubr.f32.mxu0 %v7370_v23  ;;  %5140 = vmatpush3.bf16.msra.mxu1 %v7368_v22  ;;  %v6967_v22 = vsel %vm594_vm1, %v1837_v59, %v1838_v38  ;;  %v7380_v59 = vld [vmem:[#allocation31_spill] sm:$0xff] }
 0x100   : > { %5133 = vmatprep.subr.bf16.mxu1 %v7372_v8 }
 0x101   : > { %4406 = vmatmul.mubr.f32.gmra.mrb[8].mxu1 %v5864_v11  ;;  %v7376_v11 = vld [vmem:[#allocation62_spill] sm:$0xff] }
 0x102   : > { %4750 = vmatmul.mubr.f32.gmra.mrb[24].mxu0 %v7373_v18  ;;  %4408 = vmatprep.mubr.msk.f32.mxu1 %vm6412_vm3, %v7320_v35  ;;  %v6977_v35 = vsel %vm594_vm1, %v1838_v38, %v1840_v25  ;;  %v7381_v38 = vld [vmem:[#allocation9_spill] sm:$0xff] }
 0x103   : > { %4752 = vmatprep.mubr.f32.mxu0 %v7374_v21  ;;  %5141 = vmatpush3.bf16.msra.mxu1 %v7372_v8 }
 0x104   : > { %5134 = vmatprep.subr.bf16.mxu1 %v7375_v44 }
 0x105   : > { %4409 = vmatmul.mubr.f32.gmra.mrb[10].mxu1 %v5897_v45  ;;  %v7378_v45 = vld [vmem:[#allocation6_spill] sm:$0xff] }
 0x106   : > { %4753 = vmatmul.mubr.f32.gmra.mrb[26].mxu0 %v7376_v11  ;;  %4411 = vmatprep.mubr.msk.f32.mxu1 %vm6412_vm3, %v7322_v14  ;;  %v7379_v14 = vld [vmem:[#allocation12_spill] sm:$0xff] }
 0x107   : > { %4755 = vmatprep.mubr.f32.mxu0 %v6967_v22  ;;  %5142 = vmatpush3.bf16.msra.mxu1 %v7375_v44 }
 0x108   : > { %5135 = vmatprep.subr.bf16.mxu1 %v7377_v57 }
 0x109   : > { %4412 = vmatmul.mubr.f32.gmra.mrb[12].mxu1 %v5947_v50  ;;  %v7382_v50 = vld [vmem:[#allocation50_spill] sm:$0xff] }
 0x10a   : > { %4756 = vmatmul.mubr.f32.gmra.mrb[28].mxu0 %v6977_v35  ;;  %4414 = vmatprep.mubr.msk.f32.mxu1 %vm6412_vm3, %v7324_v54 }
 0x10b   : > { %4758 = vmatprep.mubr.f32.mxu0 %v7378_v45  ;;  %5143 = vmatpush3.bf16.msra.mxu1 %v7377_v57 }
 0x10c   : > { %5136 = vmatprep.subr.bf16.mxu1 %v7379_v14 }
 0x10d   : > { %4415 = vmatmul.mubr.f32.gmra.mrb[14].mxu1 %v7380_v59 }
 0x10e   : > { %4759 = vmatmul.mubr.f32.gmra.mrb[30].mxu0 %v7381_v38  ;;  %4417 = vmatprep.mubr.msk.f32.mxu1 %vm6412_vm3, %v7325_v24 }
 0x10f   : > { %4793 = vmatprep.mubr.f32.mxu0 %v7331_v29  ;;  %5144 = vmatpush3.bf16.msra.mxu1 %v7379_v14 }
 0x111   : > { %4418 = vmatmul.mubr.f32.gmra.mrb[16].mxu1 %v6083_v37  ;;  %v7384_v37 = vld [vmem:[#allocation53_spill] sm:$0xff] }
 0x112   : > { %4794 = vmatmul.mubr.f32.vlgmr.msra.gmra.mrb[0].mxu0 %v6072_v1  ;;  %4420 = vmatprep.mubr.msk.f32.mxu1 %vm6412_vm3, %v7326_v19  ;;  %v7383_v1 = vld [vmem:[#allocation55_spill] sm:$0xff] }
 0x113   : > { %4796 = vmatprep.mubr.f32.mxu0 %v7332_v3 }
 0x115   : > { %4421 = vmatmul.mubr.f32.gmra.mrb[18].mxu1 %v6116_v13  ;;  %v7385_v13 = vld [vmem:[#allocation57_spill] sm:$0xff] }
 0x116   : > { %4797 = vmatmul.mubr.f32.gmra.mrb[2].mxu0 %v7333_v52  ;;  %4423 = vmatprep.mubr.msk.f32.mxu1 %vm6412_vm3, %v6147_v61  ;;  %v7386_v61 = vld [vmem:[#allocation56_spill] sm:$0xff] }
 0x117   : > { %4799 = vmatprep.mubr.f32.mxu0 %v7334_v55 }
 0x119   : > { %4424 = vmatmul.mubr.f32.gmra.mrb[20].mxu1 %v6172_v36  ;;  %v7388_v36 = vld [vmem:[#allocation65_spill] sm:$0xff] }
 0x11a   : > { %4800 = vmatmul.mubr.f32.gmra.mrb[4].mxu0 %v7335_v40  ;;  %4426 = vmatprep.mubr.msk.f32.mxu1 %vm6412_vm3, %v6194_v47  ;;  %v7389_v47 = vld [vmem:[#allocation18_spill] sm:$0xff] }
 0x11b   : > { %4802 = vmatprep.mubr.f32.mxu0 %v6231_v56  ;;  %v7387_v56 = vld [vmem:[#allocation60_spill] sm:$0xff] }
 0x11d   : > { %4427 = vmatmul.mubr.f32.gmra.mrb[22].mxu1 %v6219_v48  ;;  %v7390_v48 = vld [vmem:[#allocation21_spill] sm:$0xff] }
 0x11e   : > { %4803 = vmatmul.mubr.f32.gmra.mrb[6].mxu0 %v6246_v6  ;;  %4429 = vmatprep.mubr.msk.f32.mxu1 %vm6412_vm3, %v6248_v41  ;;  %v7391_v6 = vld [vmem:[#allocation22_spill] sm:$0xff]  ;;  %v7392_v41 = vld [vmem:[#allocation64_spill] sm:$0xff] }
 0x11f   : > { %4805 = vmatprep.mubr.f32.mxu0 %v7336_v4 }
 0x121   : > { %4430 = vmatmul.mubr.f32.gmra.mrb[24].mxu1 %v6280_v58 }
 0x122   : > { %4806 = vmatmul.mubr.f32.gmra.mrb[8].mxu0 %v6337_v62  ;;  %4432 = vmatprep.mubr.msk.f32.mxu1 %vm6412_vm3, %v7382_v50 }
 0x123   : > { %4808 = vmatprep.mubr.f32.mxu0 %v7383_v1 }
 0x125   : > { %4433 = vmatmul.mubr.f32.gmra.mrb[26].mxu1 %v7384_v37 }
 0x126   : > { %4809 = vmatmul.mubr.f32.gmra.mrb[10].mxu0 %v7385_v13  ;;  %4435 = vmatprep.mubr.msk.f32.mxu1 %vm6412_vm3, %v7386_v61 }
 0x127   : > { %4811 = vmatprep.mubr.f32.mxu0 %v7339_v2 }
 0x129   : > { %4436 = vmatmul.mubr.f32.gmra.mrb[28].mxu1 %v7387_v56 }
 0x12a   : > { %4812 = vmatmul.mubr.f32.gmra.mrb[12].mxu0 %v7342_v9  ;;  %4438 = vmatprep.mubr.msk.f32.mxu1 %vm6412_vm3, %v7388_v36 }
 0x12b   : > { %4814 = vmatprep.mubr.f32.mxu0 %v6418_v10 }
 0x12d   : > { %4439 = vmatmul.mubr.f32.gmra.mrb[30].mxu1 %v6563_v51 }
 0x12e   : > { %4815 = vmatmul.mubr.f32.gmra.mrb[14].mxu0 %v6443_v20  ;;  %4497 = vmatprep.mubr.f32.mxu1 %v7356_v0 }
 0x12f   : > { %4817 = vmatprep.mubr.f32.mxu0 %v6449_v60 }
 0x131   : > { %4498 = vmatmul.mubr.f32.vlgmr.msra.gmra.mrb[16].mxu1 %v7357_v12 }
 0x132   : > { %4818 = vmatmul.mubr.f32.gmra.mrb[16].mxu0 %v6476_v46  ;;  %4500 = vmatprep.mubr.f32.mxu1 %v7358_v28 }
 0x133   : > { %4820 = vmatprep.mubr.f32.mxu0 %v6479_v31 }
 0x135   : > { %4501 = vmatmul.mubr.f32.gmra.mrb[18].mxu1 %v7360_v27 }
 0x136   : > { %4821 = vmatmul.mubr.f32.gmra.mrb[18].mxu0 %v6507_v42  ;;  %4503 = vmatprep.mubr.f32.mxu1 %v7361_v34 }
 0x137   : > { %4823 = vmatprep.mubr.f32.mxu0 %v6511_v49 }
 0x139   : > { %4504 = vmatmul.mubr.f32.gmra.mrb[20].mxu1 %v7363_v30 }
 0x13a   : > { %4824 = vmatmul.mubr.f32.gmra.mrb[20].mxu0 %v6529_v33  ;;  %4506 = vmatprep.mubr.f32.mxu1 %v7364_v7 }
 0x13b   : > { %4826 = vmatprep.mubr.f32.mxu0 %v6533_v26 }
 0x13d   : > { %4507 = vmatmul.mubr.f32.gmra.mrb[22].mxu1 %v7366_v43 }
 0x13e   : > { %4827 = vmatmul.mubr.f32.gmra.mrb[22].mxu0 %v6552_v16  ;;  %4509 = vmatprep.mubr.f32.mxu1 %v7367_v5 }
 0x13f   : > { %4829 = vmatprep.mubr.f32.mxu0 %v6558_v15 }
 0x141   : > { %4510 = vmatmul.mubr.f32.gmra.mrb[24].mxu1 %v7369_v63 }
 0x142   : > { %4830 = vmatmul.mubr.f32.gmra.mrb[24].mxu0 %v6581_v53  ;;  %4512 = vmatprep.mubr.f32.mxu1 %v7370_v23 }
 0x143   : > { %4832 = vmatprep.mubr.f32.mxu0 %v6584_v17 }
 0x145   : > { %4513 = vmatmul.mubr.f32.gmra.mrb[26].mxu1 %v7373_v18 }
 0x146   : > { %4833 = vmatmul.mubr.f32.gmra.mrb[26].mxu0 %v6605_v32  ;;  %4515 = vmatprep.mubr.f32.mxu1 %v7374_v21 }
 0x147   : > { %4835 = vmatprep.mubr.f32.mxu0 %v7389_v47 }
 0x149   : > { %4516 = vmatmul.mubr.f32.gmra.mrb[28].mxu1 %v7376_v11 }
 0x14a   : > { %4836 = vmatmul.mubr.f32.gmra.mrb[28].mxu0 %v7390_v48  ;;  %4518 = vmatprep.mubr.f32.mxu1 %v6967_v22 }
 0x14b   : > { %4838 = vmatprep.mubr.f32.mxu0 %v7391_v6 }
 0x14d   : > { %4519 = vmatmul.mubr.f32.gmra.mrb[30].mxu1 %v6977_v35 }
 0x14e   : > { %4839 = vmatmul.mubr.f32.gmra.mrb[30].mxu0 %v7392_v41 }
 0x1c4   : > { %v4395_v9 = vpop.f32.mrb[0].mxu1 }
 0x1c5   : > { %v1644_v58 = vpop.f32.mrb[1].mxu1 }
 0x1c8   : > { %v4398_v4 = vpop.f32.mrb[2].mxu1 }
 0x1c9   : > { %v1654_v62 = vpop.f32.mrb[3].mxu1 }
 0x1cc   : > { %v4401_v60 = vpop.f32.mrb[4].mxu1 }
 0x1cd   : > { %v1664_v39 = vpop.f32.mrb[5].mxu1 }
 0x1d0   : > { %v4404_v10 = vpop.f32.mrb[6].mxu1 }
 0x1d1   : > { %v1674_v20 = vpop.f32.mrb[7].mxu1 }
 0x1d4   : > { %v4407_v46 = vpop.f32.mrb[8].mxu1 }
 0x1d5   : > { %v1684_v31 = vpop.f32.mrb[9].mxu1 }
 0x1d8   : > { %v4410_v55 = vpop.f32.mrb[10].mxu1 }
 0x1d9   : > { %v7072_v42 = vpop.f32.mrb[11].mxu1 }
 0x1dc   : > { %v7074_v49 = vpop.f32.mrb[12].mxu1 }
 0x1dd   : > { %v7076_v33 = vpop.f32.mrb[13].mxu1 }
 0x1e0   : > { %v7078_v26 = vpop.f32.mrb[14].mxu1 }
 0x1e1   : > { %v7080_v16 = vpop.f32.mrb[15].mxu1 }
 0x1e5   : > { %v4795_v15 = vpop.f32.mrb[0].mxu0 }
 0x1e6   : > { %v5145_v51 = vadd.f32 %v4795_v15, %v4395_v9  ;;  %v3030_v53 = vpop.f32.mrb[1].mxu0 }
 0x1e7   : > { %v5146_v17 = vadd.f32 %v3030_v53, %v1644_v58 }
 0x1e8   : > { %3222 = vst [vmem:[%s7087_s16 + $0x8] sm:$0xff] %v5145_v51  ;;  %v3291_v32 = vmul.f32 %v5145_v51, %v5145_v51 }
 0x1e9   : > { %3221 = vst [vmem:[%s7087_s16] sm:$0xff] %v5146_v17  ;;  %v3253_v54 = vadd.f32 %v5146_v17, %v5145_v51  ;;  %v3290_v24 = vmul.f32 %v5146_v17, %v5146_v17  ;;  %v4798_v19 = vpop.f32.mrb[2].mxu0 }
 0x1ea   : > { %v5147_v29 = vadd.f32 %v4798_v19, %v4398_v4  ;;  %v3040_v3 = vpop.f32.mrb[3].mxu0 }
 0x1eb   : > { %v3322_v52 = vadd.f32 %v3291_v32, %v3290_v24  ;;  %v5148_v40 = vadd.f32 %v3040_v3, %v1654_v62 }
 0x1ec   : > { %3224 = vst [vmem:[%s7087_s16 + $0x18] sm:$0xff] %v5147_v29  ;;  %v3293_v34 = vmul.f32 %v5147_v29, %v5147_v29 }
 0x1ed   : > { %3223 = vst [vmem:[%s7087_s16 + $0x10] sm:$0xff] %v5148_v40  ;;  %v3254_v2 = vadd.f32 %v5148_v40, %v3253_v54  ;;  %v3292_v0 = vmul.f32 %v5148_v40, %v5148_v40  ;;  %v4801_v12 = vpop.f32.mrb[4].mxu0 }
 0x1ee   : > { %v5149_v28 = vadd.f32 %v4801_v12, %v4401_v60  ;;  %v3050_v27 = vpop.f32.mrb[5].mxu0 }
 0x1ef   : > { %v3323_v30 = vadd.f32 %v3322_v52, %v3292_v0  ;;  %v5150_v7 = vadd.f32 %v3050_v27, %v1664_v39  ;;  %v3255_v43 = vadd.f32 %v5147_v29, %v3254_v2 }
 0x1f0   : > { %3226 = vst [vmem:[%s7087_s16 + $0x28] sm:$0xff] %v5149_v28  ;;  %v3295_v25 = vmul.f32 %v5149_v28, %v5149_v28 }
 0x1f1   : > { %3225 = vst [vmem:[%s7087_s16 + $0x20] sm:$0xff] %v5150_v7  ;;  %v3256_v5 = vadd.f32 %v5150_v7, %v3255_v43  ;;  %v3294_v63 = vmul.f32 %v5150_v7, %v5150_v7  ;;  %v3324_v23 = vadd.f32 %v3323_v30, %v3293_v34  ;;  %v4804_v8 = vpop.f32.mrb[6].mxu0 }
 0x1f2   : > { %v5151_v18 = vadd.f32 %v4804_v8, %v4404_v10  ;;  %v3060_v21 = vpop.f32.mrb[7].mxu0 }
 0x1f3   : > { %v3325_v22 = vadd.f32 %v3324_v23, %v3294_v63  ;;  %v5152_v44 = vadd.f32 %v3060_v21, %v1674_v20  ;;  %v3257_v11 = vadd.f32 %v5149_v28, %v3256_v5 }
 0x1f4   : > { %3228 = vst [vmem:[%s7087_s16 + $0x38] sm:$0xff] %v5151_v18  ;;  %v3297_v50 = vmul.f32 %v5151_v18, %v5151_v18 }
 0x1f5   : > { %3227 = vst [vmem:[%s7087_s16 + $0x30] sm:$0xff] %v5152_v44  ;;  %v3258_v35 = vadd.f32 %v5152_v44, %v3257_v11  ;;  %v3296_v57 = vmul.f32 %v5152_v44, %v5152_v44  ;;  %v3326_v45 = vadd.f32 %v3325_v22, %v3295_v25  ;;  %v4807_v14 = vpop.f32.mrb[8].mxu0 }
 0x1f6   : > { %v5153_v59 = vadd.f32 %v4807_v14, %v4407_v46  ;;  %v3070_v38 = vpop.f32.mrb[9].mxu0 }
 0x1f7   : > { %v3327_v1 = vadd.f32 %v3326_v45, %v3296_v57  ;;  %v5154_v37 = vadd.f32 %v3070_v38, %v1684_v31  ;;  %v3259_v13 = vadd.f32 %v5151_v18, %v3258_v35 }
 0x1f8   : > { %3230 = vst [vmem:[%s7087_s16 + $0x48] sm:$0xff] %v5153_v59  ;;  %v3299_v41 = vmul.f32 %v5153_v59, %v5153_v59 }
 0x1f9   : > { %3229 = vst [vmem:[%s7087_s16 + $0x40] sm:$0xff] %v5154_v37  ;;  %v3260_v61 = vadd.f32 %v5154_v37, %v3259_v13  ;;  %v3298_v56 = vmul.f32 %v5154_v37, %v5154_v37  ;;  %v3328_v36 = vadd.f32 %v3327_v1, %v3297_v50  ;;  %v4810_v47 = vpop.f32.mrb[10].mxu0 }
 0x1fa   : > { %v5155_v48 = vadd.f32 %v4810_v47, %v4410_v55  ;;  %v3080_v6 = vpop.f32.mrb[11].mxu0 }
 0x1fb   : > { %v3329_v9 = vadd.f32 %v3328_v36, %v3298_v56  ;;  %v5156_v58 = vadd.f32 %v3080_v6, %v7072_v42  ;;  %v3261_v4 = vadd.f32 %v5153_v59, %v3260_v61 }
 0x1fc   : > { %3232 = vst [vmem:[%s7087_s16 + $0x58] sm:$0xff] %v5155_v48  ;;  %v3301_v31 = vmul.f32 %v5155_v48, %v5155_v48 }
 0x1fd   : > { %3231 = vst [vmem:[%s7087_s16 + $0x50] sm:$0xff] %v5156_v58  ;;  %v3262_v62 = vadd.f32 %v5156_v58, %v3261_v4  ;;  %v3300_v60 = vmul.f32 %v5156_v58, %v5156_v58  ;;  %v3330_v39 = vadd.f32 %v3329_v9, %v3299_v41  ;;  %v4813_v10 = vpop.f32.mrb[12].mxu0 }
 0x1fe   : > { %v5157_v20 = vadd.f32 %v4813_v10, %v7074_v49  ;;  %v3090_v46 = vpop.f32.mrb[13].mxu0 }
 0x1ff   : > { %v3331_v55 = vadd.f32 %v3330_v39, %v3300_v60  ;;  %v5158_v15 = vadd.f32 %v3090_v46, %v7076_v33  ;;  %v3263_v51 = vadd.f32 %v5155_v48, %v3262_v62 }
 0x200   : > { %3234 = vst [vmem:[%s7087_s16 + $0x68] sm:$0xff] %v5157_v20  ;;  %v3303_v19 = vmul.f32 %v5157_v20, %v5157_v20 }
 0x201   : > { %3233 = vst [vmem:[%s7087_s16 + $0x60] sm:$0xff] %v5158_v15  ;;  %v3264_v42 = vadd.f32 %v5158_v15, %v3263_v51  ;;  %v3302_v53 = vmul.f32 %v5158_v15, %v5158_v15  ;;  %v3332_v17 = vadd.f32 %v3331_v55, %v3301_v31  ;;  %v4816_v32 = vpop.f32.mrb[14].mxu0 }
 0x202   : > { %v5159_v54 = vadd.f32 %v4816_v32, %v7078_v26  ;;  %v3100_v24 = vpop.f32.mrb[15].mxu0 }
 0x203   : > { %v3333_v29 = vadd.f32 %v3332_v17, %v3302_v53  ;;  %v5160_v49 = vadd.f32 %v3100_v24, %v7080_v16  ;;  %v3265_v3 = vadd.f32 %v5157_v20, %v3264_v42 }
 0x204   : > { %3236 = vst [vmem:[%s7087_s16 + $0x78] sm:$0xff] %v5159_v54  ;;  %v4499_v33 = vpop.f32.mrb[16].mxu1  ;;  %v3305_v34 = vmul.f32 %v5159_v54, %v5159_v54 }
 0x205   : > { %3235 = vst [vmem:[%s7087_s16 + $0x70] sm:$0xff] %v5160_v49  ;;  %v3266_v52 = vadd.f32 %v5160_v49, %v3265_v3  ;;  %v3304_v40 = vmul.f32 %v5160_v49, %v5160_v49  ;;  %v3334_v2 = vadd.f32 %v3333_v29, %v3303_v19  ;;  %v4819_v0 = vpop.f32.mrb[16].mxu0  ;;  %v2007_v12 = vpop.f32.mrb[17].mxu1 }
 0x206   : > { %v5161_v28 = vadd.f32 %v4819_v0, %v4499_v33  ;;  %v3110_v27 = vpop.f32.mrb[17].mxu0 }
 0x207   : > { %v3335_v26 = vadd.f32 %v3334_v2, %v3304_v40  ;;  %v5162_v30 = vadd.f32 %v3110_v27, %v2007_v12  ;;  %v3267_v7 = vadd.f32 %v5159_v54, %v3266_v52 }
 0x208   : > { %3238 = vst [vmem:[%s7087_s16 + $0x88] sm:$0xff] %v5161_v28  ;;  %v4502_v16 = vpop.f32.mrb[18].mxu1  ;;  %v3307_v25 = vmul.f32 %v5161_v28, %v5161_v28 }
 0x209   : > { %3237 = vst [vmem:[%s7087_s16 + $0x80] sm:$0xff] %v5162_v30  ;;  %v3268_v43 = vadd.f32 %v5162_v30, %v3267_v7  ;;  %v3306_v5 = vmul.f32 %v5162_v30, %v5162_v30  ;;  %v3336_v63 = vadd.f32 %v3335_v26, %v3305_v34  ;;  %v4822_v23 = vpop.f32.mrb[18].mxu0  ;;  %v2017_v8 = vpop.f32.mrb[19].mxu1 }
 0x20a   : > { %v5163_v18 = vadd.f32 %v4822_v23, %v4502_v16  ;;  %v3120_v21 = vpop.f32.mrb[19].mxu0 }
 0x20b   : > { %v3337_v22 = vadd.f32 %v3336_v63, %v3306_v5  ;;  %v5164_v44 = vadd.f32 %v3120_v21, %v2017_v8  ;;  %v3269_v11 = vadd.f32 %v5161_v28, %v3268_v43 }
 0x20c   : > { %3240 = vst [vmem:[%s7087_s16 + $0x98] sm:$0xff] %v5163_v18  ;;  %v4505_v35 = vpop.f32.mrb[20].mxu1  ;;  %v3309_v37 = vmul.f32 %v5163_v18, %v5163_v18 }
 0x20d   : > { %3239 = vst [vmem:[%s7087_s16 + $0x90] sm:$0xff] %v5164_v44  ;;  %v3270_v57 = vadd.f32 %v5164_v44, %v3269_v11  ;;  %v3308_v45 = vmul.f32 %v5164_v44, %v5164_v44  ;;  %v3338_v14 = vadd.f32 %v3337_v22, %v3307_v25  ;;  %v4825_v59 = vpop.f32.mrb[20].mxu0  ;;  %v2027_v38 = vpop.f32.mrb[21].mxu1 }
 0x20e   : > { %v5165_v50 = vadd.f32 %v4825_v59, %v4505_v35  ;;  %v3130_v1 = vpop.f32.mrb[21].mxu0 }
 0x20f   : > { %v3339_v13 = vadd.f32 %v3338_v14, %v3308_v45  ;;  %v5166_v61 = vadd.f32 %v3130_v1, %v2027_v38  ;;  %v3271_v56 = vadd.f32 %v5163_v18, %v3270_v57 }
 0x210   : > { %3242 = vst [vmem:[%s7087_s16 + $0xa8] sm:$0xff] %v5165_v50  ;;  %v4508_v36 = vpop.f32.mrb[22].mxu1  ;;  %v3311_v62 = vmul.f32 %v5165_v50, %v5165_v50 }
 0x211   : > { %3241 = vst [vmem:[%s7087_s16 + $0xa0] sm:$0xff] %v5166_v61  ;;  %v3272_v47 = vadd.f32 %v5166_v61, %v3271_v56  ;;  %v3310_v48 = vmul.f32 %v5166_v61, %v5166_v61  ;;  %v3340_v6 = vadd.f32 %v3339_v13, %v3309_v37  ;;  %v4828_v41 = vpop.f32.mrb[22].mxu0  ;;  %v2037_v9 = vpop.f32.mrb[23].mxu1 }
 0x212   : > { %v5167_v58 = vadd.f32 %v4828_v41, %v4508_v36  ;;  %v3140_v4 = vpop.f32.mrb[23].mxu0 }
 0x213   : > { %v3341_v60 = vadd.f32 %v3340_v6, %v3310_v48  ;;  %v5168_v39 = vadd.f32 %v3140_v4, %v2037_v9  ;;  %v3273_v10 = vadd.f32 %v5165_v50, %v3272_v47 }
 0x214   : > { %3244 = vst [vmem:[%s7087_s16 + $0xb8] sm:$0xff] %v5167_v58  ;;  %v4511_v20 = vpop.f32.mrb[24].mxu1  ;;  %v3313_v17 = vmul.f32 %v5167_v58, %v5167_v58 }
 0x215   : > { %3243 = vst [vmem:[%s7087_s16 + $0xb0] sm:$0xff] %v5168_v39  ;;  %v3274_v46 = vadd.f32 %v5168_v39, %v3273_v10  ;;  %v3312_v31 = vmul.f32 %v5168_v39, %v5168_v39  ;;  %v3342_v55 = vadd.f32 %v3341_v60, %v3311_v62  ;;  %v4831_v15 = vpop.f32.mrb[24].mxu0  ;;  %v2047_v51 = vpop.f32.mrb[25].mxu1 }
 0x216   : > { %v5169_v42 = vadd.f32 %v4831_v15, %v4511_v20  ;;  %v3150_v53 = vpop.f32.mrb[25].mxu0 }
 0x217   : > { %v3343_v32 = vadd.f32 %v3342_v55, %v3312_v31  ;;  %v5170_v54 = vadd.f32 %v3150_v53, %v2047_v51  ;;  %v3275_v24 = vadd.f32 %v5167_v58, %v3274_v46 }
 0x218   : > { %3246 = vst [vmem:[%s7087_s16 + $0xc8] sm:$0xff] %v5169_v42  ;;  %v4514_v19 = vpop.f32.mrb[26].mxu1  ;;  %v3315_v0 = vmul.f32 %v5169_v42, %v5169_v42 }
 0x219   : > { %3245 = vst [vmem:[%s7087_s16 + $0xc0] sm:$0xff] %v5170_v54  ;;  %v3276_v29 = vadd.f32 %v5170_v54, %v3275_v24  ;;  %v3314_v49 = vmul.f32 %v5170_v54, %v5170_v54  ;;  %v3344_v3 = vadd.f32 %v3343_v32, %v3313_v17  ;;  %v4834_v33 = vpop.f32.mrb[26].mxu0  ;;  %v2057_v52 = vpop.f32.mrb[27].mxu1 }
 0x21a   : > { %v5171_v40 = vadd.f32 %v4834_v33, %v4514_v19  ;;  %v3160_v2 = vpop.f32.mrb[27].mxu0 }
 0x21b   : > { %v3345_v12 = vadd.f32 %v3344_v3, %v3314_v49  ;;  %v5172_v28 = vadd.f32 %v3160_v2, %v2057_v52  ;;  %v3277_v27 = vadd.f32 %v5169_v42, %v3276_v29 }
 0x21c   : > { %3248 = vst [vmem:[%s7087_s16 + $0xd8] sm:$0xff] %v5171_v40  ;;  %v4517_v34 = vpop.f32.mrb[28].mxu1  ;;  %v3317_v23 = vmul.f32 %v5171_v40, %v5171_v40 }
 0x21d   : > { %3247 = vst [vmem:[%s7087_s16 + $0xd0] sm:$0xff] %v5172_v28  ;;  %v3278_v26 = vadd.f32 %v5172_v28, %v3277_v27  ;;  %v3316_v30 = vmul.f32 %v5172_v28, %v5172_v28  ;;  %v3346_v7 = vadd.f32 %v3345_v12, %v3315_v0  ;;  %v4837_v16 = vpop.f32.mrb[28].mxu0  ;;  %v2067_v43 = vpop.f32.mrb[29].mxu1 }
 0x21e   : > { %v5173_v5 = vadd.f32 %v4837_v16, %v4517_v34  ;;  %v3170_v63 = vpop.f32.mrb[29].mxu0 }
 0x21f   : > { %v3347_v8 = vadd.f32 %v3346_v7, %v3316_v30  ;;  %v5174_v18 = vadd.f32 %v3170_v63, %v2067_v43  ;;  %v3279_v21 = vadd.f32 %v5171_v40, %v3278_v26 }
 0x220   : > { %3250 = vst [vmem:[%s7087_s16 + $0xe8] sm:$0xff] %v5173_v5  ;;  %v4520_v25 = vpop.f32.mrb[30].mxu1  ;;  %v3319_v59 = vmul.f32 %v5173_v5, %v5173_v5 }
 0x221   : > { %3249 = vst [vmem:[%s7087_s16 + $0xe0] sm:$0xff] %v5174_v18  ;;  %v3280_v22 = vadd.f32 %v5174_v18, %v3279_v21  ;;  %v3318_v44 = vmul.f32 %v5174_v18, %v5174_v18  ;;  %v3348_v11 = vadd.f32 %v3347_v8, %v3317_v23  ;;  %v4840_v35 = vpop.f32.mrb[30].mxu0  ;;  %v2077_v57 = vpop.f32.mrb[31].mxu1 }
 0x222   : > { %v5175_v45 = vadd.f32 %v4840_v35, %v4520_v25  ;;  %v3180_v14 = vpop.f32.mrb[31].mxu0 }
 0x223   : > { %v3349_v38 = vadd.f32 %v3348_v11, %v3318_v44  ;;  %v5176_v50 = vadd.f32 %v3180_v14, %v2077_v57  ;;  %v3281_v1 = vadd.f32 %v5173_v5, %v3280_v22 }
 0x224   : > { %3252 = vst [vmem:[%s7087_s16 + $0xf8] sm:$0xff] %v5175_v45  ;;  %v3321_v56 = vmul.f32 %v5175_v45, %v5175_v45 }
 0x225   : > { %3251 = vst [vmem:[%s7087_s16 + $0xf0] sm:$0xff] %v5176_v50  ;;  %v3282_v37 = vadd.f32 %v5176_v50, %v3281_v1  ;;  %v3320_v13 = vmul.f32 %v5176_v50, %v5176_v50  ;;  %v3350_v61 = vadd.f32 %v3349_v38, %v3319_v59 }
 0x227   : > { %v3283_v36 = vadd.f32 %v5175_v45, %v3282_v37  ;;  %v3351_v47 = vadd.f32 %v3350_v61, %v3320_v13 }
 0x229   : > { %v3284_v48 = vrot.slane %v3283_v36, 4  ;;  %v3352_v6 = vadd.f32 %v3351_v47, %v3321_v56 }
 0x22b   : > { %v3285_v41 = vadd.f32 %v3284_v48, %v3283_v36  ;;  %v3353_v9 = vrot.slane %v3352_v6, 4 }
 0x22d   : > { %v3286_v58 = vrot.slane %v3285_v41, 2  ;;  %v3354_v4 = vadd.f32 %v3353_v9, %v3352_v6 }
 0x22f   : > { %v3287_v62 = vadd.f32 %v3286_v58, %v3285_v41  ;;  %v3355_v60 = vrot.slane %v3354_v4, 2 }
 0x231   : > { %v3288_v39 = vrot.slane %v3287_v62, 1  ;;  %v3356_v10 = vadd.f32 %v3355_v60, %v3354_v4 }
 0x233   : > { %v3357_v20 = vrot.slane %v3356_v10, 1  ;;  %v3289_v46 = vadd.f32 %v3288_v39, %v3287_v62 }
 0x235   : > { %v3358_v31 = vadd.f32 %v3357_v20, %v3356_v10 }
 0x237   : > { %v3359_v55 = vsel %vm411_vm0, %v3289_v46, %v3358_v31 }
 0x238   : > { %v3361_v15 = vsel %vm3360_vm4, %v3359_v55, 0.0 }
 0x239   : > { %3362 = vst [vmem:[%s235_s21] sm:$0xff] %v3361_v15 }
 0x23a PF: > { %s16_s18 = sadd.s32 1, %s5418_s18  }
 0x23b   : > { %p13_p4 = scmp.ge.s32.totalorder %s16_s18, 4  }
 0x23d   :  { %15 = sbr.rel (!%p13_p4) target bundleno = 1 (0x1), region = 86 }

</bundles_post_ra>
